<compile_context>
chip_gen: v5e
topology: v5e:2x2
jax: 0.10.0
libtpu: 0.0.40
codegen_flags: <defaults>
</compile_context>

<pallas_src>
import functools

import jax
import jax.numpy as jnp
from jax import lax
from jax.experimental import pallas as pl
from jax.experimental.pallas import tpu as pltpu


def _pick_chunk(n, cap, multiple_of=1):
    """Largest c <= cap with n % c == 0 and c % multiple_of == 0; fallback n (full)."""
    if n <= cap:
        return n
    for c in range(cap, 0, -1):
        if n % c == 0 and c % multiple_of == 0:
            return c
    return n


def _lstm_cell(gates, c_prev, hidden_dim):
    """PyTorch gate order (i, f, g, o); all elementwise math in f32."""
    H = hidden_dim
    i_g = jax.nn.sigmoid(gates[:, 0:H])
    f_g = jax.nn.sigmoid(gates[:, H:2 * H])
    g_g = jnp.tanh(gates[:, 2 * H:3 * H])
    o_g = jax.nn.sigmoid(gates[:, 3 * H:4 * H])
    c_new = f_g * c_prev + i_g * g_g
    h_new = o_g * jnp.tanh(c_new)
    return h_new, c_new


# -----------------------------------------------------------------------------
# Input-projection kernels: the x @ W_ih part, hoisted out of the recurrence.
# -----------------------------------------------------------------------------

def _proj_first_kernel(x_ref, wf_ref, wb_ref, bf_ref, bb_ref, gf_ref, gb_ref):
    x = x_ref[...]
    gf_ref[...] = (jnp.dot(x, wf_ref[...], preferred_element_type=jnp.float32)
                   + bf_ref[...])
    gb_ref[...] = (jnp.dot(x, wb_ref[...], preferred_element_type=jnp.float32)
                   + bb_ref[...])


def _proj_deep_kernel(xa_ref, xb_ref, wfa_ref, wfb_ref, wba_ref, wbb_ref,
                      bf_ref, bb_ref, gf_ref, gb_ref):
    # Takes the previous layer's fwd/bwd outputs as two refs + split W_ih halves,
    # so no (T, B, 2H) concatenation is ever built.
    xa = xa_ref[...]
    xb = xb_ref[...]
    gf_ref[...] = (jnp.dot(xa, wfa_ref[...], preferred_element_type=jnp.float32)
                   + jnp.dot(xb, wfb_ref[...], preferred_element_type=jnp.float32)
                   + bf_ref[...])
    gb_ref[...] = (jnp.dot(xa, wba_ref[...], preferred_element_type=jnp.float32)
                   + jnp.dot(xb, wbb_ref[...], preferred_element_type=jnp.float32)
                   + bb_ref[...])


def _full2d_spec(shape):
    return pl.BlockSpec(shape, lambda i: (0, 0))


def _project_first(x2d, w_f, w_b, b_f, b_b):
    n, din = x2d.shape
    gh = w_f.shape[1]
    rc = _pick_chunk(n, 512, multiple_of=8)
    row_in = pl.BlockSpec((rc, din), lambda i: (i, 0))
    row_out = pl.BlockSpec((rc, gh), lambda i: (i, 0))
    return pl.pallas_call(
        _proj_first_kernel,
        grid=(n // rc,),
        in_specs=[row_in, _full2d_spec(w_f.shape), _full2d_spec(w_b.shape),
                  _full2d_spec(b_f.shape), _full2d_spec(b_b.shape)],
        out_specs=(row_out, row_out),
        out_shape=(jax.ShapeDtypeStruct((n, gh), jnp.float32),
                   jax.ShapeDtypeStruct((n, gh), jnp.float32)),
        compiler_params=pltpu.CompilerParams(dimension_semantics=("parallel",)),
    )(x2d, w_f, w_b, b_f, b_b)


def _project_deep(xa2d, xb2d, wih_f, wih_b, b_f, b_b, hidden_dim):
    H = hidden_dim
    n = xa2d.shape[0]
    gh = wih_f.shape[1]
    # W_ih (2H, 4H) split into the halves acting on out_fwd / out_bwd.
    wfa, wfb = wih_f[:H], wih_f[H:]
    wba, wbb = wih_b[:H], wih_b[H:]
    rc = _pick_chunk(n, 512, multiple_of=8)
    row_in = pl.BlockSpec((rc, H), lambda i: (i, 0))
    row_out = pl.BlockSpec((rc, gh), lambda i: (i, 0))
    return pl.pallas_call(
        _proj_deep_kernel,
        grid=(n // rc,),
        in_specs=[row_in, row_in,
                  _full2d_spec(wfa.shape), _full2d_spec(wfb.shape),
                  _full2d_spec(wba.shape), _full2d_spec(wbb.shape),
                  _full2d_spec(b_f.shape), _full2d_spec(b_b.shape)],
        out_specs=(row_out, row_out),
        out_shape=(jax.ShapeDtypeStruct((n, gh), jnp.float32),
                   jax.ShapeDtypeStruct((n, gh), jnp.float32)),
        compiler_params=pltpu.CompilerParams(dimension_semantics=("parallel",)),
    )(xa2d, xb2d, wfa, wfb, wba, wbb, b_f, b_b)


# -----------------------------------------------------------------------------
# Fused bidirectional recurrence kernels (the only serial part).
# -----------------------------------------------------------------------------

def _bilstm_seq_kernel(gxf_ref, gxb_ref, whhf_ref, whhb_ref,
                       outf_ref, outb_ref,
                       hf_scr, cf_scr, hb_scr, cb_scr,
                       *, hidden_dim, unroll):
    H = hidden_dim
    C = gxf_ref.shape[0]          # time-chunk length of this grid step

    @pl.when(pl.program_id(0) == 0)
    def _init():
        hf_scr[...] = jnp.zeros_like(hf_scr)
        cf_scr[...] = jnp.zeros_like(cf_scr)
        hb_scr[...] = jnp.zeros_like(hb_scr)
        cb_scr[...] = jnp.zeros_like(cb_scr)

    whh_f = whhf_ref[...]
    whh_b = whhb_ref[...]

    def step(j, carry):
        hf, cf, hb, cb = carry
        jr = C - 1 - j            # backward direction walks its chunk in reverse
        gf = gxf_ref[j] + jnp.dot(hf.astype(whh_f.dtype), whh_f,
                                  preferred_element_type=jnp.float32)
        gb = gxb_ref[jr] + jnp.dot(hb.astype(whh_b.dtype), whh_b,
                                   preferred_element_type=jnp.float32)
        hf_new, cf_new = _lstm_cell(gf, cf, H)
        hb_new, cb_new = _lstm_cell(gb, cb, H)
        outf_ref[j] = hf_new.astype(outf_ref.dtype)
        outb_ref[jr] = hb_new.astype(outb_ref.dtype)
        return hf_new, cf_new, hb_new, cb_new

    hf, cf, hb, cb = lax.fori_loop(
        0, C, step,
        (hf_scr[...], cf_scr[...], hb_scr[...], cb_scr[...]),
        unroll=unroll)
    hf_scr[...] = hf
    cf_scr[...] = cf
    hb_scr[...] = hb
    cb_scr[...] = cb


def _bilstm_last_kernel(gxf_ref, gxb_last_ref, whhf_ref, out_ref,
                        hf_scr, cf_scr, hb_scr, *, hidden_dim, unroll):
    H = hidden_dim
    C = gxf_ref.shape[0]
    i = pl.program_id(0)

    @pl.when(i == 0)
    def _init():
        hf_scr[...] = jnp.zeros_like(hf_scr)
        cf_scr[...] = jnp.zeros_like(cf_scr)
        # Backward direction: only its first step (original t = T-1) is consumed by
        # `out[:, -1, :]`; with h0 = c0 = 0 the recurrent W_hh term vanishes.
        g = gxb_last_ref[...]
        i_g = jax.nn.sigmoid(g[:, 0:H])
        g_g = jnp.tanh(g[:, 2 * H:3 * H])
        o_g = jax.nn.sigmoid(g[:, 3 * H:4 * H])
        hb_scr[...] = o_g * jnp.tanh(i_g * g_g)

    whh_f = whhf_ref[...]

    def step(j, carry):
        hf, cf = carry
        gf = gxf_ref[j] + jnp.dot(hf.astype(whh_f.dtype), whh_f,
                                  preferred_element_type=jnp.float32)
        return _lstm_cell(gf, cf, H)

    hf, cf = lax.fori_loop(0, C, step, (hf_scr[...], cf_scr[...]), unroll=unroll)
    hf_scr[...] = hf
    cf_scr[...] = cf

    @pl.when(i == pl.num_programs(0) - 1)
    def _finalize():
        out_ref[...] = ((hf + hb_scr[...]) * 0.5).astype(out_ref.dtype)


def _recurrence_seq(gx_f, gx_b, whh_f, whh_b, hidden_dim, out_dtype):
    T, B, GH = gx_f.shape
    H = hidden_dim
    C = _pick_chunk(T, 64)
    nc = T // C
    unroll = True if C <= 16 else 8
    kernel = functools.partial(_bilstm_seq_kernel, hidden_dim=H, unroll=unroll)
    g_fwd = pl.BlockSpec((C, B, GH), lambda i: (i, 0, 0))
    g_bwd = pl.BlockSpec((C, B, GH), lambda i: (nc - 1 - i, 0, 0))
    w_spec = pl.BlockSpec((H, GH), lambda i: (0, 0))
    o_fwd = pl.BlockSpec((C, B, H), lambda i: (i, 0, 0))
    o_bwd = pl.BlockSpec((C, B, H), lambda i: (nc - 1 - i, 0, 0))
    return pl.pallas_call(
        kernel,
        grid=(nc,),
        in_specs=[g_fwd, g_bwd, w_spec, w_spec],
        out_specs=(o_fwd, o_bwd),
        out_shape=(jax.ShapeDtypeStruct((T, B, H), out_dtype),
                   jax.ShapeDtypeStruct((T, B, H), out_dtype)),
        scratch_shapes=[pltpu.VMEM((B, H), jnp.float32)] * 4,
        compiler_params=pltpu.CompilerParams(dimension_semantics=("arbitrary",)),
    )(gx_f, gx_b, whh_f, whh_b)


def _recurrence_last(gx_f, gx_b_last, whh_f, hidden_dim, out_dtype=jnp.float32):
    T, B, GH = gx_f.shape
    H = hidden_dim
    C = _pick_chunk(T, 64)
    nc = T // C
    unroll = True if C <= 16 else 8
    kernel = functools.partial(_bilstm_last_kernel, hidden_dim=H, unroll=unroll)
    g_fwd = pl.BlockSpec((C, B, GH), lambda i: (i, 0, 0))
    g_last = pl.BlockSpec((B, GH), lambda i: (0, 0))
    w_spec = pl.BlockSpec((H, GH), lambda i: (0, 0))
    o_spec = pl.BlockSpec((B, H), lambda i: (0, 0))
    return pl.pallas_call(
        kernel,
        grid=(nc,),
        in_specs=[g_fwd, g_last, w_spec],
        out_specs=o_spec,
        out_shape=jax.ShapeDtypeStruct((B, H), out_dtype),
        scratch_shapes=[pltpu.VMEM((B, H), jnp.float32)] * 3,
        compiler_params=pltpu.CompilerParams(dimension_semantics=("arbitrary",)),
    )(gx_f, gx_b_last, whh_f)


# -----------------------------------------------------------------------------
# Parameters & forward pass (thin JAX glue).
# -----------------------------------------------------------------------------

def init_bilstm_params(key, input_dim, hidden_dim, num_layers,
                       matmul_dtype=jnp.bfloat16):
    """Mirrors nn.LSTM init: U(-1/sqrt(H), 1/sqrt(H)) for every parameter.

    Weights are stored transposed ((in_dim, 4H) / (H, 4H)) in `matmul_dtype` for
    the MXU; the combined bias (b_ih + b_hh) stays f32 and is folded into the
    precomputed input projection.
    """
    bound = float(hidden_dim) ** -0.5
    params = []
    for layer in range(num_layers):
        in_dim = input_dim if layer == 0 else 2 * hidden_dim
        lp = {}
        for tag in ("f", "b"):
            key, k1, k2, k3, k4 = jax.random.split(key, 5)
            w_ih = jax.random.uniform(k1, (4 * hidden_dim, in_dim), jnp.float32,
                                      -bound, bound)
            w_hh = jax.random.uniform(k2, (4 * hidden_dim, hidden_dim), jnp.float32,
                                      -bound, bound)
            b_ih = jax.random.uniform(k3, (4 * hidden_dim,), jnp.float32, -bound, bound)
            b_hh = jax.random.uniform(k4, (4 * hidden_dim,), jnp.float32, -bound, bound)
            lp["wih_" + tag] = w_ih.T.astype(matmul_dtype)   # (in_dim, 4H)
            lp["whh_" + tag] = w_hh.T.astype(matmul_dtype)   # (H, 4H)
            lp["b_" + tag] = (b_ih + b_hh).reshape(1, -1)    # (1, 4H) f32
        params.append(lp)
    return params


def bilstm_forward(x, params, hidden_dim, num_layers):
    """x: (batch, seq, input_dim) -> (batch, hidden_dim), matching the PyTorch module."""
    B, T, D0 = x.shape
    H = hidden_dim
    mm_dtype = params[0]["wih_f"].dtype
    x_t = jnp.transpose(x, (1, 0, 2)).astype(mm_dtype)      # time-major (T, B, D0)

    cur_f = cur_b = None
    out = None
    for layer in range(num_layers):
        p = params[layer]
        if layer == 0:
            gf2d, gb2d = _project_first(x_t.reshape(T * B, D0),
                                        p["wih_f"], p["wih_b"], p["b_f"], p["b_b"])
        else:
            gf2d, gb2d = _project_deep(cur_f.reshape(T * B, H),
                                       cur_b.reshape(T * B, H),
                                       p["wih_f"], p["wih_b"], p["b_f"], p["b_b"], H)
        gf = gf2d.reshape(T, B, 4 * H)
        if layer == num_layers - 1:
            # Only out[:, -1, :] is returned: forward needs the full recurrence,
            # backward needs just its first step (original t = T-1).
            gb_last = gb2d[(T - 1) * B:, :]                  # (B, 4H)
            out = _recurrence_last(gf, gb_last, p["whh_f"], H)
        else:
            gb = gb2d.reshape(T, B, 4 * H)
            cur_f, cur_b = _recurrence_seq(gf, gb, p["whh_f"], p["whh_b"], H,
                                           out_dtype=mm_dtype)
    return out


if __name__ == "__main__":
    batch, seq, input_dim = 2, 8, 16
    hidden_dim, num_layers = 32, 2

    key = jax.random.PRNGKey(0)
    key_x, key_p = jax.random.split(key)
    x = jax.random.normal(key_x, (batch, seq, input_dim), jnp.float32)
    params = init_bilstm_params(key_p, input_dim, hidden_dim, num_layers)

    fwd = jax.jit(functools.partial(bilstm_forward,
                                    hidden_dim=hidden_dim, num_layers=num_layers))
    out = jax.block_until_ready(fwd(x, params))
    assert out.shape == (batch, hidden_dim), out.shape
    print("KERNEL_OK")
</pallas_src>

<mosaic_0001>
module attributes {stable_mosaic.version = 11 : i64} {
  func.func @_proj_first_kernel(%arg0: i32, %arg1: memref<16x16xbf16, #tpu.memory_space<vmem>>, %arg2: memref<16x128xbf16, #tpu.memory_space<vmem>>, %arg3: memref<16x128xbf16, #tpu.memory_space<vmem>>, %arg4: memref<1x128xf32, #tpu.memory_space<vmem>>, %arg5: memref<1x128xf32, #tpu.memory_space<vmem>>, %arg6: memref<16x128xf32, #tpu.memory_space<vmem>>, %arg7: memref<16x128xf32, #tpu.memory_space<vmem>>) attributes {dimension_semantics = [#tpu.dimension_semantics<parallel>], iteration_bounds = array<i64: 1>, scalar_prefetch = 0 : i64, scratch_operands = 0 : i64, tpu.core_type = #tpu.core_type<tc>, window_params = [{transform_indices = @transform_0, window_bounds = array<i64: 16, 16>}, {pipeline_mode = #tpu.pipeline_mode<synchronous>, transform_indices = @transform_1, window_bounds = array<i64: 16, 128>}, {pipeline_mode = #tpu.pipeline_mode<synchronous>, transform_indices = @transform_2, window_bounds = array<i64: 16, 128>}, {pipeline_mode = #tpu.pipeline_mode<synchronous>, transform_indices = @transform_3, window_bounds = array<i64: 1, 128>}, {pipeline_mode = #tpu.pipeline_mode<synchronous>, transform_indices = @transform_4, window_bounds = array<i64: 1, 128>}, {transform_indices = @transform_5, window_bounds = array<i64: 16, 128>}, {transform_indices = @transform_6, window_bounds = array<i64: 16, 128>}]} {
    %c0 = arith.constant 0 : index
    %c0_0 = arith.constant 0 : index
    %0 = vector.load %arg1[%c0, %c0_0] : memref<16x16xbf16, #tpu.memory_space<vmem>>, vector<16x16xbf16>
    %c0_1 = arith.constant 0 : index
    %c0_2 = arith.constant 0 : index
    %1 = vector.load %arg2[%c0_1, %c0_2] : memref<16x128xbf16, #tpu.memory_space<vmem>>, vector<16x128xbf16>
    %cst = arith.constant dense<0.000000e+00> : vector<16x128xf32>
    %2 = tpu.matmul %0, %1, %cst {dimension_numbers = #tpu.dot_dimension_numbers<[1], [0], [0], [1], [0, 0, 1, 1], [], []>} : vector<16x16xbf16>, vector<16x128xbf16>, vector<16x128xf32> -> vector<16x128xf32>
    %c0_3 = arith.constant 0 : index
    %c0_4 = arith.constant 0 : index
    %3 = vector.load %arg4[%c0_3, %c0_4] : memref<1x128xf32, #tpu.memory_space<vmem>>, vector<1x128xf32>
    %4 = vector.broadcast %3 : vector<1x128xf32> to vector<16x128xf32>
    %5 = arith.addf %2, %4 : vector<16x128xf32>
    %c0_5 = arith.constant 0 : index
    %c0_6 = arith.constant 0 : index
    %6 = vector.load %arg6[%c0_5, %c0_6] : memref<16x128xf32, #tpu.memory_space<vmem>>, vector<16x128xf32>
    tpu.vector_store %arg6[%c0_5, %c0_6], %5 {strides = array<i32>} : memref<16x128xf32, #tpu.memory_space<vmem>>, vector<16x128xf32>,
    %c0_7 = arith.constant 0 : index
    %c0_8 = arith.constant 0 : index
    %7 = vector.load %arg3[%c0_7, %c0_8] : memref<16x128xbf16, #tpu.memory_space<vmem>>, vector<16x128xbf16>
    %cst_9 = arith.constant dense<0.000000e+00> : vector<16x128xf32>
    %8 = tpu.matmul %0, %7, %cst_9 {dimension_numbers = #tpu.dot_dimension_numbers<[1], [0], [0], [1], [0, 0, 1, 1], [], []>} : vector<16x16xbf16>, vector<16x128xbf16>, vector<16x128xf32> -> vector<16x128xf32>
    %c0_10 = arith.constant 0 : index
    %c0_11 = arith.constant 0 : index
    %9 = vector.load %arg5[%c0_10, %c0_11] : memref<1x128xf32, #tpu.memory_space<vmem>>, vector<1x128xf32>
    %10 = vector.broadcast %9 : vector<1x128xf32> to vector<16x128xf32>
    %11 = arith.addf %8, %10 : vector<16x128xf32>
    %c0_12 = arith.constant 0 : index
    %c0_13 = arith.constant 0 : index
    %12 = vector.load %arg7[%c0_12, %c0_13] : memref<16x128xf32, #tpu.memory_space<vmem>>, vector<16x128xf32>
    tpu.vector_store %arg7[%c0_12, %c0_13], %11 {strides = array<i32>} : memref<16x128xf32, #tpu.memory_space<vmem>>, vector<16x128xf32>,
    return
  }
  func.func @transform_0(%arg0: i32) -> (i32, i32) {
    %c0_i32 = arith.constant 0 : i32
    %c0_i32_0 = arith.constant 0 : i32
    return %arg0, %c0_i32 : i32, i32
  }
  func.func @transform_1(%arg0: i32) -> (i32, i32) {
    %c0_i32 = arith.constant 0 : i32
    %c0_i32_0 = arith.constant 0 : i32
    %c0_i32_1 = arith.constant 0 : i32
    return %c0_i32, %c0_i32_0 : i32, i32
  }
  func.func @transform_2(%arg0: i32) -> (i32, i32) {
    %c0_i32 = arith.constant 0 : i32
    %c0_i32_0 = arith.constant 0 : i32
    %c0_i32_1 = arith.constant 0 : i32
    return %c0_i32, %c0_i32_0 : i32, i32
  }
  func.func @transform_3(%arg0: i32) -> (i32, i32) {
    %c0_i32 = arith.constant 0 : i32
    %c0_i32_0 = arith.constant 0 : i32
    %c0_i32_1 = arith.constant 0 : i32
    return %c0_i32, %c0_i32_0 : i32, i32
  }
  func.func @transform_4(%arg0: i32) -> (i32, i32) {
    %c0_i32 = arith.constant 0 : i32
    %c0_i32_0 = arith.constant 0 : i32
    %c0_i32_1 = arith.constant 0 : i32
    return %c0_i32, %c0_i32_0 : i32, i32
  }
  func.func @transform_5(%arg0: i32) -> (i32, i32) {
    %c0_i32 = arith.constant 0 : i32
    %c0_i32_0 = arith.constant 0 : i32
    return %arg0, %c0_i32 : i32, i32
  }
  func.func @transform_6(%arg0: i32) -> (i32, i32) {
    %c0_i32 = arith.constant 0 : i32
    %c0_i32_0 = arith.constant 0 : i32
    return %arg0, %c0_i32 : i32, i32
  }
}

module attributes {stable_mosaic.version = 11 : i64} {
  func.func @_bilstm_seq_kernel(%arg0: i32, %arg1: memref<8x2x128xf32, #tpu.memory_space<vmem>>, %arg2: memref<8x2x128xf32, #tpu.memory_space<vmem>>, %arg3: memref<32x128xbf16, #tpu.memory_space<vmem>>, %arg4: memref<32x128xbf16, #tpu.memory_space<vmem>>, %arg5: memref<8x2x32xbf16, #tpu.memory_space<vmem>>, %arg6: memref<8x2x32xbf16, #tpu.memory_space<vmem>>, %arg7: memref<2x32xf32, #tpu.memory_space<vmem>>, %arg8: memref<2x32xf32, #tpu.memory_space<vmem>>, %arg9: memref<2x32xf32, #tpu.memory_space<vmem>>, %arg10: memref<2x32xf32, #tpu.memory_space<vmem>>) attributes {dimension_semantics = [#tpu.dimension_semantics<arbitrary>], iteration_bounds = array<i64: 1>, scalar_prefetch = 0 : i64, scratch_operands = 4 : i64, tpu.core_type = #tpu.core_type<tc>, window_params = [{transform_indices = @transform_0, window_bounds = array<i64: 8, 2, 128>}, {transform_indices = @transform_1, window_bounds = array<i64: 8, 2, 128>}, {pipeline_mode = #tpu.pipeline_mode<synchronous>, transform_indices = @transform_2, window_bounds = array<i64: 32, 128>}, {pipeline_mode = #tpu.pipeline_mode<synchronous>, transform_indices = @transform_3, window_bounds = array<i64: 32, 128>}, {transform_indices = @transform_4, window_bounds = array<i64: 8, 2, 32>}, {transform_indices = @transform_5, window_bounds = array<i64: 8, 2, 32>}]} {
    %c0_i32 = arith.constant 0 : i32
    %0 = arith.cmpi eq, %arg0, %c0_i32 : i32
    %1 = arith.extui %0 : i1 to i32
    %c0_i32_0 = arith.constant 0 : i32
    %2 = arith.cmpi ne, %1, %c0_i32_0 : i32
    scf.if %2 {
      %cst_156 = arith.constant 0.000000e+00 : f32
      %597 = vector.broadcast %cst_156 : f32 to vector<2x32xf32>
      %c0_157 = arith.constant 0 : index
      %c0_158 = arith.constant 0 : index
      %598 = vector.load %arg7[%c0_157, %c0_158] : memref<2x32xf32, #tpu.memory_space<vmem>>, vector<2x32xf32>
      tpu.vector_store %arg7[%c0_157, %c0_158], %597 {strides = array<i32>} : memref<2x32xf32, #tpu.memory_space<vmem>>, vector<2x32xf32>,
      %cst_159 = arith.constant 0.000000e+00 : f32
      %599 = vector.broadcast %cst_159 : f32 to vector<2x32xf32>
      %c0_160 = arith.constant 0 : index
      %c0_161 = arith.constant 0 : index
      %600 = vector.load %arg8[%c0_160, %c0_161] : memref<2x32xf32, #tpu.memory_space<vmem>>, vector<2x32xf32>
      tpu.vector_store %arg8[%c0_160, %c0_161], %599 {strides = array<i32>} : memref<2x32xf32, #tpu.memory_space<vmem>>, vector<2x32xf32>,
      %cst_162 = arith.constant 0.000000e+00 : f32
      %601 = vector.broadcast %cst_162 : f32 to vector<2x32xf32>
      %c0_163 = arith.constant 0 : index
      %c0_164 = arith.constant 0 : index
      %602 = vector.load %arg9[%c0_163, %c0_164] : memref<2x32xf32, #tpu.memory_space<vmem>>, vector<2x32xf32>
      tpu.vector_store %arg9[%c0_163, %c0_164], %601 {strides = array<i32>} : memref<2x32xf32, #tpu.memory_space<vmem>>, vector<2x32xf32>,
      %cst_165 = arith.constant 0.000000e+00 : f32
      %603 = vector.broadcast %cst_165 : f32 to vector<2x32xf32>
      %c0_166 = arith.constant 0 : index
      %c0_167 = arith.constant 0 : index
      %604 = vector.load %arg10[%c0_166, %c0_167] : memref<2x32xf32, #tpu.memory_space<vmem>>, vector<2x32xf32>
      tpu.vector_store %arg10[%c0_166, %c0_167], %603 {strides = array<i32>} : memref<2x32xf32, #tpu.memory_space<vmem>>, vector<2x32xf32>,
    } else {
    }
    %c0 = arith.constant 0 : index
    %c0_1 = arith.constant 0 : index
    %3 = vector.load %arg3[%c0, %c0_1] : memref<32x128xbf16, #tpu.memory_space<vmem>>, vector<32x128xbf16>
    %c0_2 = arith.constant 0 : index
    %c0_3 = arith.constant 0 : index
    %4 = vector.load %arg4[%c0_2, %c0_3] : memref<32x128xbf16, #tpu.memory_space<vmem>>, vector<32x128xbf16>
    %c0_4 = arith.constant 0 : index
    %c0_5 = arith.constant 0 : index
    %5 = vector.load %arg7[%c0_4, %c0_5] : memref<2x32xf32, #tpu.memory_space<vmem>>, vector<2x32xf32>
    %c0_6 = arith.constant 0 : index
    %c0_7 = arith.constant 0 : index
    %6 = vector.load %arg8[%c0_6, %c0_7] : memref<2x32xf32, #tpu.memory_space<vmem>>, vector<2x32xf32>
    %c0_8 = arith.constant 0 : index
    %c0_9 = arith.constant 0 : index
    %7 = vector.load %arg9[%c0_8, %c0_9] : memref<2x32xf32, #tpu.memory_space<vmem>>, vector<2x32xf32>
    %c0_10 = arith.constant 0 : index
    %c0_11 = arith.constant 0 : index
    %8 = vector.load %arg10[%c0_10, %c0_11] : memref<2x32xf32, #tpu.memory_space<vmem>>, vector<2x32xf32>
    %c0_i32_12 = arith.constant 0 : i32
    %c7_i32 = arith.constant 7 : i32
    %9 = arith.subi %c7_i32, %c0_i32_12 : i32
    %10 = arith.index_cast %c0_i32_12 : i32 to index
    %c0_13 = arith.constant 0 : index
    %c0_14 = arith.constant 0 : index
    %11 = vector.load %arg1[%10, %c0_13, %c0_14] : memref<8x2x128xf32, #tpu.memory_space<vmem>>, vector<1x2x128xf32>
    %12 = vector.shape_cast %11 : vector<1x2x128xf32> to vector<2x128xf32>
    %13 = arith.truncf %5 : vector<2x32xf32> to vector<2x32xbf16>
    %cst = arith.constant dense<0.000000e+00> : vector<2x128xf32>
    %14 = tpu.matmul %13, %3, %cst {dimension_numbers = #tpu.dot_dimension_numbers<[1], [0], [0], [1], [0, 0, 1, 1], [], []>} : vector<2x32xbf16>, vector<32x128xbf16>, vector<2x128xf32> -> vector<2x128xf32>
    %15 = arith.addf %12, %14 : vector<2x128xf32>
    %16 = arith.index_cast %9 : i32 to index
    %c0_15 = arith.constant 0 : index
    %c0_16 = arith.constant 0 : index
    %17 = vector.load %arg2[%16, %c0_15, %c0_16] : memref<8x2x128xf32, #tpu.memory_space<vmem>>, vector<1x2x128xf32>
    %18 = vector.shape_cast %17 : vector<1x2x128xf32> to vector<2x128xf32>
    %19 = arith.truncf %7 : vector<2x32xf32> to vector<2x32xbf16>
    %cst_17 = arith.constant dense<0.000000e+00> : vector<2x128xf32>
    %20 = tpu.matmul %19, %4, %cst_17 {dimension_numbers = #tpu.dot_dimension_numbers<[1], [0], [0], [1], [0, 0, 1, 1], [], []>} : vector<2x32xbf16>, vector<32x128xbf16>, vector<2x128xf32> -> vector<2x128xf32>
    %21 = arith.addf %18, %20 : vector<2x128xf32>
    %22 = vector.extract_strided_slice %15 {offsets = [0, 0], sizes = [2, 32], strides = [1, 1]} : vector<2x128xf32> to vector<2x32xf32>
    %23 = arith.negf %22 : vector<2x32xf32>
    %24 = math.exp %23 : vector<2x32xf32>
    %cst_18 = arith.constant 1.000000e+00 : f32
    %25 = vector.broadcast %cst_18 : f32 to vector<2x32xf32>
    %26 = arith.addf %25, %24 : vector<2x32xf32>
    %27 = arith.divf %25, %26 : vector<2x32xf32>
    %28 = vector.extract_strided_slice %15 {offsets = [0, 32], sizes = [2, 32], strides = [1, 1]} : vector<2x128xf32> to vector<2x32xf32>
    %29 = arith.negf %28 : vector<2x32xf32>
    %30 = math.exp %29 : vector<2x32xf32>
    %cst_19 = arith.constant 1.000000e+00 : f32
    %31 = vector.broadcast %cst_19 : f32 to vector<2x32xf32>
    %32 = arith.addf %31, %30 : vector<2x32xf32>
    %33 = arith.divf %31, %32 : vector<2x32xf32>
    %34 = vector.extract_strided_slice %15 {offsets = [0, 64], sizes = [2, 32], strides = [1, 1]} : vector<2x128xf32> to vector<2x32xf32>
    %35 = math.tanh %34 : vector<2x32xf32>
    %36 = vector.extract_strided_slice %15 {offsets = [0, 96], sizes = [2, 32], strides = [1, 1]} : vector<2x128xf32> to vector<2x32xf32>
    %37 = arith.negf %36 : vector<2x32xf32>
    %38 = math.exp %37 : vector<2x32xf32>
    %cst_20 = arith.constant 1.000000e+00 : f32
    %39 = vector.broadcast %cst_20 : f32 to vector<2x32xf32>
    %40 = arith.addf %39, %38 : vector<2x32xf32>
    %41 = arith.divf %39, %40 : vector<2x32xf32>
    %42 = arith.mulf %33, %6 : vector<2x32xf32>
    %43 = arith.mulf %27, %35 : vector<2x32xf32>
    %44 = arith.addf %42, %43 : vector<2x32xf32>
    %45 = math.tanh %44 : vector<2x32xf32>
    %46 = arith.mulf %41, %45 : vector<2x32xf32>
    %47 = vector.extract_strided_slice %21 {offsets = [0, 0], sizes = [2, 32], strides = [1, 1]} : vector<2x128xf32> to vector<2x32xf32>
    %48 = arith.negf %47 : vector<2x32xf32>
    %49 = math.exp %48 : vector<2x32xf32>
    %cst_21 = arith.constant 1.000000e+00 : f32
    %50 = vector.broadcast %cst_21 : f32 to vector<2x32xf32>
    %51 = arith.addf %50, %49 : vector<2x32xf32>
    %52 = arith.divf %50, %51 : vector<2x32xf32>
    %53 = vector.extract_strided_slice %21 {offsets = [0, 32], sizes = [2, 32], strides = [1, 1]} : vector<2x128xf32> to vector<2x32xf32>
    %54 = arith.negf %53 : vector<2x32xf32>
    %55 = math.exp %54 : vector<2x32xf32>
    %cst_22 = arith.constant 1.000000e+00 : f32
    %56 = vector.broadcast %cst_22 : f32 to vector<2x32xf32>
    %57 = arith.addf %56, %55 : vector<2x32xf32>
    %58 = arith.divf %56, %57 : vector<2x32xf32>
    %59 = vector.extract_strided_slice %21 {offsets = [0, 64], sizes = [2, 32], strides = [1, 1]} : vector<2x128xf32> to vector<2x32xf32>
    %60 = math.tanh %59 : vector<2x32xf32>
    %61 = vector.extract_strided_slice %21 {offsets = [0, 96], sizes = [2, 32], strides = [1, 1]} : vector<2x128xf32> to vector<2x32xf32>
    %62 = arith.negf %61 : vector<2x32xf32>
    %63 = math.exp %62 : vector<2x32xf32>
    %cst_23 = arith.constant 1.000000e+00 : f32
    %64 = vector.broadcast %cst_23 : f32 to vector<2x32xf32>
    %65 = arith.addf %64, %63 : vector<2x32xf32>
    %66 = arith.divf %64, %65 : vector<2x32xf32>
    %67 = arith.mulf %58, %8 : vector<2x32xf32>
    %68 = arith.mulf %52, %60 : vector<2x32xf32>
    %69 = arith.addf %67, %68 : vector<2x32xf32>
    %70 = math.tanh %69 : vector<2x32xf32>
    %71 = arith.mulf %66, %70 : vector<2x32xf32>
    %72 = arith.truncf %46 : vector<2x32xf32> to vector<2x32xbf16>
    %73 = arith.index_cast %c0_i32_12 : i32 to index
    %c0_24 = arith.constant 0 : index
    %c0_25 = arith.constant 0 : index
    %74 = vector.load %arg5[%73, %c0_24, %c0_25] : memref<8x2x32xbf16, #tpu.memory_space<vmem>>, vector<1x2x32xbf16>
    %75 = vector.shape_cast %74 : vector<1x2x32xbf16> to vector<2x32xbf16>
    %76 = vector.shape_cast %72 : vector<2x32xbf16> to vector<1x2x32xbf16>
    tpu.vector_store %arg5[%73, %c0_24, %c0_25], %76 {strides = array<i32>} : memref<8x2x32xbf16, #tpu.memory_space<vmem>>, vector<1x2x32xbf16>,
    %77 = arith.truncf %71 : vector<2x32xf32> to vector<2x32xbf16>
    %78 = arith.index_cast %9 : i32 to index
    %c0_26 = arith.constant 0 : index
    %c0_27 = arith.constant 0 : index
    %79 = vector.load %arg6[%78, %c0_26, %c0_27] : memref<8x2x32xbf16, #tpu.memory_space<vmem>>, vector<1x2x32xbf16>
    %80 = vector.shape_cast %79 : vector<1x2x32xbf16> to vector<2x32xbf16>
    %81 = vector.shape_cast %77 : vector<2x32xbf16> to vector<1x2x32xbf16>
    tpu.vector_store %arg6[%78, %c0_26, %c0_27], %81 {strides = array<i32>} : memref<8x2x32xbf16, #tpu.memory_space<vmem>>, vector<1x2x32xbf16>,
    %c1_i32 = arith.constant 1 : i32
    %c7_i32_28 = arith.constant 7 : i32
    %82 = arith.subi %c7_i32_28, %c1_i32 : i32
    %83 = arith.index_cast %c1_i32 : i32 to index
    %c0_29 = arith.constant 0 : index
    %c0_30 = arith.constant 0 : index
    %84 = vector.load %arg1[%83, %c0_29, %c0_30] : memref<8x2x128xf32, #tpu.memory_space<vmem>>, vector<1x2x128xf32>
    %85 = vector.shape_cast %84 : vector<1x2x128xf32> to vector<2x128xf32>
    %86 = arith.truncf %46 : vector<2x32xf32> to vector<2x32xbf16>
    %cst_31 = arith.constant dense<0.000000e+00> : vector<2x128xf32>
    %87 = tpu.matmul %86, %3, %cst_31 {dimension_numbers = #tpu.dot_dimension_numbers<[1], [0], [0], [1], [0, 0, 1, 1], [], []>} : vector<2x32xbf16>, vector<32x128xbf16>, vector<2x128xf32> -> vector<2x128xf32>
    %88 = arith.addf %85, %87 : vector<2x128xf32>
    %89 = arith.index_cast %82 : i32 to index
    %c0_32 = arith.constant 0 : index
    %c0_33 = arith.constant 0 : index
    %90 = vector.load %arg2[%89, %c0_32, %c0_33] : memref<8x2x128xf32, #tpu.memory_space<vmem>>, vector<1x2x128xf32>
    %91 = vector.shape_cast %90 : vector<1x2x128xf32> to vector<2x128xf32>
    %92 = arith.truncf %71 : vector<2x32xf32> to vector<2x32xbf16>
    %cst_34 = arith.constant dense<0.000000e+00> : vector<2x128xf32>
    %93 = tpu.matmul %92, %4, %cst_34 {dimension_numbers = #tpu.dot_dimension_numbers<[1], [0], [0], [1], [0, 0, 1, 1], [], []>} : vector<2x32xbf16>, vector<32x128xbf16>, vector<2x128xf32> -> vector<2x128xf32>
    %94 = arith.addf %91, %93 : vector<2x128xf32>
    %95 = vector.extract_strided_slice %88 {offsets = [0, 0], sizes = [2, 32], strides = [1, 1]} : vector<2x128xf32> to vector<2x32xf32>
    %96 = arith.negf %95 : vector<2x32xf32>
    %97 = math.exp %96 : vector<2x32xf32>
    %cst_35 = arith.constant 1.000000e+00 : f32
    %98 = vector.broadcast %cst_35 : f32 to vector<2x32xf32>
    %99 = arith.addf %98, %97 : vector<2x32xf32>
    %100 = arith.divf %98, %99 : vector<2x32xf32>
    %101 = vector.extract_strided_slice %88 {offsets = [0, 32], sizes = [2, 32], strides = [1, 1]} : vector<2x128xf32> to vector<2x32xf32>
    %102 = arith.negf %101 : vector<2x32xf32>
    %103 = math.exp %102 : vector<2x32xf32>
    %cst_36 = arith.constant 1.000000e+00 : f32
    %104 = vector.broadcast %cst_36 : f32 to vector<2x32xf32>
    %105 = arith.addf %104, %103 : vector<2x32xf32>
    %106 = arith.divf %104, %105 : vector<2x32xf32>
    %107 = vector.extract_strided_slice %88 {offsets = [0, 64], sizes = [2, 32], strides = [1, 1]} : vector<2x128xf32> to vector<2x32xf32>
    %108 = math.tanh %107 : vector<2x32xf32>
    %109 = vector.extract_strided_slice %88 {offsets = [0, 96], sizes = [2, 32], strides = [1, 1]} : vector<2x128xf32> to vector<2x32xf32>
    %110 = arith.negf %109 : vector<2x32xf32>
    %111 = math.exp %110 : vector<2x32xf32>
    %cst_37 = arith.constant 1.000000e+00 : f32
    %112 = vector.broadcast %cst_37 : f32 to vector<2x32xf32>
    %113 = arith.addf %112, %111 : vector<2x32xf32>
    %114 = arith.divf %112, %113 : vector<2x32xf32>
    %115 = arith.mulf %106, %44 : vector<2x32xf32>
    %116 = arith.mulf %100, %108 : vector<2x32xf32>
    %117 = arith.addf %115, %116 : vector<2x32xf32>
    %118 = math.tanh %117 : vector<2x32xf32>
    %119 = arith.mulf %114, %118 : vector<2x32xf32>
    %120 = vector.extract_strided_slice %94 {offsets = [0, 0], sizes = [2, 32], strides = [1, 1]} : vector<2x128xf32> to vector<2x32xf32>
    %121 = arith.negf %120 : vector<2x32xf32>
    %122 = math.exp %121 : vector<2x32xf32>
    %cst_38 = arith.constant 1.000000e+00 : f32
    %123 = vector.broadcast %cst_38 : f32 to vector<2x32xf32>
    %124 = arith.addf %123, %122 : vector<2x32xf32>
    %125 = arith.divf %123, %124 : vector<2x32xf32>
    %126 = vector.extract_strided_slice %94 {offsets = [0, 32], sizes = [2, 32], strides = [1, 1]} : vector<2x128xf32> to vector<2x32xf32>
    %127 = arith.negf %126 : vector<2x32xf32>
    %128 = math.exp %127 : vector<2x32xf32>
    %cst_39 = arith.constant 1.000000e+00 : f32
    %129 = vector.broadcast %cst_39 : f32 to vector<2x32xf32>
    %130 = arith.addf %129, %128 : vector<2x32xf32>
    %131 = arith.divf %129, %130 : vector<2x32xf32>
    %132 = vector.extract_strided_slice %94 {offsets = [0, 64], sizes = [2, 32], strides = [1, 1]} : vector<2x128xf32> to vector<2x32xf32>
    %133 = math.tanh %132 : vector<2x32xf32>
    %134 = vector.extract_strided_slice %94 {offsets = [0, 96], sizes = [2, 32], strides = [1, 1]} : vector<2x128xf32> to vector<2x32xf32>
    %135 = arith.negf %134 : vector<2x32xf32>
    %136 = math.exp %135 : vector<2x32xf32>
    %cst_40 = arith.constant 1.000000e+00 : f32
    %137 = vector.broadcast %cst_40 : f32 to vector<2x32xf32>
    %138 = arith.addf %137, %136 : vector<2x32xf32>
    %139 = arith.divf %137, %138 : vector<2x32xf32>
    %140 = arith.mulf %131, %69 : vector<2x32xf32>
    %141 = arith.mulf %125, %133 : vector<2x32xf32>
    %142 = arith.addf %140, %141 : vector<2x32xf32>
    %143 = math.tanh %142 : vector<2x32xf32>
    %144 = arith.mulf %139, %143 : vector<2x32xf32>
    %145 = arith.truncf %119 : vector<2x32xf32> to vector<2x32xbf16>
    %146 = arith.index_cast %c1_i32 : i32 to index
    %c0_41 = arith.constant 0 : index
    %c0_42 = arith.constant 0 : index
    %147 = vector.load %arg5[%146, %c0_41, %c0_42] : memref<8x2x32xbf16, #tpu.memory_space<vmem>>, vector<1x2x32xbf16>
    %148 = vector.shape_cast %147 : vector<1x2x32xbf16> to vector<2x32xbf16>
    %149 = vector.shape_cast %145 : vector<2x32xbf16> to vector<1x2x32xbf16>
    tpu.vector_store %arg5[%146, %c0_41, %c0_42], %149 {strides = array<i32>} : memref<8x2x32xbf16, #tpu.memory_space<vmem>>, vector<1x2x32xbf16>,
    %150 = arith.truncf %144 : vector<2x32xf32> to vector<2x32xbf16>
    %151 = arith.index_cast %82 : i32 to index
    %c0_43 = arith.constant 0 : index
    %c0_44 = arith.constant 0 : index
    %152 = vector.load %arg6[%151, %c0_43, %c0_44] : memref<8x2x32xbf16, #tpu.memory_space<vmem>>, vector<1x2x32xbf16>
    %153 = vector.shape_cast %152 : vector<1x2x32xbf16> to vector<2x32xbf16>
    %154 = vector.shape_cast %150 : vector<2x32xbf16> to vector<1x2x32xbf16>
    tpu.vector_store %arg6[%151, %c0_43, %c0_44], %154 {strides = array<i32>} : memref<8x2x32xbf16, #tpu.memory_space<vmem>>, vector<1x2x32xbf16>,
    %c2_i32 = arith.constant 2 : i32
    %c7_i32_45 = arith.constant 7 : i32
    %155 = arith.subi %c7_i32_45, %c2_i32 : i32
    %156 = arith.index_cast %c2_i32 : i32 to index
    %c0_46 = arith.constant 0 : index
    %c0_47 = arith.constant 0 : index
    %157 = vector.load %arg1[%156, %c0_46, %c0_47] : memref<8x2x128xf32, #tpu.memory_space<vmem>>, vector<1x2x128xf32>
    %158 = vector.shape_cast %157 : vector<1x2x128xf32> to vector<2x128xf32>
    %159 = arith.truncf %119 : vector<2x32xf32> to vector<2x32xbf16>
    %cst_48 = arith.constant dense<0.000000e+00> : vector<2x128xf32>
    %160 = tpu.matmul %159, %3, %cst_48 {dimension_numbers = #tpu.dot_dimension_numbers<[1], [0], [0], [1], [0, 0, 1, 1], [], []>} : vector<2x32xbf16>, vector<32x128xbf16>, vector<2x128xf32> -> vector<2x128xf32>
    %161 = arith.addf %158, %160 : vector<2x128xf32>
    %162 = arith.index_cast %155 : i32 to index
    %c0_49 = arith.constant 0 : index
    %c0_50 = arith.constant 0 : index
    %163 = vector.load %arg2[%162, %c0_49, %c0_50] : memref<8x2x128xf32, #tpu.memory_space<vmem>>, vector<1x2x128xf32>
    %164 = vector.shape_cast %163 : vector<1x2x128xf32> to vector<2x128xf32>
    %165 = arith.truncf %144 : vector<2x32xf32> to vector<2x32xbf16>
    %cst_51 = arith.constant dense<0.000000e+00> : vector<2x128xf32>
    %166 = tpu.matmul %165, %4, %cst_51 {dimension_numbers = #tpu.dot_dimension_numbers<[1], [0], [0], [1], [0, 0, 1, 1], [], []>} : vector<2x32xbf16>, vector<32x128xbf16>, vector<2x128xf32> -> vector<2x128xf32>
    %167 = arith.addf %164, %166 : vector<2x128xf32>
    %168 = vector.extract_strided_slice %161 {offsets = [0, 0], sizes = [2, 32], strides = [1, 1]} : vector<2x128xf32> to vector<2x32xf32>
    %169 = arith.negf %168 : vector<2x32xf32>
    %170 = math.exp %169 : vector<2x32xf32>
    %cst_52 = arith.constant 1.000000e+00 : f32
    %171 = vector.broadcast %cst_52 : f32 to vector<2x32xf32>
    %172 = arith.addf %171, %170 : vector<2x32xf32>
    %173 = arith.divf %171, %172 : vector<2x32xf32>
    %174 = vector.extract_strided_slice %161 {offsets = [0, 32], sizes = [2, 32], strides = [1, 1]} : vector<2x128xf32> to vector<2x32xf32>
    %175 = arith.negf %174 : vector<2x32xf32>
    %176 = math.exp %175 : vector<2x32xf32>
    %cst_53 = arith.constant 1.000000e+00 : f32
    %177 = vector.broadcast %cst_53 : f32 to vector<2x32xf32>
    %178 = arith.addf %177, %176 : vector<2x32xf32>
    %179 = arith.divf %177, %178 : vector<2x32xf32>
    %180 = vector.extract_strided_slice %161 {offsets = [0, 64], sizes = [2, 32], strides = [1, 1]} : vector<2x128xf32> to vector<2x32xf32>
    %181 = math.tanh %180 : vector<2x32xf32>
    %182 = vector.extract_strided_slice %161 {offsets = [0, 96], sizes = [2, 32], strides = [1, 1]} : vector<2x128xf32> to vector<2x32xf32>
    %183 = arith.negf %182 : vector<2x32xf32>
    %184 = math.exp %183 : vector<2x32xf32>
    %cst_54 = arith.constant 1.000000e+00 : f32
    %185 = vector.broadcast %cst_54 : f32 to vector<2x32xf32>
    %186 = arith.addf %185, %184 : vector<2x32xf32>
    %187 = arith.divf %185, %186 : vector<2x32xf32>
    %188 = arith.mulf %179, %117 : vector<2x32xf32>
    %189 = arith.mulf %173, %181 : vector<2x32xf32>
    %190 = arith.addf %188, %189 : vector<2x32xf32>
    %191 = math.tanh %190 : vector<2x32xf32>
    %192 = arith.mulf %187, %191 : vector<2x32xf32>
    %193 = vector.extract_strided_slice %167 {offsets = [0, 0], sizes = [2, 32], strides = [1, 1]} : vector<2x128xf32> to vector<2x32xf32>
    %194 = arith.negf %193 : vector<2x32xf32>
    %195 = math.exp %194 : vector<2x32xf32>
    %cst_55 = arith.constant 1.000000e+00 : f32
    %196 = vector.broadcast %cst_55 : f32 to vector<2x32xf32>
    %197 = arith.addf %196, %195 : vector<2x32xf32>
    %198 = arith.divf %196, %197 : vector<2x32xf32>
    %199 = vector.extract_strided_slice %167 {offsets = [0, 32], sizes = [2, 32], strides = [1, 1]} : vector<2x128xf32> to vector<2x32xf32>
    %200 = arith.negf %199 : vector<2x32xf32>
    %201 = math.exp %200 : vector<2x32xf32>
    %cst_56 = arith.constant 1.000000e+00 : f32
    %202 = vector.broadcast %cst_56 : f32 to vector<2x32xf32>
    %203 = arith.addf %202, %201 : vector<2x32xf32>
    %204 = arith.divf %202, %203 : vector<2x32xf32>
    %205 = vector.extract_strided_slice %167 {offsets = [0, 64], sizes = [2, 32], strides = [1, 1]} : vector<2x128xf32> to vector<2x32xf32>
    %206 = math.tanh %205 : vector<2x32xf32>
    %207 = vector.extract_strided_slice %167 {offsets = [0, 96], sizes = [2, 32], strides = [1, 1]} : vector<2x128xf32> to vector<2x32xf32>
    %208 = arith.negf %207 : vector<2x32xf32>
    %209 = math.exp %208 : vector<2x32xf32>
    %cst_57 = arith.constant 1.000000e+00 : f32
    %210 = vector.broadcast %cst_57 : f32 to vector<2x32xf32>
    %211 = arith.addf %210, %209 : vector<2x32xf32>
    %212 = arith.divf %210, %211 : vector<2x32xf32>
    %213 = arith.mulf %204, %142 : vector<2x32xf32>
    %214 = arith.mulf %198, %206 : vector<2x32xf32>
    %215 = arith.addf %213, %214 : vector<2x32xf32>
    %216 = math.tanh %215 : vector<2x32xf32>
    %217 = arith.mulf %212, %216 : vector<2x32xf32>
    %218 = arith.truncf %192 : vector<2x32xf32> to vector<2x32xbf16>
    %219 = arith.index_cast %c2_i32 : i32 to index
    %c0_58 = arith.constant 0 : index
    %c0_59 = arith.constant 0 : index
    %220 = vector.load %arg5[%219, %c0_58, %c0_59] : memref<8x2x32xbf16, #tpu.memory_space<vmem>>, vector<1x2x32xbf16>
    %221 = vector.shape_cast %220 : vector<1x2x32xbf16> to vector<2x32xbf16>
    %222 = vector.shape_cast %218 : vector<2x32xbf16> to vector<1x2x32xbf16>
    tpu.vector_store %arg5[%219, %c0_58, %c0_59], %222 {strides = array<i32>} : memref<8x2x32xbf16, #tpu.memory_space<vmem>>, vector<1x2x32xbf16>,
    %223 = arith.truncf %217 : vector<2x32xf32> to vector<2x32xbf16>
    %224 = arith.index_cast %155 : i32 to index
    %c0_60 = arith.constant 0 : index
    %c0_61 = arith.constant 0 : index
    %225 = vector.load %arg6[%224, %c0_60, %c0_61] : memref<8x2x32xbf16, #tpu.memory_space<vmem>>, vector<1x2x32xbf16>
    %226 = vector.shape_cast %225 : vector<1x2x32xbf16> to vector<2x32xbf16>
    %227 = vector.shape_cast %223 : vector<2x32xbf16> to vector<1x2x32xbf16>
    tpu.vector_store %arg6[%224, %c0_60, %c0_61], %227 {strides = array<i32>} : memref<8x2x32xbf16, #tpu.memory_space<vmem>>, vector<1x2x32xbf16>,
    %c3_i32 = arith.constant 3 : i32
    %c7_i32_62 = arith.constant 7 : i32
    %228 = arith.subi %c7_i32_62, %c3_i32 : i32
    %229 = arith.index_cast %c3_i32 : i32 to index
    %c0_63 = arith.constant 0 : index
    %c0_64 = arith.constant 0 : index
    %230 = vector.load %arg1[%229, %c0_63, %c0_64] : memref<8x2x128xf32, #tpu.memory_space<vmem>>, vector<1x2x128xf32>
    %231 = vector.shape_cast %230 : vector<1x2x128xf32> to vector<2x128xf32>
    %232 = arith.truncf %192 : vector<2x32xf32> to vector<2x32xbf16>
    %cst_65 = arith.constant dense<0.000000e+00> : vector<2x128xf32>
    %233 = tpu.matmul %232, %3, %cst_65 {dimension_numbers = #tpu.dot_dimension_numbers<[1], [0], [0], [1], [0, 0, 1, 1], [], []>} : vector<2x32xbf16>, vector<32x128xbf16>, vector<2x128xf32> -> vector<2x128xf32>
    %234 = arith.addf %231, %233 : vector<2x128xf32>
    %235 = arith.index_cast %228 : i32 to index
    %c0_66 = arith.constant 0 : index
    %c0_67 = arith.constant 0 : index
    %236 = vector.load %arg2[%235, %c0_66, %c0_67] : memref<8x2x128xf32, #tpu.memory_space<vmem>>, vector<1x2x128xf32>
    %237 = vector.shape_cast %236 : vector<1x2x128xf32> to vector<2x128xf32>
    %238 = arith.truncf %217 : vector<2x32xf32> to vector<2x32xbf16>
    %cst_68 = arith.constant dense<0.000000e+00> : vector<2x128xf32>
    %239 = tpu.matmul %238, %4, %cst_68 {dimension_numbers = #tpu.dot_dimension_numbers<[1], [0], [0], [1], [0, 0, 1, 1], [], []>} : vector<2x32xbf16>, vector<32x128xbf16>, vector<2x128xf32> -> vector<2x128xf32>
    %240 = arith.addf %237, %239 : vector<2x128xf32>
    %241 = vector.extract_strided_slice %234 {offsets = [0, 0], sizes = [2, 32], strides = [1, 1]} : vector<2x128xf32> to vector<2x32xf32>
    %242 = arith.negf %241 : vector<2x32xf32>
    %243 = math.exp %242 : vector<2x32xf32>
    %cst_69 = arith.constant 1.000000e+00 : f32
    %244 = vector.broadcast %cst_69 : f32 to vector<2x32xf32>
    %245 = arith.addf %244, %243 : vector<2x32xf32>
    %246 = arith.divf %244, %245 : vector<2x32xf32>
    %247 = vector.extract_strided_slice %234 {offsets = [0, 32], sizes = [2, 32], strides = [1, 1]} : vector<2x128xf32> to vector<2x32xf32>
    %248 = arith.negf %247 : vector<2x32xf32>
    %249 = math.exp %248 : vector<2x32xf32>
    %cst_70 = arith.constant 1.000000e+00 : f32
    %250 = vector.broadcast %cst_70 : f32 to vector<2x32xf32>
    %251 = arith.addf %250, %249 : vector<2x32xf32>
    %252 = arith.divf %250, %251 : vector<2x32xf32>
    %253 = vector.extract_strided_slice %234 {offsets = [0, 64], sizes = [2, 32], strides = [1, 1]} : vector<2x128xf32> to vector<2x32xf32>
    %254 = math.tanh %253 : vector<2x32xf32>
    %255 = vector.extract_strided_slice %234 {offsets = [0, 96], sizes = [2, 32], strides = [1, 1]} : vector<2x128xf32> to vector<2x32xf32>
    %256 = arith.negf %255 : vector<2x32xf32>
    %257 = math.exp %256 : vector<2x32xf32>
    %cst_71 = arith.constant 1.000000e+00 : f32
    %258 = vector.broadcast %cst_71 : f32 to vector<2x32xf32>
    %259 = arith.addf %258, %257 : vector<2x32xf32>
    %260 = arith.divf %258, %259 : vector<2x32xf32>
    %261 = arith.mulf %252, %190 : vector<2x32xf32>
    %262 = arith.mulf %246, %254 : vector<2x32xf32>
    %263 = arith.addf %261, %262 : vector<2x32xf32>
    %264 = math.tanh %263 : vector<2x32xf32>
    %265 = arith.mulf %260, %264 : vector<2x32xf32>
    %266 = vector.extract_strided_slice %240 {offsets = [0, 0], sizes = [2, 32], strides = [1, 1]} : vector<2x128xf32> to vector<2x32xf32>
    %267 = arith.negf %266 : vector<2x32xf32>
    %268 = math.exp %267 : vector<2x32xf32>
    %cst_72 = arith.constant 1.000000e+00 : f32
    %269 = vector.broadcast %cst_72 : f32 to vector<2x32xf32>
    %270 = arith.addf %269, %268 : vector<2x32xf32>
    %271 = arith.divf %269, %270 : vector<2x32xf32>
    %272 = vector.extract_strided_slice %240 {offsets = [0, 32], sizes = [2, 32], strides = [1, 1]} : vector<2x128xf32> to vector<2x32xf32>
    %273 = arith.negf %272 : vector<2x32xf32>
    %274 = math.exp %273 : vector<2x32xf32>
    %cst_73 = arith.constant 1.000000e+00 : f32
    %275 = vector.broadcast %cst_73 : f32 to vector<2x32xf32>
    %276 = arith.addf %275, %274 : vector<2x32xf32>
    %277 = arith.divf %275, %276 : vector<2x32xf32>
    %278 = vector.extract_strided_slice %240 {offsets = [0, 64], sizes = [2, 32], strides = [1, 1]} : vector<2x128xf32> to vector<2x32xf32>
    %279 = math.tanh %278 : vector<2x32xf32>
    %280 = vector.extract_strided_slice %240 {offsets = [0, 96], sizes = [2, 32], strides = [1, 1]} : vector<2x128xf32> to vector<2x32xf32>
    %281 = arith.negf %280 : vector<2x32xf32>
    %282 = math.exp %281 : vector<2x32xf32>
    %cst_74 = arith.constant 1.000000e+00 : f32
    %283 = vector.broadcast %cst_74 : f32 to vector<2x32xf32>
    %284 = arith.addf %283, %282 : vector<2x32xf32>
    %285 = arith.divf %283, %284 : vector<2x32xf32>
    %286 = arith.mulf %277, %215 : vector<2x32xf32>
    %287 = arith.mulf %271, %279 : vector<2x32xf32>
    %288 = arith.addf %286, %287 : vector<2x32xf32>
    %289 = math.tanh %288 : vector<2x32xf32>
    %290 = arith.mulf %285, %289 : vector<2x32xf32>
    %291 = arith.truncf %265 : vector<2x32xf32> to vector<2x32xbf16>
    %292 = arith.index_cast %c3_i32 : i32 to index
    %c0_75 = arith.constant 0 : index
    %c0_76 = arith.constant 0 : index
    %293 = vector.load %arg5[%292, %c0_75, %c0_76] : memref<8x2x32xbf16, #tpu.memory_space<vmem>>, vector<1x2x32xbf16>
    %294 = vector.shape_cast %293 : vector<1x2x32xbf16> to vector<2x32xbf16>
    %295 = vector.shape_cast %291 : vector<2x32xbf16> to vector<1x2x32xbf16>
    tpu.vector_store %arg5[%292, %c0_75, %c0_76], %295 {strides = array<i32>} : memref<8x2x32xbf16, #tpu.memory_space<vmem>>, vector<1x2x32xbf16>,
    %296 = arith.truncf %290 : vector<2x32xf32> to vector<2x32xbf16>
    %297 = arith.index_cast %228 : i32 to index
    %c0_77 = arith.constant 0 : index
    %c0_78 = arith.constant 0 : index
    %298 = vector.load %arg6[%297, %c0_77, %c0_78] : memref<8x2x32xbf16, #tpu.memory_space<vmem>>, vector<1x2x32xbf16>
    %299 = vector.shape_cast %298 : vector<1x2x32xbf16> to vector<2x32xbf16>
    %300 = vector.shape_cast %296 : vector<2x32xbf16> to vector<1x2x32xbf16>
    tpu.vector_store %arg6[%297, %c0_77, %c0_78], %300 {strides = array<i32>} : memref<8x2x32xbf16, #tpu.memory_space<vmem>>, vector<1x2x32xbf16>,
    %c4_i32 = arith.constant 4 : i32
    %c7_i32_79 = arith.constant 7 : i32
    %301 = arith.subi %c7_i32_79, %c4_i32 : i32
    %302 = arith.index_cast %c4_i32 : i32 to index
    %c0_80 = arith.constant 0 : index
    %c0_81 = arith.constant 0 : index
    %303 = vector.load %arg1[%302, %c0_80, %c0_81] : memref<8x2x128xf32, #tpu.memory_space<vmem>>, vector<1x2x128xf32>
    %304 = vector.shape_cast %303 : vector<1x2x128xf32> to vector<2x128xf32>
    %305 = arith.truncf %265 : vector<2x32xf32> to vector<2x32xbf16>
    %cst_82 = arith.constant dense<0.000000e+00> : vector<2x128xf32>
    %306 = tpu.matmul %305, %3, %cst_82 {dimension_numbers = #tpu.dot_dimension_numbers<[1], [0], [0], [1], [0, 0, 1, 1], [], []>} : vector<2x32xbf16>, vector<32x128xbf16>, vector<2x128xf32> -> vector<2x128xf32>
    %307 = arith.addf %304, %306 : vector<2x128xf32>
    %308 = arith.index_cast %301 : i32 to index
    %c0_83 = arith.constant 0 : index
    %c0_84 = arith.constant 0 : index
    %309 = vector.load %arg2[%308, %c0_83, %c0_84] : memref<8x2x128xf32, #tpu.memory_space<vmem>>, vector<1x2x128xf32>
    %310 = vector.shape_cast %309 : vector<1x2x128xf32> to vector<2x128xf32>
    %311 = arith.truncf %290 : vector<2x32xf32> to vector<2x32xbf16>
    %cst_85 = arith.constant dense<0.000000e+00> : vector<2x128xf32>
    %312 = tpu.matmul %311, %4, %cst_85 {dimension_numbers = #tpu.dot_dimension_numbers<[1], [0], [0], [1], [0, 0, 1, 1], [], []>} : vector<2x32xbf16>, vector<32x128xbf16>, vector<2x128xf32> -> vector<2x128xf32>
    %313 = arith.addf %310, %312 : vector<2x128xf32>
    %314 = vector.extract_strided_slice %307 {offsets = [0, 0], sizes = [2, 32], strides = [1, 1]} : vector<2x128xf32> to vector<2x32xf32>
    %315 = arith.negf %314 : vector<2x32xf32>
    %316 = math.exp %315 : vector<2x32xf32>
    %cst_86 = arith.constant 1.000000e+00 : f32
    %317 = vector.broadcast %cst_86 : f32 to vector<2x32xf32>
    %318 = arith.addf %317, %316 : vector<2x32xf32>
    %319 = arith.divf %317, %318 : vector<2x32xf32>
    %320 = vector.extract_strided_slice %307 {offsets = [0, 32], sizes = [2, 32], strides = [1, 1]} : vector<2x128xf32> to vector<2x32xf32>
    %321 = arith.negf %320 : vector<2x32xf32>
    %322 = math.exp %321 : vector<2x32xf32>
    %cst_87 = arith.constant 1.000000e+00 : f32
    %323 = vector.broadcast %cst_87 : f32 to vector<2x32xf32>
    %324 = arith.addf %323, %322 : vector<2x32xf32>
    %325 = arith.divf %323, %324 : vector<2x32xf32>
    %326 = vector.extract_strided_slice %307 {offsets = [0, 64], sizes = [2, 32], strides = [1, 1]} : vector<2x128xf32> to vector<2x32xf32>
    %327 = math.tanh %326 : vector<2x32xf32>
    %328 = vector.extract_strided_slice %307 {offsets = [0, 96], sizes = [2, 32], strides = [1, 1]} : vector<2x128xf32> to vector<2x32xf32>
    %329 = arith.negf %328 : vector<2x32xf32>
    %330 = math.exp %329 : vector<2x32xf32>
    %cst_88 = arith.constant 1.000000e+00 : f32
    %331 = vector.broadcast %cst_88 : f32 to vector<2x32xf32>
    %332 = arith.addf %331, %330 : vector<2x32xf32>
    %333 = arith.divf %331, %332 : vector<2x32xf32>
    %334 = arith.mulf %325, %263 : vector<2x32xf32>
    %335 = arith.mulf %319, %327 : vector<2x32xf32>
    %336 = arith.addf %334, %335 : vector<2x32xf32>
    %337 = math.tanh %336 : vector<2x32xf32>
    %338 = arith.mulf %333, %337 : vector<2x32xf32>
    %339 = vector.extract_strided_slice %313 {offsets = [0, 0], sizes = [2, 32], strides = [1, 1]} : vector<2x128xf32> to vector<2x32xf32>
    %340 = arith.negf %339 : vector<2x32xf32>
    %341 = math.exp %340 : vector<2x32xf32>
    %cst_89 = arith.constant 1.000000e+00 : f32
    %342 = vector.broadcast %cst_89 : f32 to vector<2x32xf32>
    %343 = arith.addf %342, %341 : vector<2x32xf32>
    %344 = arith.divf %342, %343 : vector<2x32xf32>
    %345 = vector.extract_strided_slice %313 {offsets = [0, 32], sizes = [2, 32], strides = [1, 1]} : vector<2x128xf32> to vector<2x32xf32>
    %346 = arith.negf %345 : vector<2x32xf32>
    %347 = math.exp %346 : vector<2x32xf32>
    %cst_90 = arith.constant 1.000000e+00 : f32
    %348 = vector.broadcast %cst_90 : f32 to vector<2x32xf32>
    %349 = arith.addf %348, %347 : vector<2x32xf32>
    %350 = arith.divf %348, %349 : vector<2x32xf32>
    %351 = vector.extract_strided_slice %313 {offsets = [0, 64], sizes = [2, 32], strides = [1, 1]} : vector<2x128xf32> to vector<2x32xf32>
    %352 = math.tanh %351 : vector<2x32xf32>
    %353 = vector.extract_strided_slice %313 {offsets = [0, 96], sizes = [2, 32], strides = [1, 1]} : vector<2x128xf32> to vector<2x32xf32>
    %354 = arith.negf %353 : vector<2x32xf32>
    %355 = math.exp %354 : vector<2x32xf32>
    %cst_91 = arith.constant 1.000000e+00 : f32
    %356 = vector.broadcast %cst_91 : f32 to vector<2x32xf32>
    %357 = arith.addf %356, %355 : vector<2x32xf32>
    %358 = arith.divf %356, %357 : vector<2x32xf32>
    %359 = arith.mulf %350, %288 : vector<2x32xf32>
    %360 = arith.mulf %344, %352 : vector<2x32xf32>
    %361 = arith.addf %359, %360 : vector<2x32xf32>
    %362 = math.tanh %361 : vector<2x32xf32>
    %363 = arith.mulf %358, %362 : vector<2x32xf32>
    %364 = arith.truncf %338 : vector<2x32xf32> to vector<2x32xbf16>
    %365 = arith.index_cast %c4_i32 : i32 to index
    %c0_92 = arith.constant 0 : index
    %c0_93 = arith.constant 0 : index
    %366 = vector.load %arg5[%365, %c0_92, %c0_93] : memref<8x2x32xbf16, #tpu.memory_space<vmem>>, vector<1x2x32xbf16>
    %367 = vector.shape_cast %366 : vector<1x2x32xbf16> to vector<2x32xbf16>
    %368 = vector.shape_cast %364 : vector<2x32xbf16> to vector<1x2x32xbf16>
    tpu.vector_store %arg5[%365, %c0_92, %c0_93], %368 {strides = array<i32>} : memref<8x2x32xbf16, #tpu.memory_space<vmem>>, vector<1x2x32xbf16>,
    %369 = arith.truncf %363 : vector<2x32xf32> to vector<2x32xbf16>
    %370 = arith.index_cast %301 : i32 to index
    %c0_94 = arith.constant 0 : index
    %c0_95 = arith.constant 0 : index
    %371 = vector.load %arg6[%370, %c0_94, %c0_95] : memref<8x2x32xbf16, #tpu.memory_space<vmem>>, vector<1x2x32xbf16>
    %372 = vector.shape_cast %371 : vector<1x2x32xbf16> to vector<2x32xbf16>
    %373 = vector.shape_cast %369 : vector<2x32xbf16> to vector<1x2x32xbf16>
    tpu.vector_store %arg6[%370, %c0_94, %c0_95], %373 {strides = array<i32>} : memref<8x2x32xbf16, #tpu.memory_space<vmem>>, vector<1x2x32xbf16>,
    %c5_i32 = arith.constant 5 : i32
    %c7_i32_96 = arith.constant 7 : i32
    %374 = arith.subi %c7_i32_96, %c5_i32 : i32
    %375 = arith.index_cast %c5_i32 : i32 to index
    %c0_97 = arith.constant 0 : index
    %c0_98 = arith.constant 0 : index
    %376 = vector.load %arg1[%375, %c0_97, %c0_98] : memref<8x2x128xf32, #tpu.memory_space<vmem>>, vector<1x2x128xf32>
    %377 = vector.shape_cast %376 : vector<1x2x128xf32> to vector<2x128xf32>
    %378 = arith.truncf %338 : vector<2x32xf32> to vector<2x32xbf16>
    %cst_99 = arith.constant dense<0.000000e+00> : vector<2x128xf32>
    %379 = tpu.matmul %378, %3, %cst_99 {dimension_numbers = #tpu.dot_dimension_numbers<[1], [0], [0], [1], [0, 0, 1, 1], [], []>} : vector<2x32xbf16>, vector<32x128xbf16>, vector<2x128xf32> -> vector<2x128xf32>
    %380 = arith.addf %377, %379 : vector<2x128xf32>
    %381 = arith.index_cast %374 : i32 to index
    %c0_100 = arith.constant 0 : index
    %c0_101 = arith.constant 0 : index
    %382 = vector.load %arg2[%381, %c0_100, %c0_101] : memref<8x2x128xf32, #tpu.memory_space<vmem>>, vector<1x2x128xf32>
    %383 = vector.shape_cast %382 : vector<1x2x128xf32> to vector<2x128xf32>
    %384 = arith.truncf %363 : vector<2x32xf32> to vector<2x32xbf16>
    %cst_102 = arith.constant dense<0.000000e+00> : vector<2x128xf32>
    %385 = tpu.matmul %384, %4, %cst_102 {dimension_numbers = #tpu.dot_dimension_numbers<[1], [0], [0], [1], [0, 0, 1, 1], [], []>} : vector<2x32xbf16>, vector<32x128xbf16>, vector<2x128xf32> -> vector<2x128xf32>
    %386 = arith.addf %383, %385 : vector<2x128xf32>
    %387 = vector.extract_strided_slice %380 {offsets = [0, 0], sizes = [2, 32], strides = [1, 1]} : vector<2x128xf32> to vector<2x32xf32>
    %388 = arith.negf %387 : vector<2x32xf32>
    %389 = math.exp %388 : vector<2x32xf32>
    %cst_103 = arith.constant 1.000000e+00 : f32
    %390 = vector.broadcast %cst_103 : f32 to vector<2x32xf32>
    %391 = arith.addf %390, %389 : vector<2x32xf32>
    %392 = arith.divf %390, %391 : vector<2x32xf32>
    %393 = vector.extract_strided_slice %380 {offsets = [0, 32], sizes = [2, 32], strides = [1, 1]} : vector<2x128xf32> to vector<2x32xf32>
    %394 = arith.negf %393 : vector<2x32xf32>
    %395 = math.exp %394 : vector<2x32xf32>
    %cst_104 = arith.constant 1.000000e+00 : f32
    %396 = vector.broadcast %cst_104 : f32 to vector<2x32xf32>
    %397 = arith.addf %396, %395 : vector<2x32xf32>
    %398 = arith.divf %396, %397 : vector<2x32xf32>
    %399 = vector.extract_strided_slice %380 {offsets = [0, 64], sizes = [2, 32], strides = [1, 1]} : vector<2x128xf32> to vector<2x32xf32>
    %400 = math.tanh %399 : vector<2x32xf32>
    %401 = vector.extract_strided_slice %380 {offsets = [0, 96], sizes = [2, 32], strides = [1, 1]} : vector<2x128xf32> to vector<2x32xf32>
    %402 = arith.negf %401 : vector<2x32xf32>
    %403 = math.exp %402 : vector<2x32xf32>
    %cst_105 = arith.constant 1.000000e+00 : f32
    %404 = vector.broadcast %cst_105 : f32 to vector<2x32xf32>
    %405 = arith.addf %404, %403 : vector<2x32xf32>
    %406 = arith.divf %404, %405 : vector<2x32xf32>
    %407 = arith.mulf %398, %336 : vector<2x32xf32>
    %408 = arith.mulf %392, %400 : vector<2x32xf32>
    %409 = arith.addf %407, %408 : vector<2x32xf32>
    %410 = math.tanh %409 : vector<2x32xf32>
    %411 = arith.mulf %406, %410 : vector<2x32xf32>
    %412 = vector.extract_strided_slice %386 {offsets = [0, 0], sizes = [2, 32], strides = [1, 1]} : vector<2x128xf32> to vector<2x32xf32>
    %413 = arith.negf %412 : vector<2x32xf32>
    %414 = math.exp %413 : vector<2x32xf32>
    %cst_106 = arith.constant 1.000000e+00 : f32
    %415 = vector.broadcast %cst_106 : f32 to vector<2x32xf32>
    %416 = arith.addf %415, %414 : vector<2x32xf32>
    %417 = arith.divf %415, %416 : vector<2x32xf32>
    %418 = vector.extract_strided_slice %386 {offsets = [0, 32], sizes = [2, 32], strides = [1, 1]} : vector<2x128xf32> to vector<2x32xf32>
    %419 = arith.negf %418 : vector<2x32xf32>
    %420 = math.exp %419 : vector<2x32xf32>
    %cst_107 = arith.constant 1.000000e+00 : f32
    %421 = vector.broadcast %cst_107 : f32 to vector<2x32xf32>
    %422 = arith.addf %421, %420 : vector<2x32xf32>
    %423 = arith.divf %421, %422 : vector<2x32xf32>
    %424 = vector.extract_strided_slice %386 {offsets = [0, 64], sizes = [2, 32], strides = [1, 1]} : vector<2x128xf32> to vector<2x32xf32>
    %425 = math.tanh %424 : vector<2x32xf32>
    %426 = vector.extract_strided_slice %386 {offsets = [0, 96], sizes = [2, 32], strides = [1, 1]} : vector<2x128xf32> to vector<2x32xf32>
    %427 = arith.negf %426 : vector<2x32xf32>
    %428 = math.exp %427 : vector<2x32xf32>
    %cst_108 = arith.constant 1.000000e+00 : f32
    %429 = vector.broadcast %cst_108 : f32 to vector<2x32xf32>
    %430 = arith.addf %429, %428 : vector<2x32xf32>
    %431 = arith.divf %429, %430 : vector<2x32xf32>
    %432 = arith.mulf %423, %361 : vector<2x32xf32>
    %433 = arith.mulf %417, %425 : vector<2x32xf32>
    %434 = arith.addf %432, %433 : vector<2x32xf32>
    %435 = math.tanh %434 : vector<2x32xf32>
    %436 = arith.mulf %431, %435 : vector<2x32xf32>
    %437 = arith.truncf %411 : vector<2x32xf32> to vector<2x32xbf16>
    %438 = arith.index_cast %c5_i32 : i32 to index
    %c0_109 = arith.constant 0 : index
    %c0_110 = arith.constant 0 : index
    %439 = vector.load %arg5[%438, %c0_109, %c0_110] : memref<8x2x32xbf16, #tpu.memory_space<vmem>>, vector<1x2x32xbf16>
    %440 = vector.shape_cast %439 : vector<1x2x32xbf16> to vector<2x32xbf16>
    %441 = vector.shape_cast %437 : vector<2x32xbf16> to vector<1x2x32xbf16>
    tpu.vector_store %arg5[%438, %c0_109, %c0_110], %441 {strides = array<i32>} : memref<8x2x32xbf16, #tpu.memory_space<vmem>>, vector<1x2x32xbf16>,
    %442 = arith.truncf %436 : vector<2x32xf32> to vector<2x32xbf16>
    %443 = arith.index_cast %374 : i32 to index
    %c0_111 = arith.constant 0 : index
    %c0_112 = arith.constant 0 : index
    %444 = vector.load %arg6[%443, %c0_111, %c0_112] : memref<8x2x32xbf16, #tpu.memory_space<vmem>>, vector<1x2x32xbf16>
    %445 = vector.shape_cast %444 : vector<1x2x32xbf16> to vector<2x32xbf16>
    %446 = vector.shape_cast %442 : vector<2x32xbf16> to vector<1x2x32xbf16>
    tpu.vector_store %arg6[%443, %c0_111, %c0_112], %446 {strides = array<i32>} : memref<8x2x32xbf16, #tpu.memory_space<vmem>>, vector<1x2x32xbf16>,
    %c6_i32 = arith.constant 6 : i32
    %c7_i32_113 = arith.constant 7 : i32
    %447 = arith.subi %c7_i32_113, %c6_i32 : i32
    %448 = arith.index_cast %c6_i32 : i32 to index
    %c0_114 = arith.constant 0 : index
    %c0_115 = arith.constant 0 : index
    %449 = vector.load %arg1[%448, %c0_114, %c0_115] : memref<8x2x128xf32, #tpu.memory_space<vmem>>, vector<1x2x128xf32>
    %450 = vector.shape_cast %449 : vector<1x2x128xf32> to vector<2x128xf32>
    %451 = arith.truncf %411 : vector<2x32xf32> to vector<2x32xbf16>
    %cst_116 = arith.constant dense<0.000000e+00> : vector<2x128xf32>
    %452 = tpu.matmul %451, %3, %cst_116 {dimension_numbers = #tpu.dot_dimension_numbers<[1], [0], [0], [1], [0, 0, 1, 1], [], []>} : vector<2x32xbf16>, vector<32x128xbf16>, vector<2x128xf32> -> vector<2x128xf32>
    %453 = arith.addf %450, %452 : vector<2x128xf32>
    %454 = arith.index_cast %447 : i32 to index
    %c0_117 = arith.constant 0 : index
    %c0_118 = arith.constant 0 : index
    %455 = vector.load %arg2[%454, %c0_117, %c0_118] : memref<8x2x128xf32, #tpu.memory_space<vmem>>, vector<1x2x128xf32>
    %456 = vector.shape_cast %455 : vector<1x2x128xf32> to vector<2x128xf32>
    %457 = arith.truncf %436 : vector<2x32xf32> to vector<2x32xbf16>
    %cst_119 = arith.constant dense<0.000000e+00> : vector<2x128xf32>
    %458 = tpu.matmul %457, %4, %cst_119 {dimension_numbers = #tpu.dot_dimension_numbers<[1], [0], [0], [1], [0, 0, 1, 1], [], []>} : vector<2x32xbf16>, vector<32x128xbf16>, vector<2x128xf32> -> vector<2x128xf32>
    %459 = arith.addf %456, %458 : vector<2x128xf32>
    %460 = vector.extract_strided_slice %453 {offsets = [0, 0], sizes = [2, 32], strides = [1, 1]} : vector<2x128xf32> to vector<2x32xf32>
    %461 = arith.negf %460 : vector<2x32xf32>
    %462 = math.exp %461 : vector<2x32xf32>
    %cst_120 = arith.constant 1.000000e+00 : f32
    %463 = vector.broadcast %cst_120 : f32 to vector<2x32xf32>
    %464 = arith.addf %463, %462 : vector<2x32xf32>
    %465 = arith.divf %463, %464 : vector<2x32xf32>
    %466 = vector.extract_strided_slice %453 {offsets = [0, 32], sizes = [2, 32], strides = [1, 1]} : vector<2x128xf32> to vector<2x32xf32>
    %467 = arith.negf %466 : vector<2x32xf32>
    %468 = math.exp %467 : vector<2x32xf32>
    %cst_121 = arith.constant 1.000000e+00 : f32
    %469 = vector.broadcast %cst_121 : f32 to vector<2x32xf32>
    %470 = arith.addf %469, %468 : vector<2x32xf32>
    %471 = arith.divf %469, %470 : vector<2x32xf32>
    %472 = vector.extract_strided_slice %453 {offsets = [0, 64], sizes = [2, 32], strides = [1, 1]} : vector<2x128xf32> to vector<2x32xf32>
    %473 = math.tanh %472 : vector<2x32xf32>
    %474 = vector.extract_strided_slice %453 {offsets = [0, 96], sizes = [2, 32], strides = [1, 1]} : vector<2x128xf32> to vector<2x32xf32>
    %475 = arith.negf %474 : vector<2x32xf32>
    %476 = math.exp %475 : vector<2x32xf32>
    %cst_122 = arith.constant 1.000000e+00 : f32
    %477 = vector.broadcast %cst_122 : f32 to vector<2x32xf32>
    %478 = arith.addf %477, %476 : vector<2x32xf32>
    %479 = arith.divf %477, %478 : vector<2x32xf32>
    %480 = arith.mulf %471, %409 : vector<2x32xf32>
    %481 = arith.mulf %465, %473 : vector<2x32xf32>
    %482 = arith.addf %480, %481 : vector<2x32xf32>
    %483 = math.tanh %482 : vector<2x32xf32>
    %484 = arith.mulf %479, %483 : vector<2x32xf32>
    %485 = vector.extract_strided_slice %459 {offsets = [0, 0], sizes = [2, 32], strides = [1, 1]} : vector<2x128xf32> to vector<2x32xf32>
    %486 = arith.negf %485 : vector<2x32xf32>
    %487 = math.exp %486 : vector<2x32xf32>
    %cst_123 = arith.constant 1.000000e+00 : f32
    %488 = vector.broadcast %cst_123 : f32 to vector<2x32xf32>
    %489 = arith.addf %488, %487 : vector<2x32xf32>
    %490 = arith.divf %488, %489 : vector<2x32xf32>
    %491 = vector.extract_strided_slice %459 {offsets = [0, 32], sizes = [2, 32], strides = [1, 1]} : vector<2x128xf32> to vector<2x32xf32>
    %492 = arith.negf %491 : vector<2x32xf32>
    %493 = math.exp %492 : vector<2x32xf32>
    %cst_124 = arith.constant 1.000000e+00 : f32
    %494 = vector.broadcast %cst_124 : f32 to vector<2x32xf32>
    %495 = arith.addf %494, %493 : vector<2x32xf32>
    %496 = arith.divf %494, %495 : vector<2x32xf32>
    %497 = vector.extract_strided_slice %459 {offsets = [0, 64], sizes = [2, 32], strides = [1, 1]} : vector<2x128xf32> to vector<2x32xf32>
    %498 = math.tanh %497 : vector<2x32xf32>
    %499 = vector.extract_strided_slice %459 {offsets = [0, 96], sizes = [2, 32], strides = [1, 1]} : vector<2x128xf32> to vector<2x32xf32>
    %500 = arith.negf %499 : vector<2x32xf32>
    %501 = math.exp %500 : vector<2x32xf32>
    %cst_125 = arith.constant 1.000000e+00 : f32
    %502 = vector.broadcast %cst_125 : f32 to vector<2x32xf32>
    %503 = arith.addf %502, %501 : vector<2x32xf32>
    %504 = arith.divf %502, %503 : vector<2x32xf32>
    %505 = arith.mulf %496, %434 : vector<2x32xf32>
    %506 = arith.mulf %490, %498 : vector<2x32xf32>
    %507 = arith.addf %505, %506 : vector<2x32xf32>
    %508 = math.tanh %507 : vector<2x32xf32>
    %509 = arith.mulf %504, %508 : vector<2x32xf32>
    %510 = arith.truncf %484 : vector<2x32xf32> to vector<2x32xbf16>
    %511 = arith.index_cast %c6_i32 : i32 to index
    %c0_126 = arith.constant 0 : index
    %c0_127 = arith.constant 0 : index
    %512 = vector.load %arg5[%511, %c0_126, %c0_127] : memref<8x2x32xbf16, #tpu.memory_space<vmem>>, vector<1x2x32xbf16>
    %513 = vector.shape_cast %512 : vector<1x2x32xbf16> to vector<2x32xbf16>
    %514 = vector.shape_cast %510 : vector<2x32xbf16> to vector<1x2x32xbf16>
    tpu.vector_store %arg5[%511, %c0_126, %c0_127], %514 {strides = array<i32>} : memref<8x2x32xbf16, #tpu.memory_space<vmem>>, vector<1x2x32xbf16>,
    %515 = arith.truncf %509 : vector<2x32xf32> to vector<2x32xbf16>
    %516 = arith.index_cast %447 : i32 to index
    %c0_128 = arith.constant 0 : index
    %c0_129 = arith.constant 0 : index
    %517 = vector.load %arg6[%516, %c0_128, %c0_129] : memref<8x2x32xbf16, #tpu.memory_space<vmem>>, vector<1x2x32xbf16>
    %518 = vector.shape_cast %517 : vector<1x2x32xbf16> to vector<2x32xbf16>
    %519 = vector.shape_cast %515 : vector<2x32xbf16> to vector<1x2x32xbf16>
    tpu.vector_store %arg6[%516, %c0_128, %c0_129], %519 {strides = array<i32>} : memref<8x2x32xbf16, #tpu.memory_space<vmem>>, vector<1x2x32xbf16>,
    %c7_i32_130 = arith.constant 7 : i32
    %c7_i32_131 = arith.constant 7 : i32
    %520 = arith.subi %c7_i32_131, %c7_i32_130 : i32
    %521 = arith.index_cast %c7_i32_130 : i32 to index
    %c0_132 = arith.constant 0 : index
    %c0_133 = arith.constant 0 : index
    %522 = vector.load %arg1[%521, %c0_132, %c0_133] : memref<8x2x128xf32, #tpu.memory_space<vmem>>, vector<1x2x128xf32>
    %523 = vector.shape_cast %522 : vector<1x2x128xf32> to vector<2x128xf32>
    %524 = arith.truncf %484 : vector<2x32xf32> to vector<2x32xbf16>
    %cst_134 = arith.constant dense<0.000000e+00> : vector<2x128xf32>
    %525 = tpu.matmul %524, %3, %cst_134 {dimension_numbers = #tpu.dot_dimension_numbers<[1], [0], [0], [1], [0, 0, 1, 1], [], []>} : vector<2x32xbf16>, vector<32x128xbf16>, vector<2x128xf32> -> vector<2x128xf32>
    %526 = arith.addf %523, %525 : vector<2x128xf32>
    %527 = arith.index_cast %520 : i32 to index
    %c0_135 = arith.constant 0 : index
    %c0_136 = arith.constant 0 : index
    %528 = vector.load %arg2[%527, %c0_135, %c0_136] : memref<8x2x128xf32, #tpu.memory_space<vmem>>, vector<1x2x128xf32>
    %529 = vector.shape_cast %528 : vector<1x2x128xf32> to vector<2x128xf32>
    %530 = arith.truncf %509 : vector<2x32xf32> to vector<2x32xbf16>
    %cst_137 = arith.constant dense<0.000000e+00> : vector<2x128xf32>
    %531 = tpu.matmul %530, %4, %cst_137 {dimension_numbers = #tpu.dot_dimension_numbers<[1], [0], [0], [1], [0, 0, 1, 1], [], []>} : vector<2x32xbf16>, vector<32x128xbf16>, vector<2x128xf32> -> vector<2x128xf32>
    %532 = arith.addf %529, %531 : vector<2x128xf32>
    %533 = vector.extract_strided_slice %526 {offsets = [0, 0], sizes = [2, 32], strides = [1, 1]} : vector<2x128xf32> to vector<2x32xf32>
    %534 = arith.negf %533 : vector<2x32xf32>
    %535 = math.exp %534 : vector<2x32xf32>
    %cst_138 = arith.constant 1.000000e+00 : f32
    %536 = vector.broadcast %cst_138 : f32 to vector<2x32xf32>
    %537 = arith.addf %536, %535 : vector<2x32xf32>
    %538 = arith.divf %536, %537 : vector<2x32xf32>
    %539 = vector.extract_strided_slice %526 {offsets = [0, 32], sizes = [2, 32], strides = [1, 1]} : vector<2x128xf32> to vector<2x32xf32>
    %540 = arith.negf %539 : vector<2x32xf32>
    %541 = math.exp %540 : vector<2x32xf32>
    %cst_139 = arith.constant 1.000000e+00 : f32
    %542 = vector.broadcast %cst_139 : f32 to vector<2x32xf32>
    %543 = arith.addf %542, %541 : vector<2x32xf32>
    %544 = arith.divf %542, %543 : vector<2x32xf32>
    %545 = vector.extract_strided_slice %526 {offsets = [0, 64], sizes = [2, 32], strides = [1, 1]} : vector<2x128xf32> to vector<2x32xf32>
    %546 = math.tanh %545 : vector<2x32xf32>
    %547 = vector.extract_strided_slice %526 {offsets = [0, 96], sizes = [2, 32], strides = [1, 1]} : vector<2x128xf32> to vector<2x32xf32>
    %548 = arith.negf %547 : vector<2x32xf32>
    %549 = math.exp %548 : vector<2x32xf32>
    %cst_140 = arith.constant 1.000000e+00 : f32
    %550 = vector.broadcast %cst_140 : f32 to vector<2x32xf32>
    %551 = arith.addf %550, %549 : vector<2x32xf32>
    %552 = arith.divf %550, %551 : vector<2x32xf32>
    %553 = arith.mulf %544, %482 : vector<2x32xf32>
    %554 = arith.mulf %538, %546 : vector<2x32xf32>
    %555 = arith.addf %553, %554 : vector<2x32xf32>
    %556 = math.tanh %555 : vector<2x32xf32>
    %557 = arith.mulf %552, %556 : vector<2x32xf32>
    %558 = vector.extract_strided_slice %532 {offsets = [0, 0], sizes = [2, 32], strides = [1, 1]} : vector<2x128xf32> to vector<2x32xf32>
    %559 = arith.negf %558 : vector<2x32xf32>
    %560 = math.exp %559 : vector<2x32xf32>
    %cst_141 = arith.constant 1.000000e+00 : f32
    %561 = vector.broadcast %cst_141 : f32 to vector<2x32xf32>
    %562 = arith.addf %561, %560 : vector<2x32xf32>
    %563 = arith.divf %561, %562 : vector<2x32xf32>
    %564 = vector.extract_strided_slice %532 {offsets = [0, 32], sizes = [2, 32], strides = [1, 1]} : vector<2x128xf32> to vector<2x32xf32>
    %565 = arith.negf %564 : vector<2x32xf32>
    %566 = math.exp %565 : vector<2x32xf32>
    %cst_142 = arith.constant 1.000000e+00 : f32
    %567 = vector.broadcast %cst_142 : f32 to vector<2x32xf32>
    %568 = arith.addf %567, %566 : vector<2x32xf32>
    %569 = arith.divf %567, %568 : vector<2x32xf32>
    %570 = vector.extract_strided_slice %532 {offsets = [0, 64], sizes = [2, 32], strides = [1, 1]} : vector<2x128xf32> to vector<2x32xf32>
    %571 = math.tanh %570 : vector<2x32xf32>
    %572 = vector.extract_strided_slice %532 {offsets = [0, 96], sizes = [2, 32], strides = [1, 1]} : vector<2x128xf32> to vector<2x32xf32>
    %573 = arith.negf %572 : vector<2x32xf32>
    %574 = math.exp %573 : vector<2x32xf32>
    %cst_143 = arith.constant 1.000000e+00 : f32
    %575 = vector.broadcast %cst_143 : f32 to vector<2x32xf32>
    %576 = arith.addf %575, %574 : vector<2x32xf32>
    %577 = arith.divf %575, %576 : vector<2x32xf32>
    %578 = arith.mulf %569, %507 : vector<2x32xf32>
    %579 = arith.mulf %563, %571 : vector<2x32xf32>
    %580 = arith.addf %578, %579 : vector<2x32xf32>
    %581 = math.tanh %580 : vector<2x32xf32>
    %582 = arith.mulf %577, %581 : vector<2x32xf32>
    %583 = arith.truncf %557 : vector<2x32xf32> to vector<2x32xbf16>
    %584 = arith.index_cast %c7_i32_130 : i32 to index
    %c0_144 = arith.constant 0 : index
    %c0_145 = arith.constant 0 : index
    %585 = vector.load %arg5[%584, %c0_144, %c0_145] : memref<8x2x32xbf16, #tpu.memory_space<vmem>>, vector<1x2x32xbf16>
    %586 = vector.shape_cast %585 : vector<1x2x32xbf16> to vector<2x32xbf16>
    %587 = vector.shape_cast %583 : vector<2x32xbf16> to vector<1x2x32xbf16>
    tpu.vector_store %arg5[%584, %c0_144, %c0_145], %587 {strides = array<i32>} : memref<8x2x32xbf16, #tpu.memory_space<vmem>>, vector<1x2x32xbf16>,
    %588 = arith.truncf %582 : vector<2x32xf32> to vector<2x32xbf16>
    %589 = arith.index_cast %520 : i32 to index
    %c0_146 = arith.constant 0 : index
    %c0_147 = arith.constant 0 : index
    %590 = vector.load %arg6[%589, %c0_146, %c0_147] : memref<8x2x32xbf16, #tpu.memory_space<vmem>>, vector<1x2x32xbf16>
    %591 = vector.shape_cast %590 : vector<1x2x32xbf16> to vector<2x32xbf16>
    %592 = vector.shape_cast %588 : vector<2x32xbf16> to vector<1x2x32xbf16>
    tpu.vector_store %arg6[%589, %c0_146, %c0_147], %592 {strides = array<i32>} : memref<8x2x32xbf16, #tpu.memory_space<vmem>>, vector<1x2x32xbf16>,
    %c8_i32 = arith.constant 8 : i32
    %c0_148 = arith.constant 0 : index
    %c0_149 = arith.constant 0 : index
    %593 = vector.load %arg7[%c0_148, %c0_149] : memref<2x32xf32, #tpu.memory_space<vmem>>, vector<2x32xf32>
    tpu.vector_store %arg7[%c0_148, %c0_149], %557 {strides = array<i32>} : memref<2x32xf32, #tpu.memory_space<vmem>>, vector<2x32xf32>,
    %c0_150 = arith.constant 0 : index
    %c0_151 = arith.constant 0 : index
    %594 = vector.load %arg8[%c0_150, %c0_151] : memref<2x32xf32, #tpu.memory_space<vmem>>, vector<2x32xf32>
    tpu.vector_store %arg8[%c0_150, %c0_151], %555 {strides = array<i32>} : memref<2x32xf32, #tpu.memory_space<vmem>>, vector<2x32xf32>,
    %c0_152 = arith.constant 0 : index
    %c0_153 = arith.constant 0 : index
    %595 = vector.load %arg9[%c0_152, %c0_153] : memref<2x32xf32, #tpu.memory_space<vmem>>, vector<2x32xf32>
    tpu.vector_store %arg9[%c0_152, %c0_153], %582 {strides = array<i32>} : memref<2x32xf32, #tpu.memory_space<vmem>>, vector<2x32xf32>,
    %c0_154 = arith.constant 0 : index
    %c0_155 = arith.constant 0 : index
    %596 = vector.load %arg10[%c0_154, %c0_155] : memref<2x32xf32, #tpu.memory_space<vmem>>, vector<2x32xf32>
    tpu.vector_store %arg10[%c0_154, %c0_155], %580 {strides = array<i32>} : memref<2x32xf32, #tpu.memory_space<vmem>>, vector<2x32xf32>,
    return
  }
  func.func @transform_0(%arg0: i32) -> (i32, i32, i32) {
    %c0_i32 = arith.constant 0 : i32
    %c0_i32_0 = arith.constant 0 : i32
    %c0_i32_1 = arith.constant 0 : i32
    return %arg0, %c0_i32, %c0_i32_0 : i32, i32, i32
  }
  func.func @transform_1(%arg0: i32) -> (i32, i32, i32) {
    %c0_i32 = arith.constant 0 : i32
    %0 = arith.subi %c0_i32, %arg0 : i32
    %c0_i32_0 = arith.constant 0 : i32
    %c0_i32_1 = arith.constant 0 : i32
    %c0_i32_2 = arith.constant 0 : i32
    return %0, %c0_i32_0, %c0_i32_1 : i32, i32, i32
  }
  func.func @transform_2(%arg0: i32) -> (i32, i32) {
    %c0_i32 = arith.constant 0 : i32
    %c0_i32_0 = arith.constant 0 : i32
    %c0_i32_1 = arith.constant 0 : i32
    return %c0_i32, %c0_i32_0 : i32, i32
  }
  func.func @transform_3(%arg0: i32) -> (i32, i32) {
    %c0_i32 = arith.constant 0 : i32
    %c0_i32_0 = arith.constant 0 : i32
    %c0_i32_1 = arith.constant 0 : i32
    return %c0_i32, %c0_i32_0 : i32, i32
  }
  func.func @transform_4(%arg0: i32) -> (i32, i32, i32) {
    %c0_i32 = arith.constant 0 : i32
    %c0_i32_0 = arith.constant 0 : i32
    %c0_i32_1 = arith.constant 0 : i32
    return %arg0, %c0_i32, %c0_i32_0 : i32, i32, i32
  }
  func.func @transform_5(%arg0: i32) -> (i32, i32, i32) {
    %c0_i32 = arith.constant 0 : i32
    %0 = arith.subi %c0_i32, %arg0 : i32
    %c0_i32_0 = arith.constant 0 : i32
    %c0_i32_1 = arith.constant 0 : i32
    %c0_i32_2 = arith.constant 0 : i32
    return %0, %c0_i32_0, %c0_i32_1 : i32, i32, i32
  }
}

module attributes {stable_mosaic.version = 11 : i64} {
  func.func @_proj_deep_kernel(%arg0: i32, %arg1: memref<16x32xbf16, #tpu.memory_space<vmem>>, %arg2: memref<16x32xbf16, #tpu.memory_space<vmem>>, %arg3: memref<32x128xbf16, #tpu.memory_space<vmem>>, %arg4: memref<32x128xbf16, #tpu.memory_space<vmem>>, %arg5: memref<32x128xbf16, #tpu.memory_space<vmem>>, %arg6: memref<32x128xbf16, #tpu.memory_space<vmem>>, %arg7: memref<1x128xf32, #tpu.memory_space<vmem>>, %arg8: memref<1x128xf32, #tpu.memory_space<vmem>>, %arg9: memref<16x128xf32, #tpu.memory_space<vmem>>, %arg10: memref<16x128xf32, #tpu.memory_space<vmem>>) attributes {dimension_semantics = [#tpu.dimension_semantics<parallel>], iteration_bounds = array<i64: 1>, scalar_prefetch = 0 : i64, scratch_operands = 0 : i64, tpu.core_type = #tpu.core_type<tc>, window_params = [{transform_indices = @transform_0, window_bounds = array<i64: 16, 32>}, {transform_indices = @transform_1, window_bounds = array<i64: 16, 32>}, {pipeline_mode = #tpu.pipeline_mode<synchronous>, transform_indices = @transform_2, window_bounds = array<i64: 32, 128>}, {pipeline_mode = #tpu.pipeline_mode<synchronous>, transform_indices = @transform_3, window_bounds = array<i64: 32, 128>}, {pipeline_mode = #tpu.pipeline_mode<synchronous>, transform_indices = @transform_4, window_bounds = array<i64: 32, 128>}, {pipeline_mode = #tpu.pipeline_mode<synchronous>, transform_indices = @transform_5, window_bounds = array<i64: 32, 128>}, {pipeline_mode = #tpu.pipeline_mode<synchronous>, transform_indices = @transform_6, window_bounds = array<i64: 1, 128>}, {pipeline_mode = #tpu.pipeline_mode<synchronous>, transform_indices = @transform_7, window_bounds = array<i64: 1, 128>}, {transform_indices = @transform_8, window_bounds = array<i64: 16, 128>}, {transform_indices = @transform_9, window_bounds = array<i64: 16, 128>}]} {
    %c0 = arith.constant 0 : index
    %c0_0 = arith.constant 0 : index
    %0 = vector.load %arg1[%c0, %c0_0] : memref<16x32xbf16, #tpu.memory_space<vmem>>, vector<16x32xbf16>
    %c0_1 = arith.constant 0 : index
    %c0_2 = arith.constant 0 : index
    %1 = vector.load %arg2[%c0_1, %c0_2] : memref<16x32xbf16, #tpu.memory_space<vmem>>, vector<16x32xbf16>
    %c0_3 = arith.constant 0 : index
    %c0_4 = arith.constant 0 : index
    %2 = vector.load %arg3[%c0_3, %c0_4] : memref<32x128xbf16, #tpu.memory_space<vmem>>, vector<32x128xbf16>
    %cst = arith.constant dense<0.000000e+00> : vector<16x128xf32>
    %3 = tpu.matmul %0, %2, %cst {dimension_numbers = #tpu.dot_dimension_numbers<[1], [0], [0], [1], [0, 0, 1, 1], [], []>} : vector<16x32xbf16>, vector<32x128xbf16>, vector<16x128xf32> -> vector<16x128xf32>
    %c0_5 = arith.constant 0 : index
    %c0_6 = arith.constant 0 : index
    %4 = vector.load %arg4[%c0_5, %c0_6] : memref<32x128xbf16, #tpu.memory_space<vmem>>, vector<32x128xbf16>
    %cst_7 = arith.constant dense<0.000000e+00> : vector<16x128xf32>
    %5 = tpu.matmul %1, %4, %cst_7 {dimension_numbers = #tpu.dot_dimension_numbers<[1], [0], [0], [1], [0, 0, 1, 1], [], []>} : vector<16x32xbf16>, vector<32x128xbf16>, vector<16x128xf32> -> vector<16x128xf32>
    %6 = arith.addf %3, %5 : vector<16x128xf32>
    %c0_8 = arith.constant 0 : index
    %c0_9 = arith.constant 0 : index
    %7 = vector.load %arg7[%c0_8, %c0_9] : memref<1x128xf32, #tpu.memory_space<vmem>>, vector<1x128xf32>
    %8 = vector.broadcast %7 : vector<1x128xf32> to vector<16x128xf32>
    %9 = arith.addf %6, %8 : vector<16x128xf32>
    %c0_10 = arith.constant 0 : index
    %c0_11 = arith.constant 0 : index
    %10 = vector.load %arg9[%c0_10, %c0_11] : memref<16x128xf32, #tpu.memory_space<vmem>>, vector<16x128xf32>
    tpu.vector_store %arg9[%c0_10, %c0_11], %9 {strides = array<i32>} : memref<16x128xf32, #tpu.memory_space<vmem>>, vector<16x128xf32>,
    %c0_12 = arith.constant 0 : index
    %c0_13 = arith.constant 0 : index
    %11 = vector.load %arg5[%c0_12, %c0_13] : memref<32x128xbf16, #tpu.memory_space<vmem>>, vector<32x128xbf16>
    %cst_14 = arith.constant dense<0.000000e+00> : vector<16x128xf32>
    %12 = tpu.matmul %0, %11, %cst_14 {dimension_numbers = #tpu.dot_dimension_numbers<[1], [0], [0], [1], [0, 0, 1, 1], [], []>} : vector<16x32xbf16>, vector<32x128xbf16>, vector<16x128xf32> -> vector<16x128xf32>
    %c0_15 = arith.constant 0 : index
    %c0_16 = arith.constant 0 : index
    %13 = vector.load %arg6[%c0_15, %c0_16] : memref<32x128xbf16, #tpu.memory_space<vmem>>, vector<32x128xbf16>
    %cst_17 = arith.constant dense<0.000000e+00> : vector<16x128xf32>
    %14 = tpu.matmul %1, %13, %cst_17 {dimension_numbers = #tpu.dot_dimension_numbers<[1], [0], [0], [1], [0, 0, 1, 1], [], []>} : vector<16x32xbf16>, vector<32x128xbf16>, vector<16x128xf32> -> vector<16x128xf32>
    %15 = arith.addf %12, %14 : vector<16x128xf32>
    %c0_18 = arith.constant 0 : index
    %c0_19 = arith.constant 0 : index
    %16 = vector.load %arg8[%c0_18, %c0_19] : memref<1x128xf32, #tpu.memory_space<vmem>>, vector<1x128xf32>
    %17 = vector.broadcast %16 : vector<1x128xf32> to vector<16x128xf32>
    %18 = arith.addf %15, %17 : vector<16x128xf32>
    %c0_20 = arith.constant 0 : index
    %c0_21 = arith.constant 0 : index
    %19 = vector.load %arg10[%c0_20, %c0_21] : memref<16x128xf32, #tpu.memory_space<vmem>>, vector<16x128xf32>
    tpu.vector_store %arg10[%c0_20, %c0_21], %18 {strides = array<i32>} : memref<16x128xf32, #tpu.memory_space<vmem>>, vector<16x128xf32>,
    return
  }
  func.func @transform_0(%arg0: i32) -> (i32, i32) {
    %c0_i32 = arith.constant 0 : i32
    %c0_i32_0 = arith.constant 0 : i32
    return %arg0, %c0_i32 : i32, i32
  }
  func.func @transform_1(%arg0: i32) -> (i32, i32) {
    %c0_i32 = arith.constant 0 : i32
    %c0_i32_0 = arith.constant 0 : i32
    return %arg0, %c0_i32 : i32, i32
  }
  func.func @transform_2(%arg0: i32) -> (i32, i32) {
    %c0_i32 = arith.constant 0 : i32
    %c0_i32_0 = arith.constant 0 : i32
    %c0_i32_1 = arith.constant 0 : i32
    return %c0_i32, %c0_i32_0 : i32, i32
  }
  func.func @transform_3(%arg0: i32) -> (i32, i32) {
    %c0_i32 = arith.constant 0 : i32
    %c0_i32_0 = arith.constant 0 : i32
    %c0_i32_1 = arith.constant 0 : i32
    return %c0_i32, %c0_i32_0 : i32, i32
  }
  func.func @transform_4(%arg0: i32) -> (i32, i32) {
    %c0_i32 = arith.constant 0 : i32
    %c0_i32_0 = arith.constant 0 : i32
    %c0_i32_1 = arith.constant 0 : i32
    return %c0_i32, %c0_i32_0 : i32, i32
  }
  func.func @transform_5(%arg0: i32) -> (i32, i32) {
    %c0_i32 = arith.constant 0 : i32
    %c0_i32_0 = arith.constant 0 : i32
    %c0_i32_1 = arith.constant 0 : i32
    return %c0_i32, %c0_i32_0 : i32, i32
  }
  func.func @transform_6(%arg0: i32) -> (i32, i32) {
    %c0_i32 = arith.constant 0 : i32
    %c0_i32_0 = arith.constant 0 : i32
    %c0_i32_1 = arith.constant 0 : i32
    return %c0_i32, %c0_i32_0 : i32, i32
  }
  func.func @transform_7(%arg0: i32) -> (i32, i32) {
    %c0_i32 = arith.constant 0 : i32
    %c0_i32_0 = arith.constant 0 : i32
    %c0_i32_1 = arith.constant 0 : i32
    return %c0_i32, %c0_i32_0 : i32, i32
  }
  func.func @transform_8(%arg0: i32) -> (i32, i32) {
    %c0_i32 = arith.constant 0 : i32
    %c0_i32_0 = arith.constant 0 : i32
    return %arg0, %c0_i32 : i32, i32
  }
  func.func @transform_9(%arg0: i32) -> (i32, i32) {
    %c0_i32 = arith.constant 0 : i32
    %c0_i32_0 = arith.constant 0 : i32
    return %arg0, %c0_i32 : i32, i32
  }
}

module attributes {stable_mosaic.version = 11 : i64} {
  func.func @_bilstm_last_kernel(%arg0: i32, %arg1: memref<8x2x128xf32, #tpu.memory_space<vmem>>, %arg2: memref<2x128xf32, #tpu.memory_space<vmem>>, %arg3: memref<32x128xbf16, #tpu.memory_space<vmem>>, %arg4: memref<2x32xf32, #tpu.memory_space<vmem>>, %arg5: memref<2x32xf32, #tpu.memory_space<vmem>>, %arg6: memref<2x32xf32, #tpu.memory_space<vmem>>, %arg7: memref<2x32xf32, #tpu.memory_space<vmem>>) attributes {dimension_semantics = [#tpu.dimension_semantics<arbitrary>], iteration_bounds = array<i64: 1>, scalar_prefetch = 0 : i64, scratch_operands = 3 : i64, tpu.core_type = #tpu.core_type<tc>, window_params = [{transform_indices = @transform_0, window_bounds = array<i64: 8, 2, 128>}, {pipeline_mode = #tpu.pipeline_mode<synchronous>, transform_indices = @transform_1, window_bounds = array<i64: 2, 128>}, {pipeline_mode = #tpu.pipeline_mode<synchronous>, transform_indices = @transform_2, window_bounds = array<i64: 32, 128>}, {pipeline_mode = #tpu.pipeline_mode<synchronous>, transform_indices = @transform_3, window_bounds = array<i64: 2, 32>}]} {
    %c0_i32 = arith.constant 0 : i32
    %0 = arith.cmpi eq, %arg0, %c0_i32 : i32
    %1 = arith.extui %0 : i1 to i32
    %c0_i32_0 = arith.constant 0 : i32
    %2 = arith.cmpi ne, %1, %c0_i32_0 : i32
    scf.if %2 {
      %cst_60 = arith.constant 0.000000e+00 : f32
      %259 = vector.broadcast %cst_60 : f32 to vector<2x32xf32>
      %c0_61 = arith.constant 0 : index
      %c0_62 = arith.constant 0 : index
      %260 = vector.load %arg5[%c0_61, %c0_62] : memref<2x32xf32, #tpu.memory_space<vmem>>, vector<2x32xf32>
      tpu.vector_store %arg5[%c0_61, %c0_62], %259 {strides = array<i32>} : memref<2x32xf32, #tpu.memory_space<vmem>>, vector<2x32xf32>,
      %cst_63 = arith.constant 0.000000e+00 : f32
      %261 = vector.broadcast %cst_63 : f32 to vector<2x32xf32>
      %c0_64 = arith.constant 0 : index
      %c0_65 = arith.constant 0 : index
      %262 = vector.load %arg6[%c0_64, %c0_65] : memref<2x32xf32, #tpu.memory_space<vmem>>, vector<2x32xf32>
      tpu.vector_store %arg6[%c0_64, %c0_65], %261 {strides = array<i32>} : memref<2x32xf32, #tpu.memory_space<vmem>>, vector<2x32xf32>,
      %c0_66 = arith.constant 0 : index
      %c0_67 = arith.constant 0 : index
      %263 = vector.load %arg2[%c0_66, %c0_67] : memref<2x128xf32, #tpu.memory_space<vmem>>, vector<2x128xf32>
      %264 = vector.extract_strided_slice %263 {offsets = [0, 0], sizes = [2, 32], strides = [1, 1]} : vector<2x128xf32> to vector<2x32xf32>
      %265 = arith.negf %264 : vector<2x32xf32>
      %266 = math.exp %265 : vector<2x32xf32>
      %cst_68 = arith.constant 1.000000e+00 : f32
      %267 = vector.broadcast %cst_68 : f32 to vector<2x32xf32>
      %268 = arith.addf %267, %266 : vector<2x32xf32>
      %269 = arith.divf %267, %268 : vector<2x32xf32>
      %270 = vector.extract_strided_slice %263 {offsets = [0, 64], sizes = [2, 32], strides = [1, 1]} : vector<2x128xf32> to vector<2x32xf32>
      %271 = math.tanh %270 : vector<2x32xf32>
      %272 = vector.extract_strided_slice %263 {offsets = [0, 96], sizes = [2, 32], strides = [1, 1]} : vector<2x128xf32> to vector<2x32xf32>
      %273 = arith.negf %272 : vector<2x32xf32>
      %274 = math.exp %273 : vector<2x32xf32>
      %cst_69 = arith.constant 1.000000e+00 : f32
      %275 = vector.broadcast %cst_69 : f32 to vector<2x32xf32>
      %276 = arith.addf %275, %274 : vector<2x32xf32>
      %277 = arith.divf %275, %276 : vector<2x32xf32>
      %278 = arith.mulf %269, %271 : vector<2x32xf32>
      %279 = math.tanh %278 : vector<2x32xf32>
      %280 = arith.mulf %277, %279 : vector<2x32xf32>
      %c0_70 = arith.constant 0 : index
      %c0_71 = arith.constant 0 : index
      %281 = vector.load %arg7[%c0_70, %c0_71] : memref<2x32xf32, #tpu.memory_space<vmem>>, vector<2x32xf32>
      tpu.vector_store %arg7[%c0_70, %c0_71], %280 {strides = array<i32>} : memref<2x32xf32, #tpu.memory_space<vmem>>, vector<2x32xf32>,
    } else {
    }
    %c0 = arith.constant 0 : index
    %c0_1 = arith.constant 0 : index
    %3 = vector.load %arg3[%c0, %c0_1] : memref<32x128xbf16, #tpu.memory_space<vmem>>, vector<32x128xbf16>
    %c0_2 = arith.constant 0 : index
    %c0_3 = arith.constant 0 : index
    %4 = vector.load %arg5[%c0_2, %c0_3] : memref<2x32xf32, #tpu.memory_space<vmem>>, vector<2x32xf32>
    %c0_4 = arith.constant 0 : index
    %c0_5 = arith.constant 0 : index
    %5 = vector.load %arg6[%c0_4, %c0_5] : memref<2x32xf32, #tpu.memory_space<vmem>>, vector<2x32xf32>
    %c0_i32_6 = arith.constant 0 : i32
    %6 = arith.index_cast %c0_i32_6 : i32 to index
    %c0_7 = arith.constant 0 : index
    %c0_8 = arith.constant 0 : index
    %7 = vector.load %arg1[%6, %c0_7, %c0_8] : memref<8x2x128xf32, #tpu.memory_space<vmem>>, vector<1x2x128xf32>
    %8 = vector.shape_cast %7 : vector<1x2x128xf32> to vector<2x128xf32>
    %9 = arith.truncf %4 : vector<2x32xf32> to vector<2x32xbf16>
    %cst = arith.constant dense<0.000000e+00> : vector<2x128xf32>
    %10 = tpu.matmul %9, %3, %cst {dimension_numbers = #tpu.dot_dimension_numbers<[1], [0], [0], [1], [0, 0, 1, 1], [], []>} : vector<2x32xbf16>, vector<32x128xbf16>, vector<2x128xf32> -> vector<2x128xf32>
    %11 = arith.addf %8, %10 : vector<2x128xf32>
    %12 = vector.extract_strided_slice %11 {offsets = [0, 0], sizes = [2, 32], strides = [1, 1]} : vector<2x128xf32> to vector<2x32xf32>
    %13 = arith.negf %12 : vector<2x32xf32>
    %14 = math.exp %13 : vector<2x32xf32>
    %cst_9 = arith.constant 1.000000e+00 : f32
    %15 = vector.broadcast %cst_9 : f32 to vector<2x32xf32>
    %16 = arith.addf %15, %14 : vector<2x32xf32>
    %17 = arith.divf %15, %16 : vector<2x32xf32>
    %18 = vector.extract_strided_slice %11 {offsets = [0, 32], sizes = [2, 32], strides = [1, 1]} : vector<2x128xf32> to vector<2x32xf32>
    %19 = arith.negf %18 : vector<2x32xf32>
    %20 = math.exp %19 : vector<2x32xf32>
    %cst_10 = arith.constant 1.000000e+00 : f32
    %21 = vector.broadcast %cst_10 : f32 to vector<2x32xf32>
    %22 = arith.addf %21, %20 : vector<2x32xf32>
    %23 = arith.divf %21, %22 : vector<2x32xf32>
    %24 = vector.extract_strided_slice %11 {offsets = [0, 64], sizes = [2, 32], strides = [1, 1]} : vector<2x128xf32> to vector<2x32xf32>
    %25 = math.tanh %24 : vector<2x32xf32>
    %26 = vector.extract_strided_slice %11 {offsets = [0, 96], sizes = [2, 32], strides = [1, 1]} : vector<2x128xf32> to vector<2x32xf32>
    %27 = arith.negf %26 : vector<2x32xf32>
    %28 = math.exp %27 : vector<2x32xf32>
    %cst_11 = arith.constant 1.000000e+00 : f32
    %29 = vector.broadcast %cst_11 : f32 to vector<2x32xf32>
    %30 = arith.addf %29, %28 : vector<2x32xf32>
    %31 = arith.divf %29, %30 : vector<2x32xf32>
    %32 = arith.mulf %23, %5 : vector<2x32xf32>
    %33 = arith.mulf %17, %25 : vector<2x32xf32>
    %34 = arith.addf %32, %33 : vector<2x32xf32>
    %35 = math.tanh %34 : vector<2x32xf32>
    %36 = arith.mulf %31, %35 : vector<2x32xf32>
    %c1_i32 = arith.constant 1 : i32
    %37 = arith.index_cast %c1_i32 : i32 to index
    %c0_12 = arith.constant 0 : index
    %c0_13 = arith.constant 0 : index
    %38 = vector.load %arg1[%37, %c0_12, %c0_13] : memref<8x2x128xf32, #tpu.memory_space<vmem>>, vector<1x2x128xf32>
    %39 = vector.shape_cast %38 : vector<1x2x128xf32> to vector<2x128xf32>
    %40 = arith.truncf %36 : vector<2x32xf32> to vector<2x32xbf16>
    %cst_14 = arith.constant dense<0.000000e+00> : vector<2x128xf32>
    %41 = tpu.matmul %40, %3, %cst_14 {dimension_numbers = #tpu.dot_dimension_numbers<[1], [0], [0], [1], [0, 0, 1, 1], [], []>} : vector<2x32xbf16>, vector<32x128xbf16>, vector<2x128xf32> -> vector<2x128xf32>
    %42 = arith.addf %39, %41 : vector<2x128xf32>
    %43 = vector.extract_strided_slice %42 {offsets = [0, 0], sizes = [2, 32], strides = [1, 1]} : vector<2x128xf32> to vector<2x32xf32>
    %44 = arith.negf %43 : vector<2x32xf32>
    %45 = math.exp %44 : vector<2x32xf32>
    %cst_15 = arith.constant 1.000000e+00 : f32
    %46 = vector.broadcast %cst_15 : f32 to vector<2x32xf32>
    %47 = arith.addf %46, %45 : vector<2x32xf32>
    %48 = arith.divf %46, %47 : vector<2x32xf32>
    %49 = vector.extract_strided_slice %42 {offsets = [0, 32], sizes = [2, 32], strides = [1, 1]} : vector<2x128xf32> to vector<2x32xf32>
    %50 = arith.negf %49 : vector<2x32xf32>
    %51 = math.exp %50 : vector<2x32xf32>
    %cst_16 = arith.constant 1.000000e+00 : f32
    %52 = vector.broadcast %cst_16 : f32 to vector<2x32xf32>
    %53 = arith.addf %52, %51 : vector<2x32xf32>
    %54 = arith.divf %52, %53 : vector<2x32xf32>
    %55 = vector.extract_strided_slice %42 {offsets = [0, 64], sizes = [2, 32], strides = [1, 1]} : vector<2x128xf32> to vector<2x32xf32>
    %56 = math.tanh %55 : vector<2x32xf32>
    %57 = vector.extract_strided_slice %42 {offsets = [0, 96], sizes = [2, 32], strides = [1, 1]} : vector<2x128xf32> to vector<2x32xf32>
    %58 = arith.negf %57 : vector<2x32xf32>
    %59 = math.exp %58 : vector<2x32xf32>
    %cst_17 = arith.constant 1.000000e+00 : f32
    %60 = vector.broadcast %cst_17 : f32 to vector<2x32xf32>
    %61 = arith.addf %60, %59 : vector<2x32xf32>
    %62 = arith.divf %60, %61 : vector<2x32xf32>
    %63 = arith.mulf %54, %34 : vector<2x32xf32>
    %64 = arith.mulf %48, %56 : vector<2x32xf32>
    %65 = arith.addf %63, %64 : vector<2x32xf32>
    %66 = math.tanh %65 : vector<2x32xf32>
    %67 = arith.mulf %62, %66 : vector<2x32xf32>
    %c2_i32 = arith.constant 2 : i32
    %68 = arith.index_cast %c2_i32 : i32 to index
    %c0_18 = arith.constant 0 : index
    %c0_19 = arith.constant 0 : index
    %69 = vector.load %arg1[%68, %c0_18, %c0_19] : memref<8x2x128xf32, #tpu.memory_space<vmem>>, vector<1x2x128xf32>
    %70 = vector.shape_cast %69 : vector<1x2x128xf32> to vector<2x128xf32>
    %71 = arith.truncf %67 : vector<2x32xf32> to vector<2x32xbf16>
    %cst_20 = arith.constant dense<0.000000e+00> : vector<2x128xf32>
    %72 = tpu.matmul %71, %3, %cst_20 {dimension_numbers = #tpu.dot_dimension_numbers<[1], [0], [0], [1], [0, 0, 1, 1], [], []>} : vector<2x32xbf16>, vector<32x128xbf16>, vector<2x128xf32> -> vector<2x128xf32>
    %73 = arith.addf %70, %72 : vector<2x128xf32>
    %74 = vector.extract_strided_slice %73 {offsets = [0, 0], sizes = [2, 32], strides = [1, 1]} : vector<2x128xf32> to vector<2x32xf32>
    %75 = arith.negf %74 : vector<2x32xf32>
    %76 = math.exp %75 : vector<2x32xf32>
    %cst_21 = arith.constant 1.000000e+00 : f32
    %77 = vector.broadcast %cst_21 : f32 to vector<2x32xf32>
    %78 = arith.addf %77, %76 : vector<2x32xf32>
    %79 = arith.divf %77, %78 : vector<2x32xf32>
    %80 = vector.extract_strided_slice %73 {offsets = [0, 32], sizes = [2, 32], strides = [1, 1]} : vector<2x128xf32> to vector<2x32xf32>
    %81 = arith.negf %80 : vector<2x32xf32>
    %82 = math.exp %81 : vector<2x32xf32>
    %cst_22 = arith.constant 1.000000e+00 : f32
    %83 = vector.broadcast %cst_22 : f32 to vector<2x32xf32>
    %84 = arith.addf %83, %82 : vector<2x32xf32>
    %85 = arith.divf %83, %84 : vector<2x32xf32>
    %86 = vector.extract_strided_slice %73 {offsets = [0, 64], sizes = [2, 32], strides = [1, 1]} : vector<2x128xf32> to vector<2x32xf32>
    %87 = math.tanh %86 : vector<2x32xf32>
    %88 = vector.extract_strided_slice %73 {offsets = [0, 96], sizes = [2, 32], strides = [1, 1]} : vector<2x128xf32> to vector<2x32xf32>
    %89 = arith.negf %88 : vector<2x32xf32>
    %90 = math.exp %89 : vector<2x32xf32>
    %cst_23 = arith.constant 1.000000e+00 : f32
    %91 = vector.broadcast %cst_23 : f32 to vector<2x32xf32>
    %92 = arith.addf %91, %90 : vector<2x32xf32>
    %93 = arith.divf %91, %92 : vector<2x32xf32>
    %94 = arith.mulf %85, %65 : vector<2x32xf32>
    %95 = arith.mulf %79, %87 : vector<2x32xf32>
    %96 = arith.addf %94, %95 : vector<2x32xf32>
    %97 = math.tanh %96 : vector<2x32xf32>
    %98 = arith.mulf %93, %97 : vector<2x32xf32>
    %c3_i32 = arith.constant 3 : i32
    %99 = arith.index_cast %c3_i32 : i32 to index
    %c0_24 = arith.constant 0 : index
    %c0_25 = arith.constant 0 : index
    %100 = vector.load %arg1[%99, %c0_24, %c0_25] : memref<8x2x128xf32, #tpu.memory_space<vmem>>, vector<1x2x128xf32>
    %101 = vector.shape_cast %100 : vector<1x2x128xf32> to vector<2x128xf32>
    %102 = arith.truncf %98 : vector<2x32xf32> to vector<2x32xbf16>
    %cst_26 = arith.constant dense<0.000000e+00> : vector<2x128xf32>
    %103 = tpu.matmul %102, %3, %cst_26 {dimension_numbers = #tpu.dot_dimension_numbers<[1], [0], [0], [1], [0, 0, 1, 1], [], []>} : vector<2x32xbf16>, vector<32x128xbf16>, vector<2x128xf32> -> vector<2x128xf32>
    %104 = arith.addf %101, %103 : vector<2x128xf32>
    %105 = vector.extract_strided_slice %104 {offsets = [0, 0], sizes = [2, 32], strides = [1, 1]} : vector<2x128xf32> to vector<2x32xf32>
    %106 = arith.negf %105 : vector<2x32xf32>
    %107 = math.exp %106 : vector<2x32xf32>
    %cst_27 = arith.constant 1.000000e+00 : f32
    %108 = vector.broadcast %cst_27 : f32 to vector<2x32xf32>
    %109 = arith.addf %108, %107 : vector<2x32xf32>
    %110 = arith.divf %108, %109 : vector<2x32xf32>
    %111 = vector.extract_strided_slice %104 {offsets = [0, 32], sizes = [2, 32], strides = [1, 1]} : vector<2x128xf32> to vector<2x32xf32>
    %112 = arith.negf %111 : vector<2x32xf32>
    %113 = math.exp %112 : vector<2x32xf32>
    %cst_28 = arith.constant 1.000000e+00 : f32
    %114 = vector.broadcast %cst_28 : f32 to vector<2x32xf32>
    %115 = arith.addf %114, %113 : vector<2x32xf32>
    %116 = arith.divf %114, %115 : vector<2x32xf32>
    %117 = vector.extract_strided_slice %104 {offsets = [0, 64], sizes = [2, 32], strides = [1, 1]} : vector<2x128xf32> to vector<2x32xf32>
    %118 = math.tanh %117 : vector<2x32xf32>
    %119 = vector.extract_strided_slice %104 {offsets = [0, 96], sizes = [2, 32], strides = [1, 1]} : vector<2x128xf32> to vector<2x32xf32>
    %120 = arith.negf %119 : vector<2x32xf32>
    %121 = math.exp %120 : vector<2x32xf32>
    %cst_29 = arith.constant 1.000000e+00 : f32
    %122 = vector.broadcast %cst_29 : f32 to vector<2x32xf32>
    %123 = arith.addf %122, %121 : vector<2x32xf32>
    %124 = arith.divf %122, %123 : vector<2x32xf32>
    %125 = arith.mulf %116, %96 : vector<2x32xf32>
    %126 = arith.mulf %110, %118 : vector<2x32xf32>
    %127 = arith.addf %125, %126 : vector<2x32xf32>
    %128 = math.tanh %127 : vector<2x32xf32>
    %129 = arith.mulf %124, %128 : vector<2x32xf32>
    %c4_i32 = arith.constant 4 : i32
    %130 = arith.index_cast %c4_i32 : i32 to index
    %c0_30 = arith.constant 0 : index
    %c0_31 = arith.constant 0 : index
    %131 = vector.load %arg1[%130, %c0_30, %c0_31] : memref<8x2x128xf32, #tpu.memory_space<vmem>>, vector<1x2x128xf32>
    %132 = vector.shape_cast %131 : vector<1x2x128xf32> to vector<2x128xf32>
    %133 = arith.truncf %129 : vector<2x32xf32> to vector<2x32xbf16>
    %cst_32 = arith.constant dense<0.000000e+00> : vector<2x128xf32>
    %134 = tpu.matmul %133, %3, %cst_32 {dimension_numbers = #tpu.dot_dimension_numbers<[1], [0], [0], [1], [0, 0, 1, 1], [], []>} : vector<2x32xbf16>, vector<32x128xbf16>, vector<2x128xf32> -> vector<2x128xf32>
    %135 = arith.addf %132, %134 : vector<2x128xf32>
    %136 = vector.extract_strided_slice %135 {offsets = [0, 0], sizes = [2, 32], strides = [1, 1]} : vector<2x128xf32> to vector<2x32xf32>
    %137 = arith.negf %136 : vector<2x32xf32>
    %138 = math.exp %137 : vector<2x32xf32>
    %cst_33 = arith.constant 1.000000e+00 : f32
    %139 = vector.broadcast %cst_33 : f32 to vector<2x32xf32>
    %140 = arith.addf %139, %138 : vector<2x32xf32>
    %141 = arith.divf %139, %140 : vector<2x32xf32>
    %142 = vector.extract_strided_slice %135 {offsets = [0, 32], sizes = [2, 32], strides = [1, 1]} : vector<2x128xf32> to vector<2x32xf32>
    %143 = arith.negf %142 : vector<2x32xf32>
    %144 = math.exp %143 : vector<2x32xf32>
    %cst_34 = arith.constant 1.000000e+00 : f32
    %145 = vector.broadcast %cst_34 : f32 to vector<2x32xf32>
    %146 = arith.addf %145, %144 : vector<2x32xf32>
    %147 = arith.divf %145, %146 : vector<2x32xf32>
    %148 = vector.extract_strided_slice %135 {offsets = [0, 64], sizes = [2, 32], strides = [1, 1]} : vector<2x128xf32> to vector<2x32xf32>
    %149 = math.tanh %148 : vector<2x32xf32>
    %150 = vector.extract_strided_slice %135 {offsets = [0, 96], sizes = [2, 32], strides = [1, 1]} : vector<2x128xf32> to vector<2x32xf32>
    %151 = arith.negf %150 : vector<2x32xf32>
    %152 = math.exp %151 : vector<2x32xf32>
    %cst_35 = arith.constant 1.000000e+00 : f32
    %153 = vector.broadcast %cst_35 : f32 to vector<2x32xf32>
    %154 = arith.addf %153, %152 : vector<2x32xf32>
    %155 = arith.divf %153, %154 : vector<2x32xf32>
    %156 = arith.mulf %147, %127 : vector<2x32xf32>
    %157 = arith.mulf %141, %149 : vector<2x32xf32>
    %158 = arith.addf %156, %157 : vector<2x32xf32>
    %159 = math.tanh %158 : vector<2x32xf32>
    %160 = arith.mulf %155, %159 : vector<2x32xf32>
    %c5_i32 = arith.constant 5 : i32
    %161 = arith.index_cast %c5_i32 : i32 to index
    %c0_36 = arith.constant 0 : index
    %c0_37 = arith.constant 0 : index
    %162 = vector.load %arg1[%161, %c0_36, %c0_37] : memref<8x2x128xf32, #tpu.memory_space<vmem>>, vector<1x2x128xf32>
    %163 = vector.shape_cast %162 : vector<1x2x128xf32> to vector<2x128xf32>
    %164 = arith.truncf %160 : vector<2x32xf32> to vector<2x32xbf16>
    %cst_38 = arith.constant dense<0.000000e+00> : vector<2x128xf32>
    %165 = tpu.matmul %164, %3, %cst_38 {dimension_numbers = #tpu.dot_dimension_numbers<[1], [0], [0], [1], [0, 0, 1, 1], [], []>} : vector<2x32xbf16>, vector<32x128xbf16>, vector<2x128xf32> -> vector<2x128xf32>
    %166 = arith.addf %163, %165 : vector<2x128xf32>
    %167 = vector.extract_strided_slice %166 {offsets = [0, 0], sizes = [2, 32], strides = [1, 1]} : vector<2x128xf32> to vector<2x32xf32>
    %168 = arith.negf %167 : vector<2x32xf32>
    %169 = math.exp %168 : vector<2x32xf32>
    %cst_39 = arith.constant 1.000000e+00 : f32
    %170 = vector.broadcast %cst_39 : f32 to vector<2x32xf32>
    %171 = arith.addf %170, %169 : vector<2x32xf32>
    %172 = arith.divf %170, %171 : vector<2x32xf32>
    %173 = vector.extract_strided_slice %166 {offsets = [0, 32], sizes = [2, 32], strides = [1, 1]} : vector<2x128xf32> to vector<2x32xf32>
    %174 = arith.negf %173 : vector<2x32xf32>
    %175 = math.exp %174 : vector<2x32xf32>
    %cst_40 = arith.constant 1.000000e+00 : f32
    %176 = vector.broadcast %cst_40 : f32 to vector<2x32xf32>
    %177 = arith.addf %176, %175 : vector<2x32xf32>
    %178 = arith.divf %176, %177 : vector<2x32xf32>
    %179 = vector.extract_strided_slice %166 {offsets = [0, 64], sizes = [2, 32], strides = [1, 1]} : vector<2x128xf32> to vector<2x32xf32>
    %180 = math.tanh %179 : vector<2x32xf32>
    %181 = vector.extract_strided_slice %166 {offsets = [0, 96], sizes = [2, 32], strides = [1, 1]} : vector<2x128xf32> to vector<2x32xf32>
    %182 = arith.negf %181 : vector<2x32xf32>
    %183 = math.exp %182 : vector<2x32xf32>
    %cst_41 = arith.constant 1.000000e+00 : f32
    %184 = vector.broadcast %cst_41 : f32 to vector<2x32xf32>
    %185 = arith.addf %184, %183 : vector<2x32xf32>
    %186 = arith.divf %184, %185 : vector<2x32xf32>
    %187 = arith.mulf %178, %158 : vector<2x32xf32>
    %188 = arith.mulf %172, %180 : vector<2x32xf32>
    %189 = arith.addf %187, %188 : vector<2x32xf32>
    %190 = math.tanh %189 : vector<2x32xf32>
    %191 = arith.mulf %186, %190 : vector<2x32xf32>
    %c6_i32 = arith.constant 6 : i32
    %192 = arith.index_cast %c6_i32 : i32 to index
    %c0_42 = arith.constant 0 : index
    %c0_43 = arith.constant 0 : index
    %193 = vector.load %arg1[%192, %c0_42, %c0_43] : memref<8x2x128xf32, #tpu.memory_space<vmem>>, vector<1x2x128xf32>
    %194 = vector.shape_cast %193 : vector<1x2x128xf32> to vector<2x128xf32>
    %195 = arith.truncf %191 : vector<2x32xf32> to vector<2x32xbf16>
    %cst_44 = arith.constant dense<0.000000e+00> : vector<2x128xf32>
    %196 = tpu.matmul %195, %3, %cst_44 {dimension_numbers = #tpu.dot_dimension_numbers<[1], [0], [0], [1], [0, 0, 1, 1], [], []>} : vector<2x32xbf16>, vector<32x128xbf16>, vector<2x128xf32> -> vector<2x128xf32>
    %197 = arith.addf %194, %196 : vector<2x128xf32>
    %198 = vector.extract_strided_slice %197 {offsets = [0, 0], sizes = [2, 32], strides = [1, 1]} : vector<2x128xf32> to vector<2x32xf32>
    %199 = arith.negf %198 : vector<2x32xf32>
    %200 = math.exp %199 : vector<2x32xf32>
    %cst_45 = arith.constant 1.000000e+00 : f32
    %201 = vector.broadcast %cst_45 : f32 to vector<2x32xf32>
    %202 = arith.addf %201, %200 : vector<2x32xf32>
    %203 = arith.divf %201, %202 : vector<2x32xf32>
    %204 = vector.extract_strided_slice %197 {offsets = [0, 32], sizes = [2, 32], strides = [1, 1]} : vector<2x128xf32> to vector<2x32xf32>
    %205 = arith.negf %204 : vector<2x32xf32>
    %206 = math.exp %205 : vector<2x32xf32>
    %cst_46 = arith.constant 1.000000e+00 : f32
    %207 = vector.broadcast %cst_46 : f32 to vector<2x32xf32>
    %208 = arith.addf %207, %206 : vector<2x32xf32>
    %209 = arith.divf %207, %208 : vector<2x32xf32>
    %210 = vector.extract_strided_slice %197 {offsets = [0, 64], sizes = [2, 32], strides = [1, 1]} : vector<2x128xf32> to vector<2x32xf32>
    %211 = math.tanh %210 : vector<2x32xf32>
    %212 = vector.extract_strided_slice %197 {offsets = [0, 96], sizes = [2, 32], strides = [1, 1]} : vector<2x128xf32> to vector<2x32xf32>
    %213 = arith.negf %212 : vector<2x32xf32>
    %214 = math.exp %213 : vector<2x32xf32>
    %cst_47 = arith.constant 1.000000e+00 : f32
    %215 = vector.broadcast %cst_47 : f32 to vector<2x32xf32>
    %216 = arith.addf %215, %214 : vector<2x32xf32>
    %217 = arith.divf %215, %216 : vector<2x32xf32>
    %218 = arith.mulf %209, %189 : vector<2x32xf32>
    %219 = arith.mulf %203, %211 : vector<2x32xf32>
    %220 = arith.addf %218, %219 : vector<2x32xf32>
    %221 = math.tanh %220 : vector<2x32xf32>
    %222 = arith.mulf %217, %221 : vector<2x32xf32>
    %c7_i32 = arith.constant 7 : i32
    %223 = arith.index_cast %c7_i32 : i32 to index
    %c0_48 = arith.constant 0 : index
    %c0_49 = arith.constant 0 : index
    %224 = vector.load %arg1[%223, %c0_48, %c0_49] : memref<8x2x128xf32, #tpu.memory_space<vmem>>, vector<1x2x128xf32>
    %225 = vector.shape_cast %224 : vector<1x2x128xf32> to vector<2x128xf32>
    %226 = arith.truncf %222 : vector<2x32xf32> to vector<2x32xbf16>
    %cst_50 = arith.constant dense<0.000000e+00> : vector<2x128xf32>
    %227 = tpu.matmul %226, %3, %cst_50 {dimension_numbers = #tpu.dot_dimension_numbers<[1], [0], [0], [1], [0, 0, 1, 1], [], []>} : vector<2x32xbf16>, vector<32x128xbf16>, vector<2x128xf32> -> vector<2x128xf32>
    %228 = arith.addf %225, %227 : vector<2x128xf32>
    %229 = vector.extract_strided_slice %228 {offsets = [0, 0], sizes = [2, 32], strides = [1, 1]} : vector<2x128xf32> to vector<2x32xf32>
    %230 = arith.negf %229 : vector<2x32xf32>
    %231 = math.exp %230 : vector<2x32xf32>
    %cst_51 = arith.constant 1.000000e+00 : f32
    %232 = vector.broadcast %cst_51 : f32 to vector<2x32xf32>
    %233 = arith.addf %232, %231 : vector<2x32xf32>
    %234 = arith.divf %232, %233 : vector<2x32xf32>
    %235 = vector.extract_strided_slice %228 {offsets = [0, 32], sizes = [2, 32], strides = [1, 1]} : vector<2x128xf32> to vector<2x32xf32>
    %236 = arith.negf %235 : vector<2x32xf32>
    %237 = math.exp %236 : vector<2x32xf32>
    %cst_52 = arith.constant 1.000000e+00 : f32
    %238 = vector.broadcast %cst_52 : f32 to vector<2x32xf32>
    %239 = arith.addf %238, %237 : vector<2x32xf32>
    %240 = arith.divf %238, %239 : vector<2x32xf32>
    %241 = vector.extract_strided_slice %228 {offsets = [0, 64], sizes = [2, 32], strides = [1, 1]} : vector<2x128xf32> to vector<2x32xf32>
    %242 = math.tanh %241 : vector<2x32xf32>
    %243 = vector.extract_strided_slice %228 {offsets = [0, 96], sizes = [2, 32], strides = [1, 1]} : vector<2x128xf32> to vector<2x32xf32>
    %244 = arith.negf %243 : vector<2x32xf32>
    %245 = math.exp %244 : vector<2x32xf32>
    %cst_53 = arith.constant 1.000000e+00 : f32
    %246 = vector.broadcast %cst_53 : f32 to vector<2x32xf32>
    %247 = arith.addf %246, %245 : vector<2x32xf32>
    %248 = arith.divf %246, %247 : vector<2x32xf32>
    %249 = arith.mulf %240, %220 : vector<2x32xf32>
    %250 = arith.mulf %234, %242 : vector<2x32xf32>
    %251 = arith.addf %249, %250 : vector<2x32xf32>
    %252 = math.tanh %251 : vector<2x32xf32>
    %253 = arith.mulf %248, %252 : vector<2x32xf32>
    %c8_i32 = arith.constant 8 : i32
    %c0_54 = arith.constant 0 : index
    %c0_55 = arith.constant 0 : index
    %254 = vector.load %arg5[%c0_54, %c0_55] : memref<2x32xf32, #tpu.memory_space<vmem>>, vector<2x32xf32>
    tpu.vector_store %arg5[%c0_54, %c0_55], %253 {strides = array<i32>} : memref<2x32xf32, #tpu.memory_space<vmem>>, vector<2x32xf32>,
    %c0_56 = arith.constant 0 : index
    %c0_57 = arith.constant 0 : index
    %255 = vector.load %arg6[%c0_56, %c0_57] : memref<2x32xf32, #tpu.memory_space<vmem>>, vector<2x32xf32>
    tpu.vector_store %arg6[%c0_56, %c0_57], %251 {strides = array<i32>} : memref<2x32xf32, #tpu.memory_space<vmem>>, vector<2x32xf32>,
    %c0_i32_58 = arith.constant 0 : i32
    %256 = arith.cmpi eq, %arg0, %c0_i32_58 : i32
    %257 = arith.extui %256 : i1 to i32
    %c0_i32_59 = arith.constant 0 : i32
    %258 = arith.cmpi ne, %257, %c0_i32_59 : i32
    scf.if %258 {
      %c0_60 = arith.constant 0 : index
      %c0_61 = arith.constant 0 : index
      %259 = vector.load %arg7[%c0_60, %c0_61] : memref<2x32xf32, #tpu.memory_space<vmem>>, vector<2x32xf32>
      %260 = arith.addf %253, %259 : vector<2x32xf32>
      %cst_62 = arith.constant 5.000000e-01 : f32
      %261 = vector.broadcast %cst_62 : f32 to vector<2x32xf32>
      %262 = arith.mulf %260, %261 : vector<2x32xf32>
      %c0_63 = arith.constant 0 : index
      %c0_64 = arith.constant 0 : index
      %263 = vector.load %arg4[%c0_63, %c0_64] : memref<2x32xf32, #tpu.memory_space<vmem>>, vector<2x32xf32>
      tpu.vector_store %arg4[%c0_63, %c0_64], %262 {strides = array<i32>} : memref<2x32xf32, #tpu.memory_space<vmem>>, vector<2x32xf32>,
    } else {
    }
    return
  }
  func.func @transform_0(%arg0: i32) -> (i32, i32, i32) {
    %c0_i32 = arith.constant 0 : i32
    %c0_i32_0 = arith.constant 0 : i32
    %c0_i32_1 = arith.constant 0 : i32
    return %arg0, %c0_i32, %c0_i32_0 : i32, i32, i32
  }
  func.func @transform_1(%arg0: i32) -> (i32, i32) {
    %c0_i32 = arith.constant 0 : i32
    %c0_i32_0 = arith.constant 0 : i32
    %c0_i32_1 = arith.constant 0 : i32
    return %c0_i32, %c0_i32_0 : i32, i32
  }
  func.func @transform_2(%arg0: i32) -> (i32, i32) {
    %c0_i32 = arith.constant 0 : i32
    %c0_i32_0 = arith.constant 0 : i32
    %c0_i32_1 = arith.constant 0 : i32
    return %c0_i32, %c0_i32_0 : i32, i32
  }
  func.func @transform_3(%arg0: i32) -> (i32, i32) {
    %c0_i32 = arith.constant 0 : i32
    %c0_i32_0 = arith.constant 0 : i32
    %c0_i32_1 = arith.constant 0 : i32
    return %c0_i32, %c0_i32_0 : i32, i32
  }
}

</mosaic_0001>

<bundles_post_ra>
// kernel: bilstm_forward.4
= control target key start
LH: loop header
LB: loop body
LE: loop exit
PB: predicated region body
PF: predicated region fallthrough
CT: control target
= control target key end

     0   :  { %12 = vsyncpa [#allocation3], 0  ;;  %s273_s0 = inlined_call_operand.vmem [shape: bf16[16,16], index: 0, kind: input, shape index: {}]   ;;  %s274_s1 = inlined_call_operand.hbm [shape: bf16[16,128], index: 1, kind: input, shape index: {}]   ;;  %s275_s2 = inlined_call_operand.hbm [shape: bf16[16,128], index: 2, kind: input, shape index: {}]   ;;  %s276_s3 = inlined_call_operand.vmem [shape: f32[1,128], index: 3, kind: input, shape index: {}]   ;;  %s277_s4 = inlined_call_operand.vmem [shape: f32[1,128], index: 4, kind: input, shape index: {}]   ;;  %s278_s5 = inlined_call_operand.vmem [shape: f32[16,128], index: 5, kind: output, shape index: {0}]   ;;  %s279_s6 = inlined_call_operand.vmem [shape: f32[16,128], index: 6, kind: output, shape index: {1}]  }
   0x1   :  { %s20_s23 = sshll.u32 %s274_s1, 4  ;;  %s21_s23 = int_to_ptr.hbm [resolvable:$true] %s20_s23 }
   0x2   :  { %13 = vsyncpa [#allocation5], 0  ;;  %s207_s24 = smov [#allocation2]   ;;  %s33_s28 = sshll.u32 %s275_s2, 4  ;;  %s34_s28 = int_to_ptr.hbm [resolvable:$true] %s33_s28 }
   0x3   :  { %s22_s25 = sshll.u32 %s207_s24, 4  ;;  %s208_s29 = smov 64   ;;  %s23_s25 = int_to_ptr.vmem [resolvable:$true] %s22_s25 }
   0x4   :  { %s209_s30 = smov 4   ;;  %s210_s7 = smov [#allocation4]  }
   0x5   :  { %28 = dma.hbm_to_vmem [thread:$0]  %s21_s23, 128, %s23_s25, [#allocation3], %s208_s29, %s208_s29, %s209_s30  }
   0x6   :  { %s35_s8 = sshll.u32 %s210_s7, 4  ;;  %s36_s8 = int_to_ptr.vmem [resolvable:$true] %s35_s8 }
   0x7   :  { %41 = dma.hbm_to_vmem [thread:$0]  %s34_s28, 128, %s36_s8, [#allocation5], %s208_s29, %s208_s29, %s209_s30  }
   0x8   :  { %203 = dma.done.wait [#allocation3], 128  }
   0x9   :  { %204 = vsyncadd [#allocation3], 4294967168 }
   0xa   :  { %205 = dma.done.wait [#allocation5], 128  }
   0xb   :  { %206 = vsyncadd [#allocation5], 4294967168  ;;  %v147_v0 = vld [vmem:[#allocation2] sm:$0xff]  ;;  %v148_v1 = vld [vmem:[#allocation4] sm:$0xff]  ;;  %vm74_vm0 = vcmask 130048  }
   0xc   :  { %v146_v2 = vld [vmem:[%s273_s0] sm:$0xff]  ;;  %85 = vmatpush.bf16.msra.mxu0 %v147_v0  ;;  %113 = vmatpush.bf16.msra.mxu1 %v148_v1 }
   0xd   :  { %v153_v3 = vld [vmem:[%s276_s3] ss:$0 sm:$0xff] }
   0xe   :  { %v154_v4 = vld [vmem:[%s277_s4] ss:$0 sm:$0xff] }
   0xf   :  { %140 = vmatmul.msk.bf16.vlgmr.msra.gmra.mxu0 %vm74_vm0, %v146_v2  ;;  %145 = vmatmul.msk.bf16.vlgmr.msra.gmra.mxu1 %vm74_vm0, %v146_v2 }
  0x8c   :  { %v87_v5 = vpop.f32.mrf.mxu0  ;;  %v115_v6 = vpop.f32.mrf.mxu1 }
  0x8d   :  { %v88_v7 = vadd.f32 %v153_v3, %v87_v5  ;;  %v116_v8 = vadd.f32 %v154_v4, %v115_v6 }
  0x8f   :  { %92 = vst [vmem:[%s278_s5] sm:$0xff] %v88_v7 }
  0x90   :  { %120 = vst [vmem:[%s279_s6] sm:$0xff] %v116_v8 }
  0x94   :  { %v89_v9 = vpop.f32.mrf.mxu0  ;;  %v117_v10 = vpop.f32.mrf.mxu1 }
  0x95   :  { %v90_v11 = vadd.f32 %v153_v3, %v89_v9  ;;  %v118_v12 = vadd.f32 %v154_v4, %v117_v10 }
  0x97   :  { %93 = vst [vmem:[%s278_s5 + $0x8] sm:$0xff] %v90_v11 }
  0x98   :  { %121 = vst [vmem:[%s279_s6 + $0x8] sm:$0xff] %v118_v12 }
  0x99   :  { %130 = vsyncpa [#allocation3], 1 }
  0x9a   :  { %131 = vsyncpa [#allocation5], 1 }

// kernel: bilstm_forward.6
= control target key start
LH: loop header
LB: loop body
LE: loop exit
PB: predicated region body
PF: predicated region fallthrough
CT: control target
= control target key end

     0   :  { %vm61_vm0 = vcmask 261120   ;;  %s351_s3 = inlined_call_operand.vmem [shape: bf16[32,128], index: 3, kind: input, shape index: {}]   ;;  %s352_s2 = inlined_call_operand.vmem [shape: bf16[32,128], index: 2, kind: input, shape index: {}]   ;;  %s353_s5 = inlined_call_operand.vmem [shape: bf16[32,128], index: 5, kind: input, shape index: {}]   ;;  %s354_s4 = inlined_call_operand.vmem [shape: bf16[32,128], index: 4, kind: input, shape index: {}]   ;;  %s355_s1 = inlined_call_operand.vmem [shape: bf16[16,32], index: 1, kind: input, shape index: {}]   ;;  %s356_s0 = inlined_call_operand.vmem [shape: bf16[16,32], index: 0, kind: input, shape index: {}]   ;;  %s357_s6 = inlined_call_operand.vmem [shape: f32[1,128], index: 6, kind: input, shape index: {}]   ;;  %s358_s7 = inlined_call_operand.vmem [shape: f32[1,128], index: 7, kind: input, shape index: {}]   ;;  %s359_s8 = inlined_call_operand.vmem [shape: f32[16,128], index: 8, kind: output, shape index: {0}]   ;;  %s360_s9 = inlined_call_operand.vmem [shape: f32[16,128], index: 9, kind: output, shape index: {1}]  }
   0x1   :  { %v246_v0 = vld [vmem:[%s351_s3 + $0x8] sm:$0xff]  ;;  %v245_v4 = vld [vmem:[%s351_s3] sm:$0xff] }
   0x2   :  { %v244_v1 = vld [vmem:[%s352_s2 + $0x8] sm:$0xff]  ;;  %71 = vmatpush.bf16.msra.mxu0 %v246_v0  ;;  %v243_v5 = vld [vmem:[%s352_s2] sm:$0xff] }
   0x3   :  { %v250_v2 = vld [vmem:[%s353_s5 + $0x8] sm:$0xff]  ;;  %105 = vmatpush.bf16.msra.mxu1 %v244_v1  ;;  %v249_v6 = vld [vmem:[%s353_s5] sm:$0xff] }
   0x4   :  { %v248_v3 = vld [vmem:[%s354_s4 + $0x8] sm:$0xff]  ;;  %147 = vmatpush.bf16.msra.mxu2 %v250_v2  ;;  %v247_v7 = vld [vmem:[%s354_s4] sm:$0xff] }
   0x5   :  { %173 = vmatpush.bf16.msra.mxu3 %v248_v3  ;;  %v242_v8 = vld [vmem:[%s355_s1] sm:$0xff] }
   0x6   :  { %v241_v9 = vld [vmem:[%s356_s0] sm:$0xff]  ;;  %72 = vmatpush.bf16.msra.mxu0 %v245_v4 }
   0x7   :  { %106 = vmatpush.bf16.msra.mxu1 %v243_v5  ;;  %v251_v10 = vld [vmem:[%s357_s6] ss:$0 sm:$0xff] }
   0x8   :  { %148 = vmatpush.bf16.msra.mxu2 %v249_v6  ;;  %v252_v15 = vld [vmem:[%s358_s7] ss:$0 sm:$0xff] }
   0x9   :  { %174 = vmatpush.bf16.msra.mxu3 %v247_v7  ;;  %209 = vmatmul.msk.bf16.vlgmr.msra.gmra.mxu0 %vm61_vm0, %v242_v8 }
   0xa   :  { %222 = vmatmul.msk.bf16.vlgmr.msra.gmra.mxu1 %vm61_vm0, %v241_v9 }
   0xb   :  { %231 = vmatmul.msk.bf16.vlgmr.msra.gmra.mxu2 %vm61_vm0, %v242_v8 }
   0xc   :  { %240 = vmatmul.msk.bf16.vlgmr.msra.gmra.mxu3 %vm61_vm0, %v241_v9 }
  0x86   :  { %v74_v11 = vpop.f32.mrf.mxu0 }
  0x87   :  { %v108_v12 = vpop.f32.mrf.mxu1 }
  0x88   :  { %v109_v13 = vadd.f32 %v108_v12, %v74_v11 }
  0x8a   :  { %v117_v14 = vadd.f32 %v251_v10, %v109_v13 }
  0x8c   :  { %119 = vst [vmem:[%s359_s8] sm:$0xff] %v117_v14 }
  0x8e   :  { %v150_v16 = vpop.f32.mrf.mxu2  ;;  %v76_v19 = vpop.f32.mrf.mxu0 }
  0x8f   :  { %v176_v17 = vpop.f32.mrf.mxu3  ;;  %v110_v20 = vpop.f32.mrf.mxu1 }
  0x90   :  { %v177_v18 = vadd.f32 %v176_v17, %v150_v16  ;;  %v111_v21 = vadd.f32 %v110_v20, %v76_v19 }
  0x92   :  { %v185_v22 = vadd.f32 %v252_v15, %v177_v18  ;;  %v118_v23 = vadd.f32 %v251_v10, %v111_v21 }
  0x94   :  { %187 = vst [vmem:[%s360_s9] sm:$0xff] %v185_v22 }
  0x95   :  { %120 = vst [vmem:[%s359_s8 + $0x8] sm:$0xff] %v118_v23 }
  0x96   :  { %v152_v24 = vpop.f32.mrf.mxu2 }
  0x97   :  { %v178_v25 = vpop.f32.mrf.mxu3 }
  0x98   :  { %v179_v26 = vadd.f32 %v178_v25, %v152_v24 }
  0x9a   :  { %v186_v27 = vadd.f32 %v252_v15, %v179_v26 }
  0x9c   :  { %188 = vst [vmem:[%s360_s9 + $0x8] sm:$0xff] %v186_v27 }

// kernel: bilstm_forward.7
= control target key start
LH: loop header
LB: loop body
LE: loop exit
PB: predicated region body
PF: predicated region fallthrough
CT: control target
= control target key end

     0   :  { %vm20_vm0 = vcmask 254976   ;;  %v738_v1 = vmov 0.0   ;;  %s856_s0 = inlined_call_operand.vmem [shape: f32[8,2,128], index: 0, kind: input, shape index: {}]   ;;  %s857_s1 = inlined_call_operand.vmem [shape: f32[2,128], index: 1, kind: input, shape index: {}]   ;;  %s858_s2 = inlined_call_operand.vmem [shape: bf16[32,128], index: 2, kind: input, shape index: {}]   ;;  %s859_s3 = inlined_call_operand.hbm [shape: f32[2,32], index: 3, kind: output, shape index: {}]  }
   0x1   :  { %v634_v0 = vld [vmem:[%s858_s2 + $0x8] sm:$0xff]  ;;  %21 = vst.msk [vmem:[#allocation2] sm:$0x3] %vm20_vm0, %v738_v1 }
   0x2   :  { %8 = vsyncpa [#allocation6], 0  ;;  %90 = vmatpush.bf16.msra.mxu0 %v634_v0  ;;  %v633_v2 = vld [vmem:[%s858_s2] sm:$0xff]  ;;  %22 = vst.msk [vmem:[#allocation3] sm:$0x3] %vm20_vm0, %v738_v1  ;;  %154 = vmatpush.bf16.msra.mxu1 %v634_v0  ;;  %vm80_vm1 = vcmask 261120  }
   0x3   :  { %214 = vmatpush.bf16.msra.mxu2 %v634_v0  ;;  %274 = vmatpush.bf16.msra.mxu3 %v634_v0  ;;  %v66_v5 = vld [vmem:[%s856_s0] sm:$0x3]  ;;  %s739_s17 = smov 64   ;;  %s740_s18 = smov 32   ;;  %v612_v35 = vld [vmem:[%s856_s0 + $0x2] sm:$0x3] }
   0x4   :  { %v615_v63 = vld [vmem:[%s856_s0 + $0x4] sm:$0x3]  ;;  %s592_s11 = sshll.u32 %s859_s3, 4  ;;  %s593_s11 = int_to_ptr.hbm [resolvable:$true] %s592_s11 }
   0x6   :  { %91 = vmatpush.bf16.msra.mxu0 %v633_v2  ;;  %155 = vmatpush.bf16.msra.mxu1 %v633_v2 }
   0x7   :  { %215 = vmatpush.bf16.msra.mxu2 %v633_v2  ;;  %275 = vmatpush.bf16.msra.mxu3 %v633_v2 }
   0x8   :  { %v64_v3 = vld [vmem:[#allocation2] sm:$0x3] }
   0x9   :  { %v67_v4 = vpack.c.bf16 %v64_v3, %v64_v3  ;;  %v65_v10 = vld [vmem:[#allocation3] sm:$0x3] }
   0xa   :  { %334 = vmatpush.bf16.msrb.mxu0 %v634_v0  ;;  %394 = vmatpush.bf16.msrb.mxu1 %v634_v0 }
   0xb   :  { %454 = vmatpush.bf16.msrb.mxu2 %v634_v0  ;;  %514 = vmatpush.bf16.msrb.mxu3 %v634_v0 }
   0xc   :  { %610 = vmatmul.msk.bf16.vlgmr.msra.gmra.mxu0 %vm80_vm1, %v67_v4 }
   0xe   :  { %335 = vmatpush.bf16.msrb.mxu0 %v633_v2  ;;  %395 = vmatpush.bf16.msrb.mxu1 %v633_v2 }
   0xf   :  { %455 = vmatpush.bf16.msrb.mxu2 %v633_v2  ;;  %515 = vmatpush.bf16.msrb.mxu3 %v633_v2 }
  0x89   :  { %v93_v6 = vpop.f32.mrf.mxu0 }
  0x8a   :  { %v97_v7 = vadd.f32 %v93_v6, %v66_v5 }
  0x8c   :  { %640 = vtanh.f32 %v97_v7  ;;  %v611_v11 = vmul.f32 -1.442695, %v97_v7 }
  0x8e   :  { %642 = vpow2.f32 %v611_v11 }
  0x91   :  { %v95_v8 = vpop.f32.mrf.mxu0 }
  0x92   :  { %v641_v9 = vpop.eup %640 }
  0x93   :  { %124 = vrot.lane.b32.xlu0 %v641_v9, %s739_s17 }
  0x94   :  { %v643_v12 = vpop.eup %642 }
  0x95   :  { %v101_v13 = vadd.f32 1.0, %v643_v12 }
  0x97   :  { %644 = vrcp.f32 %v101_v13  ;;  %v113_v19 = vand.u32 2147483648, %v101_v13  ;;  %vm107_vm3 = vweird.f32 %v101_v13  ;;  %v111_v20 = vand.u32 2147483647, %v101_v13 }
  0x99   :  { %v114_v22 = vor.u32 1.1754944e-38, %v113_v19  ;;  %vm112_vm5 = vcmp.eq.f32.partialorder %v111_v20, 8.507059e+37 }
  0x9b   :  { %119 = vrot.lane.b32.xlu0 %v65_v10, %s740_s18 }
  0x9d   :  { %v645_v14 = vpop.eup %644 }
  0x9e   :  { %v103_v15 = vmul.f32 %v645_v14, %v101_v13  ;;  %vm108_vm2 = vweird.f32 %v645_v14 }
  0x9f   :  { %vm109_vm4 = vmor %vm107_vm3, %vm108_vm2 }
  0xa0   :  { %v104_v16 = vsub.f32 1.0, %v103_v15 }
  0xa2   :  { %v105_v17 = vmul.f32 %v645_v14, %v104_v16 }
  0xa4   :  { %v106_v18 = vadd.f32 %v645_v14, %v105_v17 }
  0xa6   :  { %v110_v21 = vsel %vm109_vm4, %v645_v14, %v106_v18 }
  0xa7   :  { %v115_v24 = vsel %vm112_vm5, %v114_v22, %v110_v21 }
 0x105   :  { %v125_v23 = vpop.permute.xlu0 %124 }
 0x106   :  { %v127_v25 = vmul.f32 %v125_v23, %v115_v24 }
 0x108   :  { %129 = vrot.lane.b32.xlu1 %v127_v25, %s740_s18 }
 0x10d   :  { %v120_v26 = vpop.permute.xlu0 %119 }
 0x10e   :  { %v122_v27 = vmul.f32 %v120_v26, %v115_v24 }
 0x17a   :  { %v130_v28 = vpop.permute.xlu1 %129 }
 0x17b   :  { %v132_v29 = vadd.f32 %v130_v28, %v122_v27  ;;  %v618_v27 = vld [vmem:[%s856_s0 + $0x6] sm:$0x3] }
 0x17d   :  { %646 = vtanh.f32 %v132_v29 }
 0x183   :  { %v647_v30 = vpop.eup %646 }
 0x184   :  { %135 = vrot.lane.b32.xlu1 %v647_v30, %s739_s17 }
 0x1f6   :  { %v136_v31 = vpop.permute.xlu1 %135 }
 0x1f7   :  { %v138_v32 = vmul.f32 %v136_v31, %v115_v24 }
 0x1f9   :  { %v141_v33 = vpack.c.bf16 %v138_v32, %v138_v32 }
 0x1fb   :  { %143 = vrot.lane.b32.xlu2 %v141_v33, %s740_s18 }
 0x255   :  { %v144_v34 = vpop.permute.xlu2 %143 }
 0x256   :  { %613 = vmatmul.msk.bf16.vlgmr.msra.gmra.mxu1 %vm80_vm1, %v144_v34 }
 0x2d3   :  { %v157_v36 = vpop.f32.mrf.mxu1 }
 0x2d4   :  { %v161_v37 = vadd.f32 %v612_v35, %v157_v36 }
 0x2d6   :  { %648 = vtanh.f32 %v161_v37  ;;  %v614_v40 = vmul.f32 -1.442695, %v161_v37 }
 0x2d8   :  { %650 = vpow2.f32 %v614_v40 }
 0x2db   :  { %v159_v38 = vpop.f32.mrf.mxu1 }
 0x2dc   :  { %v649_v39 = vpop.eup %648 }
 0x2dd   :  { %184 = vrot.lane.b32.xlu2 %v649_v39, %s739_s17 }
 0x2de   :  { %v651_v41 = vpop.eup %650 }
 0x2df   :  { %v165_v42 = vadd.f32 1.0, %v651_v41 }
 0x2e1   :  { %652 = vrcp.f32 %v165_v42  ;;  %v177_v48 = vand.u32 2147483648, %v165_v42  ;;  %vm171_vm7 = vweird.f32 %v165_v42  ;;  %v175_v49 = vand.u32 2147483647, %v165_v42 }
 0x2e3   :  { %v178_v51 = vor.u32 1.1754944e-38, %v177_v48  ;;  %vm176_vm9 = vcmp.eq.f32.partialorder %v175_v49, 8.507059e+37 }
 0x2e7   :  { %v653_v43 = vpop.eup %652 }
 0x2e8   :  { %v167_v44 = vmul.f32 %v653_v43, %v165_v42  ;;  %vm172_vm6 = vweird.f32 %v653_v43 }
 0x2e9   :  { %vm173_vm8 = vmor %vm171_vm7, %vm172_vm6 }
 0x2ea   :  { %v168_v45 = vsub.f32 1.0, %v167_v44 }
 0x2ec   :  { %v169_v46 = vmul.f32 %v653_v43, %v168_v45 }
 0x2ee   :  { %v170_v47 = vadd.f32 %v653_v43, %v169_v46 }
 0x2f0   :  { %v174_v50 = vsel %vm173_vm8, %v653_v43, %v170_v47 }
 0x2f1   :  { %v179_v53 = vsel %vm176_vm9, %v178_v51, %v174_v50 }
 0x2f2   :  { %v182_v55 = vmul.f32 %v179_v53, %v132_v29 }
 0x337   :  { %v185_v52 = vpop.permute.xlu2 %184 }
 0x338   :  { %v187_v54 = vmul.f32 %v185_v52, %v179_v53 }
 0x33a   :  { %189 = vrot.lane.b32.xlu0 %v187_v54, %s740_s18 }
 0x3ac   :  { %v190_v56 = vpop.permute.xlu0 %189 }
 0x3ad   :  { %v192_v57 = vadd.f32 %v190_v56, %v182_v55  ;;  %v621_v55 = vld [vmem:[%s856_s0 + $0x8] sm:$0x3] }
 0x3af   :  { %654 = vtanh.f32 %v192_v57 }
 0x3b5   :  { %v655_v58 = vpop.eup %654 }
 0x3b6   :  { %195 = vrot.lane.b32.xlu1 %v655_v58, %s739_s17 }
 0x428   :  { %v196_v59 = vpop.permute.xlu1 %195 }
 0x429   :  { %v198_v60 = vmul.f32 %v196_v59, %v179_v53 }
 0x42b   :  { %v201_v61 = vpack.c.bf16 %v198_v60, %v198_v60 }
 0x42d   :  { %203 = vrot.lane.b32.xlu2 %v201_v61, %s740_s18 }
 0x487   :  { %v204_v62 = vpop.permute.xlu2 %203 }
 0x488   :  { %616 = vmatmul.msk.bf16.vlgmr.msra.gmra.mxu2 %vm80_vm1, %v204_v62 }
 0x50b   :  { %v217_v0 = vpop.f32.mrf.mxu2 }
 0x50c   :  { %v221_v1 = vadd.f32 %v615_v63, %v217_v0 }
 0x50e   :  { %656 = vtanh.f32 %v221_v1  ;;  %v617_v4 = vmul.f32 -1.442695, %v221_v1 }
 0x510   :  { %658 = vpow2.f32 %v617_v4 }
 0x513   :  { %v219_v2 = vpop.f32.mrf.mxu2 }
 0x514   :  { %v657_v3 = vpop.eup %656 }
 0x515   :  { %244 = vrot.lane.b32.xlu0 %v657_v3, %s739_s17 }
 0x516   :  { %v659_v5 = vpop.eup %658 }
 0x517   :  { %v225_v6 = vadd.f32 1.0, %v659_v5 }
 0x519   :  { %660 = vrcp.f32 %v225_v6  ;;  %v237_v12 = vand.u32 2147483648, %v225_v6  ;;  %vm231_vm11 = vweird.f32 %v225_v6  ;;  %v235_v13 = vand.u32 2147483647, %v225_v6 }
 0x51b   :  { %v238_v15 = vor.u32 1.1754944e-38, %v237_v12  ;;  %vm236_vm13 = vcmp.eq.f32.partialorder %v235_v13, 8.507059e+37 }
 0x51f   :  { %v661_v7 = vpop.eup %660 }
 0x520   :  { %v227_v8 = vmul.f32 %v661_v7, %v225_v6  ;;  %vm232_vm10 = vweird.f32 %v661_v7 }
 0x521   :  { %vm233_vm12 = vmor %vm231_vm11, %vm232_vm10 }
 0x522   :  { %v228_v9 = vsub.f32 1.0, %v227_v8 }
 0x524   :  { %v229_v10 = vmul.f32 %v661_v7, %v228_v9 }
 0x526   :  { %v230_v11 = vadd.f32 %v661_v7, %v229_v10 }
 0x528   :  { %v234_v14 = vsel %vm233_vm12, %v661_v7, %v230_v11 }
 0x529   :  { %v239_v17 = vsel %vm236_vm13, %v238_v15, %v234_v14 }
 0x52a   :  { %v242_v19 = vmul.f32 %v239_v17, %v192_v57 }
 0x587   :  { %v245_v16 = vpop.permute.xlu0 %244 }
 0x588   :  { %v247_v18 = vmul.f32 %v245_v16, %v239_v17 }
 0x58a   :  { %249 = vrot.lane.b32.xlu1 %v247_v18, %s740_s18 }
 0x5fc   :  { %v250_v20 = vpop.permute.xlu1 %249 }
 0x5fd   :  { %v252_v21 = vadd.f32 %v250_v20, %v242_v19  ;;  %v624_v19 = vld [vmem:[%s856_s0 + $0xa] sm:$0x3] }
 0x5ff   :  { %662 = vtanh.f32 %v252_v21 }
 0x605   :  { %v663_v22 = vpop.eup %662 }
 0x606   :  { %255 = vrot.lane.b32.xlu2 %v663_v22, %s739_s17 }
 0x660   :  { %v256_v23 = vpop.permute.xlu2 %255 }
 0x661   :  { %v258_v24 = vmul.f32 %v256_v23, %v239_v17 }
 0x663   :  { %v261_v25 = vpack.c.bf16 %v258_v24, %v258_v24 }
 0x665   :  { %263 = vrot.lane.b32.xlu0 %v261_v25, %s740_s18 }
 0x6d7   :  { %v264_v26 = vpop.permute.xlu0 %263 }
 0x6d8   :  { %619 = vmatmul.msk.bf16.vlgmr.msra.gmra.mxu3 %vm80_vm1, %v264_v26 }
 0x75b   :  { %v277_v28 = vpop.f32.mrf.mxu3 }
 0x75c   :  { %v281_v29 = vadd.f32 %v618_v27, %v277_v28 }
 0x75e   :  { %664 = vtanh.f32 %v281_v29  ;;  %v620_v32 = vmul.f32 -1.442695, %v281_v29 }
 0x760   :  { %666 = vpow2.f32 %v620_v32 }
 0x763   :  { %v279_v30 = vpop.f32.mrf.mxu3 }
 0x764   :  { %v665_v31 = vpop.eup %664 }
 0x765   :  { %304 = vrot.lane.b32.xlu1 %v665_v31, %s739_s17 }
 0x766   :  { %v667_v33 = vpop.eup %666 }
 0x767   :  { %v285_v34 = vadd.f32 1.0, %v667_v33 }
 0x769   :  { %668 = vrcp.f32 %v285_v34  ;;  %v297_v40 = vand.u32 2147483648, %v285_v34  ;;  %vm291_vm15 = vweird.f32 %v285_v34  ;;  %v295_v41 = vand.u32 2147483647, %v285_v34 }
 0x76b   :  { %v298_v43 = vor.u32 1.1754944e-38, %v297_v40  ;;  %vm296_vm3 = vcmp.eq.f32.partialorder %v295_v41, 8.507059e+37 }
 0x76f   :  { %v669_v35 = vpop.eup %668 }
 0x770   :  { %v287_v36 = vmul.f32 %v669_v35, %v285_v34  ;;  %vm292_vm14 = vweird.f32 %v669_v35 }
 0x771   :  { %vm293_vm2 = vmor %vm291_vm15, %vm292_vm14 }
 0x772   :  { %v288_v37 = vsub.f32 1.0, %v287_v36 }
 0x774   :  { %v289_v38 = vmul.f32 %v669_v35, %v288_v37 }
 0x776   :  { %v290_v39 = vadd.f32 %v669_v35, %v289_v38 }
 0x778   :  { %v294_v42 = vsel %vm293_vm2, %v669_v35, %v290_v39 }
 0x779   :  { %v299_v45 = vsel %vm296_vm3, %v298_v43, %v294_v42 }
 0x77a   :  { %v302_v47 = vmul.f32 %v299_v45, %v252_v21 }
 0x7d7   :  { %v305_v44 = vpop.permute.xlu1 %304 }
 0x7d8   :  { %v307_v46 = vmul.f32 %v305_v44, %v299_v45 }
 0x7da   :  { %309 = vrot.lane.b32.xlu2 %v307_v46, %s740_s18 }
 0x834   :  { %v310_v48 = vpop.permute.xlu2 %309 }
 0x835   :  { %v312_v49 = vadd.f32 %v310_v48, %v302_v47  ;;  %v627_v47 = vld [vmem:[%s856_s0 + $0xc] sm:$0x3] }
 0x837   :  { %670 = vtanh.f32 %v312_v49 }
 0x83d   :  { %v671_v50 = vpop.eup %670 }
 0x83e   :  { %315 = vrot.lane.b32.xlu0 %v671_v50, %s739_s17 }
 0x8b0   :  { %v316_v51 = vpop.permute.xlu0 %315 }
 0x8b1   :  { %v318_v52 = vmul.f32 %v316_v51, %v299_v45 }
 0x8b3   :  { %v321_v53 = vpack.c.bf16 %v318_v52, %v318_v52 }
 0x8b5   :  { %323 = vrot.lane.b32.xlu1 %v321_v53, %s740_s18 }
 0x927   :  { %v324_v54 = vpop.permute.xlu1 %323 }
 0x928   :  { %622 = vmatmul.msk.bf16.vlgmr.msrb.gmra.mxu0 %vm80_vm1, %v324_v54 }
 0x9a5   :  { %v337_v56 = vpop.f32.mrf.mxu0 }
 0x9a6   :  { %v341_v57 = vadd.f32 %v621_v55, %v337_v56 }
 0x9a8   :  { %672 = vtanh.f32 %v341_v57  ;;  %v623_v60 = vmul.f32 -1.442695, %v341_v57 }
 0x9aa   :  { %674 = vpow2.f32 %v623_v60 }
 0x9ad   :  { %v339_v58 = vpop.f32.mrf.mxu0 }
 0x9ae   :  { %v673_v59 = vpop.eup %672 }
 0x9af   :  { %364 = vrot.lane.b32.xlu2 %v673_v59, %s739_s17 }
 0x9b0   :  { %v675_v61 = vpop.eup %674 }
 0x9b1   :  { %v345_v62 = vadd.f32 1.0, %v675_v61 }
 0x9b3   :  { %676 = vrcp.f32 %v345_v62  ;;  %v357_v4 = vand.u32 2147483648, %v345_v62  ;;  %vm351_vm5 = vweird.f32 %v345_v62  ;;  %v355_v5 = vand.u32 2147483647, %v345_v62 }
 0x9b5   :  { %v358_v7 = vor.u32 1.1754944e-38, %v357_v4  ;;  %vm356_vm7 = vcmp.eq.f32.partialorder %v355_v5, 8.507059e+37 }
 0x9b9   :  { %v677_v63 = vpop.eup %676 }
 0x9ba   :  { %v347_v0 = vmul.f32 %v677_v63, %v345_v62  ;;  %vm352_vm4 = vweird.f32 %v677_v63 }
 0x9bb   :  { %vm353_vm6 = vmor %vm351_vm5, %vm352_vm4 }
 0x9bc   :  { %v348_v1 = vsub.f32 1.0, %v347_v0 }
 0x9be   :  { %v349_v2 = vmul.f32 %v677_v63, %v348_v1 }
 0x9c0   :  { %v350_v3 = vadd.f32 %v677_v63, %v349_v2 }
 0x9c2   :  { %v354_v6 = vsel %vm353_vm6, %v677_v63, %v350_v3 }
 0x9c3   :  { %v359_v9 = vsel %vm356_vm7, %v358_v7, %v354_v6 }
 0x9c4   :  { %v362_v11 = vmul.f32 %v359_v9, %v312_v49 }
 0xa09   :  { %v365_v8 = vpop.permute.xlu2 %364 }
 0xa0a   :  { %v367_v10 = vmul.f32 %v365_v8, %v359_v9 }
 0xa0c   :  { %369 = vrot.lane.b32.xlu0 %v367_v10, %s740_s18  ;;  %v23_v10 = vld [vmem:[%s857_s1] sm:$0x3]  ;;  %s741_s1 = smov 96  }
 0xa7e   :  { %v370_v12 = vpop.permute.xlu0 %369 }
 0xa7f   :  { %v372_v13 = vadd.f32 %v370_v12, %v362_v11 }
 0xa81   :  { %678 = vtanh.f32 %v372_v13 }
 0xa87   :  { %v679_v14 = vpop.eup %678 }
 0xa88   :  { %375 = vrot.lane.b32.xlu1 %v679_v14, %s739_s17 }
 0xafa   :  { %v376_v15 = vpop.permute.xlu1 %375 }
 0xafb   :  { %v378_v16 = vmul.f32 %v376_v15, %v359_v9 }
 0xafd   :  { %v381_v17 = vpack.c.bf16 %v378_v16, %v378_v16 }
 0xaff   :  { %383 = vrot.lane.b32.xlu2 %v381_v17, %s740_s18 }
 0xb59   :  { %v384_v18 = vpop.permute.xlu2 %383 }
 0xb5a   :  { %625 = vmatmul.msk.bf16.vlgmr.msrb.gmra.mxu1 %vm80_vm1, %v384_v18 }
 0xbd7   :  { %v397_v20 = vpop.f32.mrf.mxu1 }
 0xbd8   :  { %v401_v21 = vadd.f32 %v624_v19, %v397_v20 }
 0xbda   :  { %680 = vtanh.f32 %v401_v21  ;;  %v626_v24 = vmul.f32 -1.442695, %v401_v21 }
 0xbdc   :  { %682 = vpow2.f32 %v626_v24 }
 0xbdf   :  { %v399_v22 = vpop.f32.mrf.mxu1 }
 0xbe0   :  { %v681_v23 = vpop.eup %680 }
 0xbe1   :  { %424 = vrot.lane.b32.xlu0 %v681_v23, %s739_s17 }
 0xbe2   :  { %v683_v25 = vpop.eup %682 }
 0xbe3   :  { %v405_v26 = vadd.f32 1.0, %v683_v25 }
 0xbe5   :  { %684 = vrcp.f32 %v405_v26  ;;  %v417_v32 = vand.u32 2147483648, %v405_v26  ;;  %vm411_vm9 = vweird.f32 %v405_v26  ;;  %v415_v33 = vand.u32 2147483647, %v405_v26 }
 0xbe7   :  { %v418_v35 = vor.u32 1.1754944e-38, %v417_v32  ;;  %vm416_vm11 = vcmp.eq.f32.partialorder %v415_v33, 8.507059e+37 }
 0xbeb   :  { %v685_v27 = vpop.eup %684 }
 0xbec   :  { %v407_v28 = vmul.f32 %v685_v27, %v405_v26  ;;  %vm412_vm8 = vweird.f32 %v685_v27 }
 0xbed   :  { %vm413_vm10 = vmor %vm411_vm9, %vm412_vm8 }
 0xbee   :  { %v408_v29 = vsub.f32 1.0, %v407_v28 }
 0xbf0   :  { %v409_v30 = vmul.f32 %v685_v27, %v408_v29  ;;  %v630_v29 = vld [vmem:[%s856_s0 + $0xe] sm:$0x3]  ;;  %s742_s0 = smov [#allocation5]  }
 0xbf1   :  { %s590_s8 = sshll.u32 %s742_s0, 4  ;;  %s591_s8 = int_to_ptr.vmem [resolvable:$true] %s590_s8 }
 0xbf2   :  { %v410_v31 = vadd.f32 %v685_v27, %v409_v30 }
 0xbf4   :  { %v414_v34 = vsel %vm413_vm10, %v685_v27, %v410_v31 }
 0xbf5   :  { %v419_v37 = vsel %vm416_vm11, %v418_v35, %v414_v34 }
 0xbf6   :  { %v422_v39 = vmul.f32 %v419_v37, %v372_v13  ;;  %v601_v13 = vmul.f32 -1.442695, %v23_v10 }
 0xc53   :  { %v425_v36 = vpop.permute.xlu0 %424 }
 0xc54   :  { %v427_v38 = vmul.f32 %v425_v36, %v419_v37 }
 0xc56   :  { %429 = vrot.lane.b32.xlu1 %v427_v38, %s740_s18 }
 0xcc8   :  { %v430_v40 = vpop.permute.xlu1 %429 }
 0xcc9   :  { %v432_v41 = vadd.f32 %v430_v40, %v422_v39 }
 0xccb   :  { %686 = vtanh.f32 %v432_v41 }
 0xcd1   :  { %v687_v42 = vpop.eup %686 }
 0xcd2   :  { %435 = vrot.lane.b32.xlu2 %v687_v42, %s739_s17 }
 0xd2c   :  { %v436_v43 = vpop.permute.xlu2 %435 }
 0xd2d   :  { %v438_v44 = vmul.f32 %v436_v43, %v419_v37 }
 0xd2f   :  { %v441_v45 = vpack.c.bf16 %v438_v44, %v438_v44 }
 0xd31   :  { %443 = vrot.lane.b32.xlu0 %v441_v45, %s740_s18 }
 0xda3   :  { %v444_v46 = vpop.permute.xlu0 %443 }
 0xda4   :  { %628 = vmatmul.msk.bf16.vlgmr.msrb.gmra.mxu2 %vm80_vm1, %v444_v46 }
 0xe27   :  { %v457_v48 = vpop.f32.mrf.mxu2 }
 0xe28   :  { %v461_v49 = vadd.f32 %v627_v47, %v457_v48 }
 0xe2a   :  { %688 = vtanh.f32 %v461_v49  ;;  %v629_v52 = vmul.f32 -1.442695, %v461_v49 }
 0xe2c   :  { %690 = vpow2.f32 %v629_v52 }
 0xe2f   :  { %v459_v50 = vpop.f32.mrf.mxu2 }
 0xe30   :  { %v689_v51 = vpop.eup %688 }
 0xe31   :  { %484 = vrot.lane.b32.xlu1 %v689_v51, %s739_s17 }
 0xe32   :  { %v691_v53 = vpop.eup %690 }
 0xe33   :  { %v465_v54 = vadd.f32 1.0, %v691_v53 }
 0xe35   :  { %692 = vrcp.f32 %v465_v54  ;;  %v477_v60 = vand.u32 2147483648, %v465_v54  ;;  %vm471_vm13 = vweird.f32 %v465_v54  ;;  %v475_v61 = vand.u32 2147483647, %v465_v54 }
 0xe37   :  { %v478_v63 = vor.u32 1.1754944e-38, %v477_v60  ;;  %vm476_vm15 = vcmp.eq.f32.partialorder %v475_v61, 8.507059e+37 }
 0xe3b   :  { %v693_v55 = vpop.eup %692 }
 0xe3c   :  { %v467_v56 = vmul.f32 %v693_v55, %v465_v54  ;;  %vm472_vm12 = vweird.f32 %v693_v55 }
 0xe3d   :  { %vm473_vm14 = vmor %vm471_vm13, %vm472_vm12 }
 0xe3e   :  { %v468_v57 = vsub.f32 1.0, %v467_v56 }
 0xe40   :  { %v469_v58 = vmul.f32 %v693_v55, %v468_v57 }
 0xe42   :  { %v470_v59 = vadd.f32 %v693_v55, %v469_v58 }
 0xe44   :  { %v474_v62 = vsel %vm473_vm14, %v693_v55, %v470_v59 }
 0xe45   :  { %v479_v1 = vsel %vm476_vm15, %v478_v63, %v474_v62 }
 0xe46   :  { %v482_v3 = vmul.f32 %v479_v1, %v432_v41 }
 0xea3   :  { %v485_v0 = vpop.permute.xlu1 %484 }
 0xea4   :  { %v487_v2 = vmul.f32 %v485_v0, %v479_v1 }
 0xea6   :  { %489 = vrot.lane.b32.xlu2 %v487_v2, %s740_s18 }
 0xf00   :  { %v490_v4 = vpop.permute.xlu2 %489 }
 0xf01   :  { %v826_v5 = vadd.f32 %v490_v4, %v482_v3 }
 0xf03   :  { %694 = vtanh.f32 %v826_v5 }
 0xf04   :  { %696 = vtanh.f32 %v23_v10 }
 0xf05   :  { %698 = vpow2.f32 %v601_v13 }
 0xf09   :  { %v695_v6 = vpop.eup %694 }
 0xf0a   :  { %495 = vrot.lane.b32.xlu0 %v695_v6, %s739_s17  ;;  %v697_v11 = vpop.eup %696 }
 0xf0b   :  { %45 = vrot.lane.b32.xlu2 %v697_v11, %s739_s17  ;;  %v699_v14 = vpop.eup %698 }
 0xf0c   :  { %v27_v15 = vadd.f32 1.0, %v699_v14 }
 0xf0e   :  { %700 = vrcp.f32 %v27_v15  ;;  %vm33_vm2 = vweird.f32 %v27_v15  ;;  %v39_v20 = vand.u32 2147483648, %v27_v15  ;;  %v37_v22 = vand.u32 2147483647, %v27_v15 }
 0xf10   :  { %v40_v23 = vor.u32 1.1754944e-38, %v39_v20  ;;  %vm38_vm5 = vcmp.eq.f32.partialorder %v37_v22, 8.507059e+37 }
 0xf14   :  { %v701_v16 = vpop.eup %700 }
 0xf15   :  { %v29_v17 = vmul.f32 %v701_v16, %v27_v15  ;;  %vm34_vm3 = vweird.f32 %v701_v16 }
 0xf16   :  { %vm35_vm4 = vmor %vm33_vm2, %vm34_vm3 }
 0xf17   :  { %v30_v18 = vsub.f32 1.0, %v29_v17 }
 0xf19   :  { %v31_v19 = vmul.f32 %v701_v16, %v30_v18 }
 0xf1b   :  { %v32_v21 = vadd.f32 %v701_v16, %v31_v19 }
 0xf1d   :  { %v36_v24 = vsel %vm35_vm4, %v701_v16, %v32_v21 }
 0xf1e   :  { %v41_v25 = vsel %vm38_vm5, %v40_v23, %v36_v24 }
 0xf65   :  { %v46_v26 = vpop.permute.xlu2 %45 }
 0xf66   :  { %v48_v27 = vmul.f32 %v46_v26, %v41_v25 }
 0xf68   :  { %702 = vtanh.f32 %v48_v27 }
 0xf6e   :  { %v703_v28 = vpop.eup %702 }
 0xf7c   :  { %v496_v7 = vpop.permute.xlu0 %495 }
 0xf7d   :  { %v498_v8 = vmul.f32 %v496_v7, %v479_v1 }
 0xf7f   :  { %v501_v9 = vpack.c.bf16 %v498_v8, %v498_v8 }
 0xf81   :  { %503 = vrot.lane.b32.xlu1 %v501_v9, %s740_s18 }
 0xf89   :  { %51 = vrot.lane.b32.xlu1 %v703_v28, %s741_s1 }
 0xff3   :  { %v504_v12 = vpop.permute.xlu1 %503 }
 0xff4   :  { %631 = vmatmul.msk.bf16.vlgmr.msrb.gmra.mxu3 %vm80_vm1, %v504_v12 }
 0xffb   :  { %v52_v34 = vpop.permute.xlu1 %51 }
 0xffc   :  { %v54_v35 = vmul.f32 %v52_v34, %v41_v25 }
0x1077   :  { %v517_v30 = vpop.f32.mrf.mxu3 }
0x1078   :  { %v521_v31 = vadd.f32 %v630_v29, %v517_v30 }
0x107a   :  { %704 = vtanh.f32 %v521_v31  ;;  %v632_v36 = vmul.f32 -1.442695, %v521_v31 }
0x107c   :  { %706 = vpow2.f32 %v632_v36 }
0x107f   :  { %v519_v32 = vpop.f32.mrf.mxu3 }
0x1080   :  { %v705_v33 = vpop.eup %704 }
0x1081   :  { %544 = vrot.lane.b32.xlu0 %v705_v33, %s739_s17 }
0x1082   :  { %v707_v37 = vpop.eup %706 }
0x1083   :  { %v525_v38 = vadd.f32 1.0, %v707_v37 }
0x1085   :  { %708 = vrcp.f32 %v525_v38  ;;  %v537_v44 = vand.u32 2147483648, %v525_v38  ;;  %vm531_vm6 = vweird.f32 %v525_v38  ;;  %v535_v45 = vand.u32 2147483647, %v525_v38 }
0x1087   :  { %v538_v47 = vor.u32 1.1754944e-38, %v537_v44  ;;  %vm536_vm8 = vcmp.eq.f32.partialorder %v535_v45, 8.507059e+37 }
0x1089   :  { %56 = vrot.lane.b32.xlu0 %v54_v35, %s740_s18 }
0x108b   :  { %v709_v39 = vpop.eup %708 }
0x108c   :  { %v527_v40 = vmul.f32 %v709_v39, %v525_v38  ;;  %vm532_vm1 = vweird.f32 %v709_v39 }
0x108d   :  { %vm533_vm7 = vmor %vm531_vm6, %vm532_vm1 }
0x108e   :  { %v528_v41 = vsub.f32 1.0, %v527_v40 }
0x1090   :  { %v529_v42 = vmul.f32 %v709_v39, %v528_v41 }
0x1092   :  { %v530_v43 = vadd.f32 %v709_v39, %v529_v42 }
0x1094   :  { %v534_v46 = vsel %vm533_vm7, %v709_v39, %v530_v43 }
0x1095   :  { %v539_v49 = vsel %vm536_vm8, %v538_v47, %v534_v46 }
0x1096   :  { %v542_v53 = vmul.f32 %v539_v49, %v826_v5 }
0x10f3   :  { %v545_v48 = vpop.permute.xlu0 %544 }
0x10f4   :  { %v547_v50 = vmul.f32 %v545_v48, %v539_v49 }
0x10f6   :  { %549 = vrot.lane.b32.xlu2 %v547_v50, %s740_s18 }
0x10fb   :  { %v57_v51 = vpop.permute.xlu0 %56 }
0x10fc   :  { %59 = vst.msk [vmem:[#allocation4] sm:$0x3] %vm20_vm0, %v57_v51 }
0x1103   :  { %v573_v52 = vld [vmem:[#allocation4] sm:$0x3] }
0x1104   :  { %575 = vrot.lane.b32.xlu2 %v573_v52, %s741_s1 }
0x1150   :  { %v550_v54 = vpop.permute.xlu2 %549 }
0x1151   :  { %v552_v55 = vadd.f32 %v550_v54, %v542_v53 }
0x1153   :  { %710 = vtanh.f32 %v552_v55  ;;  %566 = vrot.lane.b32.xlu2 %v552_v55, %s741_s1 }
0x1159   :  { %v711_v56 = vpop.eup %710 }
0x115a   :  { %555 = vrot.lane.b32.xlu1 %v711_v56, %s739_s17 }
0x115e   :  { %v576_v57 = vpop.permute.xlu2 %575 }
0x11ad   :  { %v567_v58 = vpop.permute.xlu2 %566 }
0x11ae   :  { %569 = vst.msk [vmem:[#allocation3] sm:$0x3] %vm20_vm0, %v567_v58 }
0x11cc   :  { %v556_v59 = vpop.permute.xlu1 %555 }
0x11cd   :  { %v558_v60 = vmul.f32 %v556_v59, %v539_v49 }
0x11cf   :  { %v578_v61 = vadd.f32 %v576_v57, %v558_v60  ;;  %560 = vrot.lane.b32.xlu1 %v558_v60, %s740_s18 }
0x11d1   :  { %v579_v62 = vmul.f32 0.5, %v578_v61 }
0x11d3   :  { %581 = vrot.lane.b32.xlu0 %v579_v62, %s740_s18 }
0x1241   :  { %v561_v63 = vpop.permute.xlu1 %560 }
0x1242   :  { %564 = vst.msk [vmem:[#allocation2] sm:$0x3] %vm20_vm0, %v561_v63 }
0x1245   :  { %v582_v0 = vpop.permute.xlu0 %581 }
0x1246   :  { %584 = vst.msk [vmem:[#allocation5] sm:$0x3] %vm20_vm0, %v582_v0 }
0x1247   :  { %595 = dma.vmem_to_hbm [thread:$0]  %s591_s8, 32, %s593_s11, [#allocation6]  }
0x1248   :  { %736 = dma.done.wait [#allocation6], 32  }
0x1249   :  { %737 = vsyncadd [#allocation6], 4294967264 }
0x124a   :  { %600 = vsyncpa [#allocation6], 1 }

// kernel: bilstm_forward.5
= control target key start
LH: loop header
LB: loop body
LE: loop exit
PB: predicated region body
PF: predicated region fallthrough
CT: control target
= control target key end

     0   :  { %11 = vsyncpa [#allocation7], 0  ;;  %s1560_s21 = smov [#allocation6]   ;;  %s1561_s23 = smov 64   ;;  %s2017_s0 = inlined_call_operand.vmem [shape: f32[8,2,128], index: 0, kind: input, shape index: {}]   ;;  %s2018_s1 = inlined_call_operand.vmem [shape: f32[8,2,128], index: 1, kind: input, shape index: {}]   ;;  %s2019_s2 = inlined_call_operand.vmem [shape: bf16[32,128], index: 2, kind: input, shape index: {}]   ;;  %s2020_s3 = inlined_call_operand.hbm [shape: bf16[32,128], index: 3, kind: input, shape index: {}]   ;;  %s2021_s4 = inlined_call_operand.vmem [shape: bf16[8,2,32], index: 4, kind: output, shape index: {0}]   ;;  %s2022_s5 = inlined_call_operand.vmem [shape: bf16[8,2,32], index: 5, kind: output, shape index: {1}]  }
   0x1   :  { %s30_s20 = sshll.u32 %s2020_s3, 4  ;;  %s32_s22 = sshll.u32 %s1560_s21, 4  ;;  %s31_s20 = int_to_ptr.hbm [resolvable:$true] %s30_s20  ;;  %s33_s22 = int_to_ptr.vmem [resolvable:$true] %s32_s22 }
   0x2   :  { %s1562_s24 = smov 4  }
   0x3   :  { %38 = dma.hbm_to_vmem [thread:$0]  %s31_s20, 256, %s33_s22, [#allocation7], %s1561_s23, %s1561_s23, %s1562_s24  }
   0x4   :  { %1558 = dma.done.wait [#allocation7], 256  }
   0x5   :  { %1559 = vsyncadd [#allocation7], 4294967040  ;;  %vm74_vm0 = vcmask 254976   ;;  %v1563_v0 = vmov 0.0   ;;  %v1608_v1 = vld [vmem:[%s2019_s2 + $0x8] sm:$0xff]  ;;  %v1610_v2 = vld [vmem:[#allocation6 + $0x8] sm:$0xff] }
   0x6   :  { %75 = vst.msk [vmem:[#allocation2] sm:$0x3] %vm74_vm0, %v1563_v0  ;;  %v1615_v3 = vld [vmem:[%s2019_s2] sm:$0xff]  ;;  %115 = vmatpush.bf16.msra.mxu0 %v1608_v1  ;;  %147 = vmatpush.bf16.msra.mxu1 %v1610_v2  ;;  %v1619_v4 = vld [vmem:[#allocation6] sm:$0xff]  ;;  %s1564_s28 = smov 32   ;;  %vm105_vm1 = vcmask 261120  }
   0x7   :  { %76 = vst.msk [vmem:[#allocation3] sm:$0x3] %vm74_vm0, %v1563_v0  ;;  %277 = vmatpush.bf16.msra.mxu2 %v1608_v1  ;;  %300 = vmatpush.bf16.msra.mxu3 %v1610_v2  ;;  %v91_v11 = vld [vmem:[%s2017_s0] sm:$0x3]  ;;  %v1329_v15 = vld [vmem:[%s2018_s1 + $0xe] sm:$0x3] }
   0x8   :  { %77 = vst.msk [vmem:[#allocation4] sm:$0x3] %vm74_vm0, %v1563_v0  ;;  %s1565_s21 = smov 96  }
   0x9   :  { %78 = vst.msk [vmem:[#allocation5] sm:$0x3] %vm74_vm0, %v1563_v0 }
   0xa   :  { %116 = vmatpush.bf16.msra.mxu0 %v1615_v3  ;;  %148 = vmatpush.bf16.msra.mxu1 %v1619_v4 }
   0xb   :  { %278 = vmatpush.bf16.msra.mxu2 %v1615_v3  ;;  %301 = vmatpush.bf16.msra.mxu3 %v1619_v4 }
   0xd   :  { %v87_v5 = vld [vmem:[#allocation2] sm:$0x3] }
   0xe   :  { %v88_v6 = vld [vmem:[#allocation3] sm:$0x3]  ;;  %v92_v8 = vpack.c.bf16 %v87_v5, %v87_v5  ;;  %444 = vmatpush.bf16.msrb.mxu1 %v1610_v2  ;;  %421 = vmatpush.bf16.msrb.mxu0 %v1608_v1 }
   0xf   :  { %v89_v7 = vld [vmem:[#allocation4] sm:$0x3]  ;;  %176 = vrot.lane.b32.xlu1 %v88_v6, %s1564_s28  ;;  %588 = vmatpush.bf16.msrb.mxu3 %v1610_v2 }
  0x10   :  { %v125_v9 = vpack.c.bf16 %v89_v7, %v89_v7  ;;  %v90_v10 = vld [vmem:[#allocation5] sm:$0x3]  ;;  %1328 = vmatmul.msk.bf16.vlgmr.msra.gmra.mxu0 %vm105_vm1, %v92_v8  ;;  %565 = vmatpush.bf16.msrb.mxu2 %v1608_v1 }
  0x12   :  { %1338 = vmatmul.msk.bf16.vlgmr.msra.gmra.mxu1 %vm105_vm1, %v125_v9  ;;  %422 = vmatpush.bf16.msrb.mxu0 %v1615_v3 }
  0x13   :  { %445 = vmatpush.bf16.msrb.mxu1 %v1619_v4  ;;  %589 = vmatpush.bf16.msrb.mxu3 %v1619_v4 }
  0x14   :  { %566 = vmatpush.bf16.msrb.mxu2 %v1615_v3 }
  0x16   :  { %709 = vmatpush.bf16.msra.mxu0 %v1608_v1 }
  0x17   :  { %217 = vrot.lane.b32.xlu1 %v90_v10, %s1564_s28  ;;  %732 = vmatpush.bf16.msra.mxu1 %v1610_v2 }
  0x1a   :  { %710 = vmatpush.bf16.msra.mxu0 %v1615_v3 }
  0x1b   :  { %733 = vmatpush.bf16.msra.mxu1 %v1619_v4 }
  0x81   :  { %v177_v51 = vpop.permute.xlu1 %176 }
  0x89   :  { %v218_v55 = vpop.permute.xlu1 %217 }
  0x8d   :  { %v118_v12 = vpop.f32.mrf.mxu0 }
  0x8e   :  { %v122_v14 = vadd.f32 %v118_v12, %v91_v11 }
  0x8f   :  { %v150_v13 = vpop.f32.mrf.mxu1 }
  0x90   :  { %1406 = vtanh.f32 %v122_v14  ;;  %v154_v16 = vadd.f32 %v1329_v15, %v150_v13  ;;  %v1339_v21 = vmul.f32 -1.442695, %v122_v14  ;;  %v1342_v13 = vld [vmem:[%s2017_s0 + $0x2] sm:$0x3] }
  0x92   :  { %1408 = vtanh.f32 %v154_v16  ;;  %v1340_v22 = vmul.f32 -1.442695, %v154_v16 }
  0x93   :  { %1410 = vpow2.f32 %v1339_v21 }
  0x94   :  { %1412 = vpow2.f32 %v1340_v22 }
  0x95   :  { %v120_v17 = vpop.f32.mrf.mxu0 }
  0x96   :  { %v1407_v19 = vpop.eup %1406 }
  0x97   :  { %v152_v18 = vpop.f32.mrf.mxu1  ;;  %181 = vrot.lane.b32.xlu0 %v1407_v19, %s1561_s23 }
  0x98   :  { %v1409_v20 = vpop.eup %1408  ;;  %v1344_v18 = vld [vmem:[%s2018_s1 + $0xc] sm:$0x3] }
  0x99   :  { %v1411_v23 = vpop.eup %1410 }
  0x9a   :  { %v158_v24 = vadd.f32 1.0, %v1411_v23  ;;  %v1413_v25 = vpop.eup %1412 }
  0x9b   :  { %v199_v26 = vadd.f32 1.0, %v1413_v25 }
  0x9c   :  { %1414 = vrcp.f32 %v158_v24  ;;  %v170_v35 = vand.u32 2147483648, %v158_v24  ;;  %vm164_vm3 = vweird.f32 %v158_v24  ;;  %v168_v36 = vand.u32 2147483647, %v158_v24 }
  0x9d   :  { %1416 = vrcp.f32 %v199_v26  ;;  %vm205_vm6 = vweird.f32 %v199_v26  ;;  %v211_v44 = vand.u32 2147483648, %v199_v26  ;;  %v209_v45 = vand.u32 2147483647, %v199_v26 }
  0x9e   :  { %v171_v39 = vor.u32 1.1754944e-38, %v170_v35  ;;  %vm169_vm5 = vcmp.eq.f32.partialorder %v168_v36, 8.507059e+37 }
  0x9f   :  { %222 = vrot.lane.b32.xlu0 %v1409_v20, %s1561_s23  ;;  %v212_v47 = vor.u32 1.1754944e-38, %v211_v44  ;;  %vm210_vm9 = vcmp.eq.f32.partialorder %v209_v45, 8.507059e+37 }
  0xa2   :  { %v1415_v27 = vpop.eup %1414 }
  0xa3   :  { %v160_v28 = vmul.f32 %v1415_v27, %v158_v24  ;;  %v1417_v30 = vpop.eup %1416  ;;  %vm165_vm2 = vweird.f32 %v1415_v27 }
  0xa4   :  { %v201_v32 = vmul.f32 %v1417_v30, %v199_v26  ;;  %vm166_vm4 = vmor %vm164_vm3, %vm165_vm2  ;;  %vm206_vm7 = vweird.f32 %v1417_v30 }
  0xa5   :  { %v161_v29 = vsub.f32 1.0, %v160_v28  ;;  %vm207_vm8 = vmor %vm205_vm6, %vm206_vm7 }
  0xa6   :  { %v202_v34 = vsub.f32 1.0, %v201_v32 }
  0xa7   :  { %v162_v31 = vmul.f32 %v1415_v27, %v161_v29 }
  0xa8   :  { %v203_v38 = vmul.f32 %v1417_v30, %v202_v34 }
  0xa9   :  { %v163_v33 = vadd.f32 %v1415_v27, %v162_v31 }
  0xaa   :  { %v204_v42 = vadd.f32 %v1417_v30, %v203_v38 }
  0xab   :  { %v167_v37 = vsel %vm166_vm4, %v1415_v27, %v163_v33 }
  0xac   :  { %v172_v40 = vsel %vm169_vm5, %v171_v39, %v167_v37  ;;  %v208_v46 = vsel %vm207_vm8, %v1417_v30, %v204_v42 }
  0xad   :  { %v213_v48 = vsel %vm210_vm9, %v212_v47, %v208_v46  ;;  %v179_v52 = vmul.f32 %v177_v51, %v172_v40 }
  0xae   :  { %v220_v56 = vmul.f32 %v218_v55, %v213_v48 }
 0x109   :  { %v182_v41 = vpop.permute.xlu0 %181 }
 0x10a   :  { %v184_v43 = vmul.f32 %v182_v41, %v172_v40 }
 0x10c   :  { %186 = vrot.lane.b32.xlu2 %v184_v43, %s1564_s28 }
 0x111   :  { %v223_v49 = vpop.permute.xlu0 %222 }
 0x112   :  { %v225_v50 = vmul.f32 %v223_v49, %v213_v48 }
 0x114   :  { %227 = vrot.lane.b32.xlu2 %v225_v50, %s1564_s28 }
 0x166   :  { %v187_v53 = vpop.permute.xlu2 %186 }
 0x167   :  { %v1653_v54 = vadd.f32 %v187_v53, %v179_v52 }
 0x169   :  { %1418 = vtanh.f32 %v1653_v54 }
 0x16e   :  { %v228_v57 = vpop.permute.xlu2 %227 }
 0x16f   :  { %v1419_v58 = vpop.eup %1418  ;;  %v1656_v59 = vadd.f32 %v228_v57, %v220_v56 }
 0x170   :  { %192 = vrot.lane.b32.xlu0 %v1419_v58, %s1561_s23 }
 0x171   :  { %1420 = vtanh.f32 %v1656_v59 }
 0x177   :  { %v1421_v60 = vpop.eup %1420 }
 0x178   :  { %233 = vrot.lane.b32.xlu1 %v1421_v60, %s1561_s23 }
 0x1e2   :  { %v193_v61 = vpop.permute.xlu0 %192 }
 0x1e3   :  { %v195_v62 = vmul.f32 %v193_v61, %v172_v40 }
 0x1e5   :  { %v1661_v63 = vpack.c.bf16 %v195_v62, %v195_v62 }
 0x1e7   :  { %v264_v0 = vunpack.c.l.b16 %v1661_v63 }
 0x1e9   :  { %v265_v5 = vpack.c.b16 %v264_v0, %v264_v0 }
 0x1ea   :  { %v234_v6 = vpop.permute.xlu1 %233 }
 0x1eb   :  { %v236_v7 = vmul.f32 %v234_v6, %v213_v48  ;;  %266 = vrot.lane.b32.xlu2 %v265_v5, %s1564_s28 }
 0x1ed   :  { %v1665_v8 = vpack.c.bf16 %v236_v7, %v236_v7 }
 0x1ef   :  { %v287_v9 = vunpack.c.l.b16 %v1665_v8 }
 0x1f1   :  { %v288_v10 = vpack.c.b16 %v287_v9, %v287_v9 }
 0x1f3   :  { %289 = vrot.lane.b32.xlu0 %v288_v10, %s1564_s28 }
 0x245   :  { %v267_v11 = vpop.permute.xlu2 %266 }
 0x246   :  { %1343 = vmatmul.msk.bf16.vlgmr.msra.gmra.mxu2 %vm105_vm1, %v267_v11 }
 0x247   :  { %853 = vmatpush.bf16.msra.mxu2 %v1608_v1 }
 0x24b   :  { %854 = vmatpush.bf16.msra.mxu2 %v1615_v3 }
 0x265   :  { %v290_v12 = vpop.permute.xlu0 %289 }
 0x266   :  { %1345 = vmatmul.msk.bf16.vlgmr.msra.gmra.mxu3 %vm105_vm1, %v290_v12 }
 0x267   :  { %876 = vmatpush.bf16.msra.mxu3 %v1610_v2 }
 0x26b   :  { %877 = vmatpush.bf16.msra.mxu3 %v1619_v4 }
 0x2c9   :  { %v280_v14 = vpop.f32.mrf.mxu2 }
 0x2ca   :  { %v284_v15 = vadd.f32 %v1342_v13, %v280_v14 }
 0x2cc   :  { %1422 = vtanh.f32 %v284_v15  ;;  %v1346_v23 = vmul.f32 -1.442695, %v284_v15  ;;  %v1350_v15 = vld [vmem:[%s2017_s0 + $0x4] sm:$0x3] }
 0x2d1   :  { %v282_v16 = vpop.f32.mrf.mxu2 }
 0x2d2   :  { %v1423_v17 = vpop.eup %1422 }
 0x2d3   :  { %330 = vrot.lane.b32.xlu1 %v1423_v17, %s1561_s23 }
 0x2e9   :  { %v303_v19 = vpop.f32.mrf.mxu3 }
 0x2ea   :  { %v307_v20 = vadd.f32 %v1344_v18, %v303_v19  ;;  %v1352_v18 = vld [vmem:[%s2018_s1 + $0xa] sm:$0x3] }
 0x2ec   :  { %1424 = vtanh.f32 %v307_v20  ;;  %v1347_v24 = vmul.f32 -1.442695, %v307_v20 }
 0x2ed   :  { %1426 = vpow2.f32 %v1346_v23 }
 0x2ee   :  { %1428 = vpow2.f32 %v1347_v24 }
 0x2f1   :  { %v305_v21 = vpop.f32.mrf.mxu3 }
 0x2f2   :  { %v1425_v22 = vpop.eup %1424 }
 0x2f3   :  { %367 = vrot.lane.b32.xlu2 %v1425_v22, %s1561_s23  ;;  %v1427_v25 = vpop.eup %1426 }
 0x2f4   :  { %v311_v26 = vadd.f32 1.0, %v1427_v25  ;;  %v1429_v27 = vpop.eup %1428 }
 0x2f5   :  { %v348_v28 = vadd.f32 1.0, %v1429_v27 }
 0x2f6   :  { %1430 = vrcp.f32 %v311_v26  ;;  %v323_v37 = vand.u32 2147483648, %v311_v26  ;;  %vm317_vm11 = vweird.f32 %v311_v26  ;;  %v321_v38 = vand.u32 2147483647, %v311_v26 }
 0x2f7   :  { %1432 = vrcp.f32 %v348_v28  ;;  %v360_v46 = vand.u32 2147483648, %v348_v28  ;;  %vm354_vm15 = vweird.f32 %v348_v28  ;;  %v358_v47 = vand.u32 2147483647, %v348_v28 }
 0x2f8   :  { %v324_v41 = vor.u32 1.1754944e-38, %v323_v37  ;;  %vm322_vm13 = vcmp.eq.f32.partialorder %v321_v38, 8.507059e+37 }
 0x2f9   :  { %v361_v49 = vor.u32 1.1754944e-38, %v360_v46  ;;  %vm359_vm3 = vcmp.eq.f32.partialorder %v358_v47, 8.507059e+37 }
 0x2fc   :  { %v1431_v29 = vpop.eup %1430 }
 0x2fd   :  { %v313_v30 = vmul.f32 %v1431_v29, %v311_v26  ;;  %v1433_v32 = vpop.eup %1432  ;;  %vm318_vm10 = vweird.f32 %v1431_v29 }
 0x2fe   :  { %v350_v34 = vmul.f32 %v1433_v32, %v348_v28  ;;  %vm319_vm12 = vmor %vm317_vm11, %vm318_vm10  ;;  %vm355_vm14 = vweird.f32 %v1433_v32 }
 0x2ff   :  { %v314_v31 = vsub.f32 1.0, %v313_v30  ;;  %vm356_vm2 = vmor %vm354_vm15, %vm355_vm14 }
 0x300   :  { %v351_v36 = vsub.f32 1.0, %v350_v34 }
 0x301   :  { %v315_v33 = vmul.f32 %v1431_v29, %v314_v31 }
 0x302   :  { %v352_v40 = vmul.f32 %v1433_v32, %v351_v36 }
 0x303   :  { %v316_v35 = vadd.f32 %v1431_v29, %v315_v33 }
 0x304   :  { %v353_v45 = vadd.f32 %v1433_v32, %v352_v40 }
 0x305   :  { %v320_v39 = vsel %vm319_vm12, %v1431_v29, %v316_v35 }
 0x306   :  { %v325_v43 = vsel %vm322_vm13, %v324_v41, %v320_v39  ;;  %v357_v48 = vsel %vm356_vm2, %v1433_v32, %v353_v45 }
 0x307   :  { %v362_v51 = vsel %vm359_vm3, %v361_v49, %v357_v48  ;;  %v328_v53 = vmul.f32 %v325_v43, %v1653_v54 }
 0x308   :  { %v365_v57 = vmul.f32 %v362_v51, %v1656_v59 }
 0x345   :  { %v331_v42 = vpop.permute.xlu1 %330 }
 0x346   :  { %v333_v44 = vmul.f32 %v331_v42, %v325_v43 }
 0x348   :  { %335 = vrot.lane.b32.xlu0 %v333_v44, %s1564_s28 }
 0x34d   :  { %v368_v50 = vpop.permute.xlu2 %367 }
 0x34e   :  { %v370_v52 = vmul.f32 %v368_v50, %v362_v51 }
 0x350   :  { %372 = vrot.lane.b32.xlu1 %v370_v52, %s1564_s28 }
 0x3ba   :  { %v336_v55 = vpop.permute.xlu0 %335 }
 0x3bb   :  { %v1686_v56 = vadd.f32 %v336_v55, %v328_v53 }
 0x3bd   :  { %1434 = vtanh.f32 %v1686_v56 }
 0x3c2   :  { %v373_v58 = vpop.permute.xlu1 %372 }
 0x3c3   :  { %v1435_v60 = vpop.eup %1434  ;;  %v1690_v61 = vadd.f32 %v373_v58, %v365_v57 }
 0x3c4   :  { %341 = vrot.lane.b32.xlu2 %v1435_v60, %s1561_s23 }
 0x3c5   :  { %1436 = vtanh.f32 %v1690_v61 }
 0x3cb   :  { %v1437_v62 = vpop.eup %1436 }
 0x3cc   :  { %378 = vrot.lane.b32.xlu0 %v1437_v62, %s1561_s23 }
 0x41e   :  { %v342_v0 = vpop.permute.xlu2 %341 }
 0x41f   :  { %v344_v54 = vmul.f32 %v342_v0, %v325_v43 }
 0x421   :  { %v1695_v5 = vpack.c.bf16 %v344_v54, %v344_v54 }
 0x423   :  { %v408_v6 = vunpack.c.l.b16 %v1695_v5 }
 0x425   :  { %v409_v7 = vpack.c.b16 %v408_v6, %v408_v6 }
 0x427   :  { %410 = vrot.lane.b32.xlu1 %v409_v7, %s1564_s28 }
 0x43e   :  { %v379_v59 = vpop.permute.xlu0 %378 }
 0x43f   :  { %v381_v9 = vmul.f32 %v379_v59, %v362_v51 }
 0x441   :  { %v1699_v10 = vpack.c.bf16 %v381_v9, %v381_v9 }
 0x443   :  { %v431_v11 = vunpack.c.l.b16 %v1699_v10 }
 0x445   :  { %v432_v12 = vpack.c.b16 %v431_v11, %v431_v11 }
 0x447   :  { %433 = vrot.lane.b32.xlu2 %v432_v12, %s1564_s28 }
 0x499   :  { %v411_v13 = vpop.permute.xlu1 %410 }
 0x49a   :  { %1351 = vmatmul.msk.bf16.vlgmr.msrb.gmra.mxu0 %vm105_vm1, %v411_v13 }
 0x49b   :  { %997 = vmatpush.bf16.msrb.mxu0 %v1608_v1 }
 0x49f   :  { %998 = vmatpush.bf16.msrb.mxu0 %v1615_v3 }
 0x4a1   :  { %v434_v14 = vpop.permute.xlu2 %433 }
 0x4a2   :  { %1353 = vmatmul.msk.bf16.vlgmr.msrb.gmra.mxu1 %vm105_vm1, %v434_v14 }
 0x4a3   :  { %1020 = vmatpush.bf16.msrb.mxu1 %v1610_v2 }
 0x4a7   :  { %1021 = vmatpush.bf16.msrb.mxu1 %v1619_v4 }
 0x517   :  { %v424_v16 = vpop.f32.mrf.mxu0 }
 0x518   :  { %v428_v17 = vadd.f32 %v1350_v15, %v424_v16 }
 0x51a   :  { %1438 = vtanh.f32 %v428_v17  ;;  %v1354_v25 = vmul.f32 -1.442695, %v428_v17 }
 0x51f   :  { %v426_v19 = vpop.f32.mrf.mxu0  ;;  %v447_v20 = vpop.f32.mrf.mxu1 }
 0x520   :  { %v1439_v21 = vpop.eup %1438  ;;  %v451_v22 = vadd.f32 %v1352_v18, %v447_v20  ;;  %v1358_v19 = vld [vmem:[%s2017_s0 + $0x6] sm:$0x3] }
 0x521   :  { %474 = vrot.lane.b32.xlu0 %v1439_v21, %s1561_s23 }
 0x522   :  { %1440 = vtanh.f32 %v451_v22  ;;  %v1355_v26 = vmul.f32 -1.442695, %v451_v22 }
 0x523   :  { %1442 = vpow2.f32 %v1354_v25 }
 0x524   :  { %1444 = vpow2.f32 %v1355_v26 }
 0x527   :  { %v449_v23 = vpop.f32.mrf.mxu1 }
 0x528   :  { %v1441_v24 = vpop.eup %1440 }
 0x529   :  { %511 = vrot.lane.b32.xlu1 %v1441_v24, %s1561_s23  ;;  %v1443_v27 = vpop.eup %1442 }
 0x52a   :  { %v455_v28 = vadd.f32 1.0, %v1443_v27  ;;  %v1445_v29 = vpop.eup %1444 }
 0x52b   :  { %v492_v30 = vadd.f32 1.0, %v1445_v29 }
 0x52c   :  { %1446 = vrcp.f32 %v455_v28  ;;  %v467_v39 = vand.u32 2147483648, %v455_v28  ;;  %vm461_vm5 = vweird.f32 %v455_v28  ;;  %v465_v40 = vand.u32 2147483647, %v455_v28 }
 0x52d   :  { %1448 = vrcp.f32 %v492_v30  ;;  %v504_v48 = vand.u32 2147483648, %v492_v30  ;;  %vm498_vm9 = vweird.f32 %v492_v30  ;;  %v502_v49 = vand.u32 2147483647, %v492_v30 }
 0x52e   :  { %v468_v43 = vor.u32 1.1754944e-38, %v467_v39  ;;  %vm466_vm7 = vcmp.eq.f32.partialorder %v465_v40, 8.507059e+37 }
 0x52f   :  { %v505_v51 = vor.u32 1.1754944e-38, %v504_v48  ;;  %vm503_vm11 = vcmp.eq.f32.partialorder %v502_v49, 8.507059e+37 }
 0x532   :  { %v1447_v31 = vpop.eup %1446 }
 0x533   :  { %v457_v32 = vmul.f32 %v1447_v31, %v455_v28  ;;  %v1449_v34 = vpop.eup %1448  ;;  %vm462_vm4 = vweird.f32 %v1447_v31 }
 0x534   :  { %v494_v36 = vmul.f32 %v1449_v34, %v492_v30  ;;  %vm463_vm6 = vmor %vm461_vm5, %vm462_vm4  ;;  %vm499_vm8 = vweird.f32 %v1449_v34 }
 0x535   :  { %v458_v33 = vsub.f32 1.0, %v457_v32  ;;  %vm500_vm10 = vmor %vm498_vm9, %vm499_vm8 }
 0x536   :  { %v495_v38 = vsub.f32 1.0, %v494_v36 }
 0x537   :  { %v459_v35 = vmul.f32 %v1447_v31, %v458_v33 }
 0x538   :  { %v496_v42 = vmul.f32 %v1449_v34, %v495_v38 }
 0x539   :  { %v460_v37 = vadd.f32 %v1447_v31, %v459_v35 }
 0x53a   :  { %v497_v47 = vadd.f32 %v1449_v34, %v496_v42 }
 0x53b   :  { %v464_v41 = vsel %vm463_vm6, %v1447_v31, %v460_v37 }
 0x53c   :  { %v469_v45 = vsel %vm466_vm7, %v468_v43, %v464_v41  ;;  %v501_v50 = vsel %vm500_vm10, %v1449_v34, %v497_v47 }
 0x53d   :  { %v506_v53 = vsel %vm503_vm11, %v505_v51, %v501_v50  ;;  %v472_v57 = vmul.f32 %v469_v45, %v1686_v56 }
 0x53e   :  { %v509_v0 = vmul.f32 %v506_v53, %v1690_v61 }
 0x593   :  { %v475_v44 = vpop.permute.xlu0 %474 }
 0x594   :  { %v477_v46 = vmul.f32 %v475_v44, %v469_v45 }
 0x596   :  { %479 = vrot.lane.b32.xlu2 %v477_v46, %s1564_s28 }
 0x59b   :  { %v512_v52 = vpop.permute.xlu1 %511 }
 0x59c   :  { %v514_v55 = vmul.f32 %v512_v52, %v506_v53 }
 0x59e   :  { %516 = vrot.lane.b32.xlu0 %v514_v55, %s1564_s28 }
 0x5f0   :  { %v480_v58 = vpop.permute.xlu2 %479 }
 0x5f1   :  { %v1720_v60 = vadd.f32 %v480_v58, %v472_v57 }
 0x5f3   :  { %1450 = vtanh.f32 %v1720_v60 }
 0x5f9   :  { %v1451_v62 = vpop.eup %1450 }
 0x5fa   :  { %485 = vrot.lane.b32.xlu1 %v1451_v62, %s1561_s23 }
 0x610   :  { %v517_v54 = vpop.permute.xlu0 %516 }
 0x611   :  { %v1725_v6 = vadd.f32 %v517_v54, %v509_v0 }
 0x613   :  { %1452 = vtanh.f32 %v1725_v6 }
 0x619   :  { %v1453_v7 = vpop.eup %1452 }
 0x61a   :  { %522 = vrot.lane.b32.xlu2 %v1453_v7, %s1561_s23 }
 0x66c   :  { %v486_v59 = vpop.permute.xlu1 %485 }
 0x66d   :  { %v488_v56 = vmul.f32 %v486_v59, %v469_v45 }
 0x66f   :  { %v1729_v9 = vpack.c.bf16 %v488_v56, %v488_v56 }
 0x671   :  { %v552_v11 = vunpack.c.l.b16 %v1729_v9 }
 0x673   :  { %v553_v12 = vpack.c.b16 %v552_v11, %v552_v11 }
 0x674   :  { %v523_v13 = vpop.permute.xlu2 %522 }
 0x675   :  { %v525_v14 = vmul.f32 %v523_v13, %v506_v53  ;;  %554 = vrot.lane.b32.xlu0 %v553_v12, %s1564_s28 }
 0x677   :  { %v1733_v61 = vpack.c.bf16 %v525_v14, %v525_v14 }
 0x679   :  { %v575_v15 = vunpack.c.l.b16 %v1733_v61 }
 0x67b   :  { %v576_v16 = vpack.c.b16 %v575_v15, %v575_v15 }
 0x67d   :  { %577 = vrot.lane.b32.xlu1 %v576_v16, %s1564_s28 }
 0x6e7   :  { %v555_v17 = vpop.permute.xlu0 %554 }
 0x6e8   :  { %1359 = vmatmul.msk.bf16.vlgmr.msrb.gmra.mxu2 %vm105_vm1, %v555_v17 }
 0x6e9   :  { %1141 = vmatpush.bf16.msrb.mxu2 %v1608_v1  ;;  %v1360_v1 = vld [vmem:[%s2018_s1 + $0x8] sm:$0x3] }
 0x6ed   :  { %1142 = vmatpush.bf16.msrb.mxu2 %v1615_v3 }
 0x6ef   :  { %v578_v18 = vpop.permute.xlu1 %577 }
 0x6f0   :  { %1361 = vmatmul.msk.bf16.vlgmr.msrb.gmra.mxu3 %vm105_vm1, %v578_v18 }
 0x6f1   :  { %1163 = vmatpush.bf16.msrb.mxu3 %v1610_v2 }
 0x6f5   :  { %1164 = vmatpush.bf16.msrb.mxu3 %v1619_v4 }
 0x76b   :  { %v568_v20 = vpop.f32.mrf.mxu2 }
 0x76c   :  { %v572_v21 = vadd.f32 %v1358_v19, %v568_v20 }
 0x76e   :  { %1454 = vtanh.f32 %v572_v21  ;;  %v1362_v25 = vmul.f32 -1.442695, %v572_v21  ;;  %v1366_v21 = vld [vmem:[%s2017_s0 + $0x8] sm:$0x3] }
 0x773   :  { %v570_v22 = vpop.f32.mrf.mxu2  ;;  %v591_v3 = vpop.f32.mrf.mxu3 }
 0x774   :  { %v1455_v23 = vpop.eup %1454  ;;  %v595_v24 = vadd.f32 %v1360_v1, %v591_v3 }
 0x775   :  { %618 = vrot.lane.b32.xlu2 %v1455_v23, %s1561_s23 }
 0x776   :  { %1456 = vtanh.f32 %v595_v24  ;;  %v1363_v31 = vmul.f32 -1.442695, %v595_v24  ;;  %v1368_v24 = vld [vmem:[%s2018_s1 + $0x6] sm:$0x3] }
 0x777   :  { %1458 = vpow2.f32 %v1362_v25 }
 0x77b   :  { %v593_v2 = vpop.f32.mrf.mxu3 }
 0x77c   :  { %v1457_v4 = vpop.eup %1456 }
 0x77d   :  { %655 = vrot.lane.b32.xlu0 %v1457_v4, %s1561_s23  ;;  %v1459_v26 = vpop.eup %1458 }
 0x77e   :  { %v599_v27 = vadd.f32 1.0, %v1459_v26 }
 0x780   :  { %1460 = vrcp.f32 %v599_v27  ;;  %v611_v34 = vand.u32 2147483648, %v599_v27  ;;  %vm605_vm13 = vweird.f32 %v599_v27  ;;  %v609_v35 = vand.u32 2147483647, %v599_v27 }
 0x781   :  { %1462 = vpow2.f32 %v1363_v31 }
 0x782   :  { %v612_v38 = vor.u32 1.1754944e-38, %v611_v34  ;;  %vm610_vm15 = vcmp.eq.f32.partialorder %v609_v35, 8.507059e+37 }
 0x786   :  { %v1461_v28 = vpop.eup %1460 }
 0x787   :  { %v601_v29 = vmul.f32 %v1461_v28, %v599_v27  ;;  %vm606_vm12 = vweird.f32 %v1461_v28  ;;  %v1463_v36 = vpop.eup %1462 }
 0x788   :  { %vm607_vm14 = vmor %vm605_vm13, %vm606_vm12  ;;  %v636_v39 = vadd.f32 1.0, %v1463_v36 }
 0x789   :  { %v602_v30 = vsub.f32 1.0, %v601_v29 }
 0x78a   :  { %1464 = vrcp.f32 %v636_v39  ;;  %v648_v48 = vand.u32 2147483648, %v636_v39  ;;  %vm642_vm3 = vweird.f32 %v636_v39  ;;  %v646_v49 = vand.u32 2147483647, %v636_v39 }
 0x78b   :  { %v603_v32 = vmul.f32 %v1461_v28, %v602_v30 }
 0x78c   :  { %v649_v51 = vor.u32 1.1754944e-38, %v648_v48  ;;  %vm647_vm5 = vcmp.eq.f32.partialorder %v646_v49, 8.507059e+37 }
 0x78d   :  { %v604_v33 = vadd.f32 %v1461_v28, %v603_v32 }
 0x78f   :  { %v608_v37 = vsel %vm607_vm14, %v1461_v28, %v604_v33 }
 0x790   :  { %v613_v41 = vsel %vm610_vm15, %v612_v38, %v608_v37  ;;  %v1465_v43 = vpop.eup %1464 }
 0x791   :  { %v638_v44 = vmul.f32 %v1465_v43, %v636_v39  ;;  %vm643_vm2 = vweird.f32 %v1465_v43  ;;  %v616_v57 = vmul.f32 %v613_v41, %v1720_v60 }
 0x792   :  { %vm644_vm4 = vmor %vm642_vm3, %vm643_vm2 }
 0x793   :  { %v639_v45 = vsub.f32 1.0, %v638_v44 }
 0x795   :  { %v640_v46 = vmul.f32 %v1465_v43, %v639_v45 }
 0x797   :  { %v641_v47 = vadd.f32 %v1465_v43, %v640_v46 }
 0x799   :  { %v645_v50 = vsel %vm644_vm4, %v1465_v43, %v641_v47 }
 0x79a   :  { %v650_v53 = vsel %vm647_vm5, %v649_v51, %v645_v50 }
 0x79b   :  { %v653_v0 = vmul.f32 %v650_v53, %v1725_v6 }
 0x7cf   :  { %v619_v40 = vpop.permute.xlu2 %618 }
 0x7d0   :  { %v621_v42 = vmul.f32 %v619_v40, %v613_v41 }
 0x7d2   :  { %623 = vrot.lane.b32.xlu1 %v621_v42, %s1564_s28 }
 0x7ef   :  { %v656_v52 = vpop.permute.xlu0 %655 }
 0x7f0   :  { %v658_v55 = vmul.f32 %v656_v52, %v650_v53 }
 0x7f2   :  { %660 = vrot.lane.b32.xlu2 %v658_v55, %s1564_s28 }
 0x844   :  { %v624_v58 = vpop.permute.xlu1 %623 }
 0x845   :  { %v1754_v62 = vadd.f32 %v624_v58, %v616_v57 }
 0x847   :  { %1466 = vtanh.f32 %v1754_v62 }
 0x84c   :  { %v661_v54 = vpop.permute.xlu2 %660 }
 0x84d   :  { %v1467_v7 = vpop.eup %1466  ;;  %v1758_v59 = vadd.f32 %v661_v54, %v653_v0 }
 0x84e   :  { %629 = vrot.lane.b32.xlu0 %v1467_v7, %s1561_s23 }
 0x84f   :  { %1468 = vtanh.f32 %v1758_v59 }
 0x855   :  { %v1469_v56 = vpop.eup %1468 }
 0x856   :  { %666 = vrot.lane.b32.xlu1 %v1469_v56, %s1561_s23 }
 0x8c0   :  { %v630_v11 = vpop.permute.xlu0 %629 }
 0x8c1   :  { %v632_v60 = vmul.f32 %v630_v11, %v613_v41 }
 0x8c3   :  { %v1763_v12 = vpack.c.bf16 %v632_v60, %v632_v60 }
 0x8c5   :  { %v696_v13 = vunpack.c.l.b16 %v1763_v12 }
 0x8c7   :  { %v697_v14 = vpack.c.b16 %v696_v13, %v696_v13 }
 0x8c8   :  { %v667_v15 = vpop.permute.xlu1 %666 }
 0x8c9   :  { %v669_v6 = vmul.f32 %v667_v15, %v650_v53  ;;  %698 = vrot.lane.b32.xlu2 %v697_v14, %s1564_s28 }
 0x8cb   :  { %v1767_v16 = vpack.c.bf16 %v669_v6, %v669_v6 }
 0x8cd   :  { %v719_v17 = vunpack.c.l.b16 %v1767_v16 }
 0x8cf   :  { %v720_v18 = vpack.c.b16 %v719_v17, %v719_v17 }
 0x8d1   :  { %721 = vrot.lane.b32.xlu0 %v720_v18, %s1564_s28 }
 0x923   :  { %v699_v19 = vpop.permute.xlu2 %698 }
 0x924   :  { %1367 = vmatmul.msk.bf16.vlgmr.msra.gmra.mxu0 %vm105_vm1, %v699_v19 }
 0x943   :  { %v722_v20 = vpop.permute.xlu0 %721 }
 0x944   :  { %1369 = vmatmul.msk.bf16.vlgmr.msra.gmra.mxu1 %vm105_vm1, %v722_v20 }
 0x9a1   :  { %v712_v1 = vpop.f32.mrf.mxu0 }
 0x9a2   :  { %v716_v22 = vadd.f32 %v1366_v21, %v712_v1 }
 0x9a4   :  { %1470 = vtanh.f32 %v716_v22  ;;  %v1370_v27 = vmul.f32 -1.442695, %v716_v22 }
 0x9a9   :  { %v714_v3 = vpop.f32.mrf.mxu0 }
 0x9aa   :  { %v1471_v23 = vpop.eup %1470 }
 0x9ab   :  { %762 = vrot.lane.b32.xlu1 %v1471_v23, %s1561_s23  ;;  %v1374_v23 = vld [vmem:[%s2017_s0 + $0xa] sm:$0x3] }
 0x9c1   :  { %v735_v2 = vpop.f32.mrf.mxu1 }
 0x9c2   :  { %v739_v4 = vadd.f32 %v1368_v24, %v735_v2 }
 0x9c4   :  { %1472 = vtanh.f32 %v739_v4  ;;  %v1371_v28 = vmul.f32 -1.442695, %v739_v4  ;;  %v1376_v4 = vld [vmem:[%s2018_s1 + $0x4] sm:$0x3] }
 0x9c5   :  { %1474 = vpow2.f32 %v1370_v27 }
 0x9c6   :  { %1476 = vpow2.f32 %v1371_v28 }
 0x9c9   :  { %v737_v25 = vpop.f32.mrf.mxu1 }
 0x9ca   :  { %v1473_v26 = vpop.eup %1472 }
 0x9cb   :  { %799 = vrot.lane.b32.xlu2 %v1473_v26, %s1561_s23  ;;  %v1475_v29 = vpop.eup %1474 }
 0x9cc   :  { %v743_v30 = vadd.f32 1.0, %v1475_v29  ;;  %v1477_v31 = vpop.eup %1476 }
 0x9cd   :  { %v780_v32 = vadd.f32 1.0, %v1477_v31 }
 0x9ce   :  { %1478 = vrcp.f32 %v743_v30  ;;  %v755_v41 = vand.u32 2147483648, %v743_v30  ;;  %vm749_vm7 = vweird.f32 %v743_v30  ;;  %v753_v42 = vand.u32 2147483647, %v743_v30 }
 0x9cf   :  { %1480 = vrcp.f32 %v780_v32  ;;  %v792_v50 = vand.u32 2147483648, %v780_v32  ;;  %vm786_vm11 = vweird.f32 %v780_v32  ;;  %v790_v51 = vand.u32 2147483647, %v780_v32 }
 0x9d0   :  { %v756_v45 = vor.u32 1.1754944e-38, %v755_v41  ;;  %vm754_vm9 = vcmp.eq.f32.partialorder %v753_v42, 8.507059e+37 }
 0x9d1   :  { %v793_v53 = vor.u32 1.1754944e-38, %v792_v50  ;;  %vm791_vm13 = vcmp.eq.f32.partialorder %v790_v51, 8.507059e+37 }
 0x9d4   :  { %v1479_v33 = vpop.eup %1478 }
 0x9d5   :  { %v745_v34 = vmul.f32 %v1479_v33, %v743_v30  ;;  %v1481_v36 = vpop.eup %1480  ;;  %vm750_vm6 = vweird.f32 %v1479_v33 }
 0x9d6   :  { %v782_v38 = vmul.f32 %v1481_v36, %v780_v32  ;;  %vm751_vm8 = vmor %vm749_vm7, %vm750_vm6  ;;  %vm787_vm10 = vweird.f32 %v1481_v36 }
 0x9d7   :  { %v746_v35 = vsub.f32 1.0, %v745_v34  ;;  %vm788_vm12 = vmor %vm786_vm11, %vm787_vm10 }
 0x9d8   :  { %v783_v40 = vsub.f32 1.0, %v782_v38 }
 0x9d9   :  { %v747_v37 = vmul.f32 %v1479_v33, %v746_v35 }
 0x9da   :  { %v784_v44 = vmul.f32 %v1481_v36, %v783_v40 }
 0x9db   :  { %v748_v39 = vadd.f32 %v1479_v33, %v747_v37 }
 0x9dc   :  { %v785_v49 = vadd.f32 %v1481_v36, %v784_v44 }
 0x9dd   :  { %v752_v43 = vsel %vm751_vm8, %v1479_v33, %v748_v39 }
 0x9de   :  { %v757_v47 = vsel %vm754_vm9, %v756_v45, %v752_v43  ;;  %v789_v52 = vsel %vm788_vm12, %v1481_v36, %v785_v49 }
 0x9df   :  { %v794_v57 = vsel %vm791_vm13, %v793_v53, %v789_v52  ;;  %v760_v0 = vmul.f32 %v757_v47, %v1754_v62 }
 0x9e0   :  { %v797_v56 = vmul.f32 %v794_v57, %v1758_v59 }
 0xa1d   :  { %v763_v46 = vpop.permute.xlu1 %762 }
 0xa1e   :  { %v765_v48 = vmul.f32 %v763_v46, %v757_v47 }
 0xa20   :  { %767 = vrot.lane.b32.xlu0 %v765_v48, %s1564_s28 }
 0xa25   :  { %v800_v55 = vpop.permute.xlu2 %799 }
 0xa26   :  { %v802_v58 = vmul.f32 %v800_v55, %v794_v57 }
 0xa28   :  { %804 = vrot.lane.b32.xlu1 %v802_v58, %s1564_s28 }
 0xa92   :  { %v768_v54 = vpop.permute.xlu0 %767 }
 0xa93   :  { %v1784_v7 = vadd.f32 %v768_v54, %v760_v0 }
 0xa95   :  { %1482 = vtanh.f32 %v1784_v7 }
 0xa9a   :  { %v805_v11 = vpop.permute.xlu1 %804 }
 0xa9b   :  { %v1483_v60 = vpop.eup %1482  ;;  %v1788_v13 = vadd.f32 %v805_v11, %v797_v56 }
 0xa9c   :  { %773 = vrot.lane.b32.xlu2 %v1483_v60, %s1561_s23 }
 0xa9d   :  { %1484 = vtanh.f32 %v1788_v13 }
 0xaa3   :  { %v1485_v14 = vpop.eup %1484 }
 0xaa4   :  { %810 = vrot.lane.b32.xlu0 %v1485_v14, %s1561_s23 }
 0xaf6   :  { %v774_v15 = vpop.permute.xlu2 %773 }
 0xaf7   :  { %v776_v62 = vmul.f32 %v774_v15, %v757_v47 }
 0xaf9   :  { %v1793_v6 = vpack.c.bf16 %v776_v62, %v776_v62 }
 0xafb   :  { %v840_v17 = vunpack.c.l.b16 %v1793_v6 }
 0xafd   :  { %v841_v18 = vpack.c.b16 %v840_v17, %v840_v17 }
 0xaff   :  { %842 = vrot.lane.b32.xlu1 %v841_v18, %s1564_s28 }
 0xb16   :  { %v811_v59 = vpop.permute.xlu0 %810 }
 0xb17   :  { %v813_v19 = vmul.f32 %v811_v59, %v794_v57 }
 0xb19   :  { %v1797_v20 = vpack.c.bf16 %v813_v19, %v813_v19 }
 0xb1b   :  { %v863_v21 = vunpack.c.l.b16 %v1797_v20 }
 0xb1d   :  { %v864_v1 = vpack.c.b16 %v863_v21, %v863_v21 }
 0xb1f   :  { %865 = vrot.lane.b32.xlu2 %v864_v1, %s1564_s28 }
 0xb71   :  { %v843_v22 = vpop.permute.xlu1 %842 }
 0xb72   :  { %1375 = vmatmul.msk.bf16.vlgmr.msra.gmra.mxu2 %vm105_vm1, %v843_v22 }
 0xb79   :  { %v866_v3 = vpop.permute.xlu2 %865 }
 0xb7a   :  { %1377 = vmatmul.msk.bf16.vlgmr.msra.gmra.mxu3 %vm105_vm1, %v866_v3 }
 0xbf5   :  { %v856_v24 = vpop.f32.mrf.mxu2 }
 0xbf6   :  { %v860_v2 = vadd.f32 %v1374_v23, %v856_v24 }
 0xbf8   :  { %1486 = vtanh.f32 %v860_v2  ;;  %v1378_v31 = vmul.f32 -1.442695, %v860_v2 }
 0xbfd   :  { %v858_v25 = vpop.f32.mrf.mxu2  ;;  %v879_v26 = vpop.f32.mrf.mxu3 }
 0xbfe   :  { %v1487_v27 = vpop.eup %1486  ;;  %v883_v28 = vadd.f32 %v1376_v4, %v879_v26 }
 0xbff   :  { %906 = vrot.lane.b32.xlu0 %v1487_v27, %s1561_s23  ;;  %v1382_v27 = vld [vmem:[%s2017_s0 + $0xc] sm:$0x3] }
 0xc00   :  { %1488 = vtanh.f32 %v883_v28  ;;  %v1379_v32 = vmul.f32 -1.442695, %v883_v28 }
 0xc01   :  { %1490 = vpow2.f32 %v1378_v31 }
 0xc02   :  { %1492 = vpow2.f32 %v1379_v32 }
 0xc05   :  { %v881_v29 = vpop.f32.mrf.mxu3 }
 0xc06   :  { %v1489_v30 = vpop.eup %1488 }
 0xc07   :  { %943 = vrot.lane.b32.xlu1 %v1489_v30, %s1561_s23  ;;  %v1491_v33 = vpop.eup %1490  ;;  %v1384_v30 = vld [vmem:[%s2018_s1 + $0x2] sm:$0x3] }
 0xc08   :  { %v887_v34 = vadd.f32 1.0, %v1491_v33  ;;  %v1493_v35 = vpop.eup %1492 }
 0xc09   :  { %v924_v36 = vadd.f32 1.0, %v1493_v35 }
 0xc0a   :  { %1494 = vrcp.f32 %v887_v34  ;;  %v899_v45 = vand.u32 2147483648, %v887_v34  ;;  %vm893_vm15 = vweird.f32 %v887_v34  ;;  %v897_v46 = vand.u32 2147483647, %v887_v34 }
 0xc0b   :  { %1496 = vrcp.f32 %v924_v36  ;;  %v936_v55 = vand.u32 2147483648, %v924_v36  ;;  %vm930_vm5 = vweird.f32 %v924_v36  ;;  %v934_v57 = vand.u32 2147483647, %v924_v36 }
 0xc0c   :  { %v900_v49 = vor.u32 1.1754944e-38, %v899_v45  ;;  %vm898_vm3 = vcmp.eq.f32.partialorder %v897_v46, 8.507059e+37 }
 0xc0d   :  { %v937_v0 = vor.u32 1.1754944e-38, %v936_v55  ;;  %vm935_vm7 = vcmp.eq.f32.partialorder %v934_v57, 8.507059e+37 }
 0xc10   :  { %v1495_v37 = vpop.eup %1494 }
 0xc11   :  { %v889_v38 = vmul.f32 %v1495_v37, %v887_v34  ;;  %v1497_v40 = vpop.eup %1496  ;;  %vm894_vm14 = vweird.f32 %v1495_v37 }
 0xc12   :  { %v926_v42 = vmul.f32 %v1497_v40, %v924_v36  ;;  %vm895_vm2 = vmor %vm893_vm15, %vm894_vm14  ;;  %vm931_vm4 = vweird.f32 %v1497_v40 }
 0xc13   :  { %v890_v39 = vsub.f32 1.0, %v889_v38  ;;  %vm932_vm6 = vmor %vm930_vm5, %vm931_vm4 }
 0xc14   :  { %v927_v44 = vsub.f32 1.0, %v926_v42 }
 0xc15   :  { %v891_v41 = vmul.f32 %v1495_v37, %v890_v39 }
 0xc16   :  { %v928_v48 = vmul.f32 %v1497_v40, %v927_v44 }
 0xc17   :  { %v892_v43 = vadd.f32 %v1495_v37, %v891_v41 }
 0xc18   :  { %v929_v53 = vadd.f32 %v1497_v40, %v928_v48 }
 0xc19   :  { %v896_v47 = vsel %vm895_vm2, %v1495_v37, %v892_v43 }
 0xc1a   :  { %v901_v51 = vsel %vm898_vm3, %v900_v49, %v896_v47  ;;  %v933_v58 = vsel %vm932_vm6, %v1497_v40, %v929_v53 }
 0xc1b   :  { %v938_v56 = vsel %vm935_vm7, %v937_v0, %v933_v58  ;;  %v904_v60 = vmul.f32 %v901_v51, %v1784_v7 }
 0xc1c   :  { %v941_v17 = vmul.f32 %v938_v56, %v1788_v13 }
 0xc71   :  { %v907_v50 = vpop.permute.xlu0 %906 }
 0xc72   :  { %v909_v52 = vmul.f32 %v907_v50, %v901_v51 }
 0xc74   :  { %911 = vrot.lane.b32.xlu2 %v909_v52, %s1564_s28 }
 0xc79   :  { %v944_v54 = vpop.permute.xlu1 %943 }
 0xc7a   :  { %v946_v11 = vmul.f32 %v944_v54, %v938_v56 }
 0xc7c   :  { %948 = vrot.lane.b32.xlu0 %v946_v11, %s1564_s28 }
 0xcce   :  { %v912_v14 = vpop.permute.xlu2 %911 }
 0xccf   :  { %v1814_v15 = vadd.f32 %v912_v14, %v904_v60 }
 0xcd1   :  { %1498 = vtanh.f32 %v1814_v15 }
 0xcd7   :  { %v1499_v62 = vpop.eup %1498 }
 0xcd8   :  { %917 = vrot.lane.b32.xlu1 %v1499_v62, %s1561_s23 }
 0xcee   :  { %v949_v18 = vpop.permute.xlu0 %948 }
 0xcef   :  { %v1819_v59 = vadd.f32 %v949_v18, %v941_v17 }
 0xcf1   :  { %1500 = vtanh.f32 %v1819_v59 }
 0xcf7   :  { %v1501_v19 = vpop.eup %1500 }
 0xcf8   :  { %954 = vrot.lane.b32.xlu2 %v1501_v19, %s1561_s23 }
 0xd4a   :  { %v918_v21 = vpop.permute.xlu1 %917 }
 0xd4b   :  { %v920_v7 = vmul.f32 %v918_v21, %v901_v51 }
 0xd4d   :  { %v1823_v1 = vpack.c.bf16 %v920_v7, %v920_v7 }
 0xd4f   :  { %v984_v22 = vunpack.c.l.b16 %v1823_v1 }
 0xd51   :  { %v985_v3 = vpack.c.b16 %v984_v22, %v984_v22 }
 0xd52   :  { %v955_v23 = vpop.permute.xlu2 %954 }
 0xd53   :  { %v957_v24 = vmul.f32 %v955_v23, %v938_v56  ;;  %986 = vrot.lane.b32.xlu0 %v985_v3, %s1564_s28 }
 0xd55   :  { %v1827_v13 = vpack.c.bf16 %v957_v24, %v957_v24 }
 0xd57   :  { %v1007_v2 = vunpack.c.l.b16 %v1827_v13 }
 0xd59   :  { %v1008_v4 = vpack.c.b16 %v1007_v2, %v1007_v2 }
 0xd5b   :  { %1009 = vrot.lane.b32.xlu1 %v1008_v4, %s1564_s28 }
 0xdc5   :  { %v987_v25 = vpop.permute.xlu0 %986 }
 0xdc6   :  { %1383 = vmatmul.msk.bf16.vlgmr.msrb.gmra.mxu0 %vm105_vm1, %v987_v25 }
 0xdcd   :  { %v1010_v26 = vpop.permute.xlu1 %1009 }
 0xdce   :  { %1385 = vmatmul.msk.bf16.vlgmr.msrb.gmra.mxu1 %vm105_vm1, %v1010_v26 }
 0xe43   :  { %v1000_v28 = vpop.f32.mrf.mxu0 }
 0xe44   :  { %v1004_v29 = vadd.f32 %v1382_v27, %v1000_v28 }
 0xe46   :  { %1502 = vtanh.f32 %v1004_v29  ;;  %v1386_v37 = vmul.f32 -1.442695, %v1004_v29 }
 0xe4b   :  { %v1002_v31 = vpop.f32.mrf.mxu0  ;;  %v1023_v32 = vpop.f32.mrf.mxu1 }
 0xe4c   :  { %v1503_v33 = vpop.eup %1502  ;;  %v1027_v34 = vadd.f32 %v1384_v30, %v1023_v32 }
 0xe4d   :  { %1050 = vrot.lane.b32.xlu2 %v1503_v33, %s1561_s23 }
 0xe4e   :  { %1504 = vtanh.f32 %v1027_v34  ;;  %v1387_v43 = vmul.f32 -1.442695, %v1027_v34 }
 0xe4f   :  { %1506 = vpow2.f32 %v1386_v37 }
 0xe53   :  { %v1025_v35 = vpop.f32.mrf.mxu1 }
 0xe54   :  { %v1505_v36 = vpop.eup %1504  ;;  %v1390_v35 = vld [vmem:[%s2017_s0 + $0xe] sm:$0x3] }
 0xe55   :  { %1087 = vrot.lane.b32.xlu0 %v1505_v36, %s1561_s23  ;;  %v1507_v38 = vpop.eup %1506 }
 0xe56   :  { %v1031_v39 = vadd.f32 1.0, %v1507_v38 }
 0xe58   :  { %1508 = vrcp.f32 %v1031_v39  ;;  %v1043_v46 = vand.u32 2147483648, %v1031_v39  ;;  %vm1037_vm9 = vweird.f32 %v1031_v39  ;;  %v1041_v47 = vand.u32 2147483647, %v1031_v39 }
 0xe59   :  { %1510 = vpow2.f32 %v1387_v43 }
 0xe5a   :  { %v1044_v50 = vor.u32 1.1754944e-38, %v1043_v46  ;;  %vm1042_vm11 = vcmp.eq.f32.partialorder %v1041_v47, 8.507059e+37 }
 0xe5e   :  { %v1509_v40 = vpop.eup %1508 }
 0xe5f   :  { %v1033_v41 = vmul.f32 %v1509_v40, %v1031_v39  ;;  %vm1038_vm8 = vweird.f32 %v1509_v40  ;;  %v1511_v48 = vpop.eup %1510 }
 0xe60   :  { %vm1039_vm10 = vmor %vm1037_vm9, %vm1038_vm8  ;;  %v1068_v51 = vadd.f32 1.0, %v1511_v48 }
 0xe61   :  { %v1034_v42 = vsub.f32 1.0, %v1033_v41 }
 0xe62   :  { %1512 = vrcp.f32 %v1068_v51  ;;  %v1080_v11 = vand.u32 2147483648, %v1068_v51  ;;  %vm1074_vm13 = vweird.f32 %v1068_v51  ;;  %v1078_v60 = vand.u32 2147483647, %v1068_v51 }
 0xe63   :  { %v1035_v44 = vmul.f32 %v1509_v40, %v1034_v42 }
 0xe64   :  { %v1081_v62 = vor.u32 1.1754944e-38, %v1080_v11  ;;  %vm1079_vm15 = vcmp.eq.f32.partialorder %v1078_v60, 8.507059e+37 }
 0xe65   :  { %v1036_v45 = vadd.f32 %v1509_v40, %v1035_v44 }
 0xe67   :  { %v1040_v49 = vsel %vm1039_vm10, %v1509_v40, %v1036_v45  ;;  %v1149_v40 = vld [vmem:[%s2018_s1] sm:$0x3]  ;;  %v252_v45 = vrot.slane %v1665_v8, 3  ;;  %vm248_vm10 = vcmask 253952  }
 0xe68   :  { %v1045_v53 = vsel %vm1042_vm11, %v1044_v50, %v1040_v49  ;;  %v1513_v57 = vpop.eup %1512 }
 0xe69   :  { %v1070_v58 = vmul.f32 %v1513_v57, %v1068_v51  ;;  %vm1075_vm12 = vweird.f32 %v1513_v57  ;;  %v1048_v21 = vmul.f32 %v1045_v53, %v1814_v15 }
 0xe6a   :  { %vm1076_vm14 = vmor %vm1074_vm13, %vm1075_vm12 }
 0xe6b   :  { %v1071_v0 = vsub.f32 1.0, %v1070_v58 }
 0xe6d   :  { %v1072_v54 = vmul.f32 %v1513_v57, %v1071_v0 }
 0xe6f   :  { %v1073_v56 = vadd.f32 %v1513_v57, %v1072_v54 }
 0xe71   :  { %v1077_v14 = vsel %vm1076_vm14, %v1513_v57, %v1073_v56 }
 0xe72   :  { %v1082_v18 = vsel %vm1079_vm15, %v1081_v62, %v1077_v14 }
 0xe73   :  { %v1085_v3 = vmul.f32 %v1082_v18, %v1819_v59 }
 0xea7   :  { %v1051_v52 = vpop.permute.xlu2 %1050 }
 0xea8   :  { %v1053_v55 = vmul.f32 %v1051_v52, %v1045_v53 }
 0xeaa   :  { %1055 = vrot.lane.b32.xlu1 %v1053_v55, %s1564_s28 }
 0xec7   :  { %v1088_v17 = vpop.permute.xlu0 %1087 }
 0xec8   :  { %v1090_v19 = vmul.f32 %v1088_v17, %v1082_v18 }
 0xeca   :  { %1092 = vrot.lane.b32.xlu2 %v1090_v19, %s1564_s28 }
 0xf1c   :  { %v1056_v7 = vpop.permute.xlu1 %1055 }
 0xf1d   :  { %v1844_v22 = vadd.f32 %v1056_v7, %v1048_v21 }
 0xf1f   :  { %1514 = vtanh.f32 %v1844_v22 }
 0xf24   :  { %v1093_v23 = vpop.permute.xlu2 %1092 }
 0xf25   :  { %v1515_v24 = vpop.eup %1514  ;;  %v1848_v2 = vadd.f32 %v1093_v23, %v1085_v3 }
 0xf26   :  { %1061 = vrot.lane.b32.xlu0 %v1515_v24, %s1561_s23 }
 0xf27   :  { %1516 = vtanh.f32 %v1848_v2 }
 0xf2d   :  { %v1517_v4 = vpop.eup %1516 }
 0xf2e   :  { %1098 = vrot.lane.b32.xlu1 %v1517_v4, %s1561_s23 }
 0xf98   :  { %v1062_v25 = vpop.permute.xlu0 %1061 }
 0xf99   :  { %v1064_v15 = vmul.f32 %v1062_v25, %v1045_v53 }
 0xf9b   :  { %v1853_v26 = vpack.c.bf16 %v1064_v15, %v1064_v15 }
 0xf9d   :  { %v1128_v27 = vunpack.c.l.b16 %v1853_v26 }
 0xf9f   :  { %v1129_v28 = vpack.c.b16 %v1128_v27, %v1128_v27 }
 0xfa0   :  { %v1099_v29 = vpop.permute.xlu1 %1098 }
 0xfa1   :  { %v1101_v59 = vmul.f32 %v1099_v29, %v1082_v18  ;;  %1130 = vrot.lane.b32.xlu2 %v1129_v28, %s1564_s28  ;;  %v239_v28 = vrot.slane %v1661_v63, 3 }
 0xfa3   :  { %v1857_v30 = vpack.c.bf16 %v1101_v59, %v1101_v59 }
 0xfa5   :  { %v1150_v31 = vunpack.c.l.b16 %v1857_v30 }
 0xfa7   :  { %v1151_v32 = vpack.c.b16 %v1150_v31, %v1150_v31  ;;  %v396_v31 = vrot.slane %v1699_v10, 3 }
 0xfa9   :  { %1152 = vrot.lane.b32.xlu0 %v1151_v32, %s1564_s28 }
 0xffb   :  { %v1131_v33 = vpop.permute.xlu2 %1130 }
 0xffc   :  { %1391 = vmatmul.msk.bf16.vlgmr.msrb.gmra.mxu2 %vm105_vm1, %v1131_v33  ;;  %v672_v33 = vrot.slane %v1763_v12, 3 }
0x101b   :  { %v1153_v34 = vpop.permute.xlu0 %1152 }
0x101c   :  { %1392 = vmatmul.msk.bf16.vlgmr.msrb.gmra.mxu3 %vm105_vm1, %v1153_v34  ;;  %vm240_vm1 = vcmask 1040384  }
0x101d   :  { %v255_v46 = vsel %vm240_vm1, %v1665_v8, %v252_v45  ;;  %v243_v59 = vsel %vm240_vm1, %v1661_v63, %v239_v28  ;;  %v399_v32 = vsel %vm240_vm1, %v1699_v10, %v396_v31  ;;  %v675_v34 = vsel %vm240_vm1, %v1763_v12, %v672_v33 }
0x107f   :  { %v1144_v36 = vpop.f32.mrf.mxu2 }
0x1080   :  { %v1148_v37 = vadd.f32 %v1390_v35, %v1144_v36  ;;  %v828_v35 = vrot.slane %v1797_v20, 3  ;;  %v1104_v36 = vrot.slane %v1853_v26, 3 }
0x1082   :  { %1518 = vtanh.f32 %v1148_v37  ;;  %v1393_v47 = vmul.f32 -1.442695, %v1148_v37  ;;  %v831_v63 = vsel %vm240_vm1, %v1797_v20, %v828_v35  ;;  %v1107_v10 = vsel %vm240_vm1, %v1853_v26, %v1104_v36 }
0x1087   :  { %v1146_v38 = vpop.f32.mrf.mxu2 }
0x1088   :  { %v1519_v39 = vpop.eup %1518 }
0x1089   :  { %1193 = vrot.lane.b32.xlu1 %v1519_v39, %s1561_s23 }
0x109f   :  { %v1166_v41 = vpop.f32.mrf.mxu3 }
0x10a0   :  { %v1170_v42 = vadd.f32 %v1166_v41, %v1149_v40 }
0x10a2   :  { %1520 = vtanh.f32 %v1170_v42  ;;  %v1394_v48 = vmul.f32 -1.442695, %v1170_v42  ;;  %v528_v42 = vrot.slane %v1729_v9, 3 }
0x10a3   :  { %1522 = vpow2.f32 %v1393_v47  ;;  %v540_v47 = vrot.slane %v1733_v61, 3 }
0x10a4   :  { %1524 = vpow2.f32 %v1394_v48  ;;  %v960_v48 = vrot.slane %v1823_v1, 3 }
0x10a7   :  { %v1168_v43 = vpop.f32.mrf.mxu3 }
0x10a8   :  { %v1521_v44 = vpop.eup %1520 }
0x10a9   :  { %1230 = vrot.lane.b32.xlu2 %v1521_v44, %s1561_s23  ;;  %v1523_v49 = vpop.eup %1522  ;;  %v684_v44 = vrot.slane %v1767_v16, 3 }
0x10aa   :  { %v1174_v50 = vadd.f32 1.0, %v1523_v49  ;;  %v1525_v51 = vpop.eup %1524 }
0x10ab   :  { %v1211_v52 = vadd.f32 1.0, %v1525_v51  ;;  %v1116_v51 = vrot.slane %v1857_v30, 3 }
0x10ac   :  { %1526 = vrcp.f32 %v1174_v50  ;;  %v1186_v11 = vand.u32 2147483648, %v1174_v50  ;;  %vm1180_vm3 = vweird.f32 %v1174_v50  ;;  %v1184_v60 = vand.u32 2147483647, %v1174_v50 }
0x10ad   :  { %1528 = vrcp.f32 %v1211_v52  ;;  %v1223_v3 = vand.u32 2147483648, %v1211_v52  ;;  %vm1217_vm7 = vweird.f32 %v1211_v52  ;;  %v1221_v23 = vand.u32 2147483647, %v1211_v52 }
0x10ae   :  { %v1187_v17 = vor.u32 1.1754944e-38, %v1186_v11  ;;  %vm1185_vm5 = vcmp.eq.f32.partialorder %v1184_v60, 8.507059e+37 }
0x10af   :  { %v1224_v4 = vor.u32 1.1754944e-38, %v1223_v3  ;;  %vm1222_vm9 = vcmp.eq.f32.partialorder %v1221_v23, 8.507059e+37 }
0x10b1   :  { %257 = vrot.lane.b32.xlu2 %v255_v46, %s1564_s28 }
0x10b2   :  { %v1527_v53 = vpop.eup %1526 }
0x10b3   :  { %v1176_v55 = vmul.f32 %v1527_v53, %v1174_v50  ;;  %v1529_v58 = vpop.eup %1528  ;;  %vm1181_vm2 = vweird.f32 %v1527_v53  ;;  %v816_v50 = vrot.slane %v1793_v6, 3 }
0x10b4   :  { %v1213_v54 = vmul.f32 %v1529_v58, %v1211_v52  ;;  %vm1182_vm4 = vmor %vm1180_vm3, %vm1181_vm2  ;;  %vm1218_vm6 = vweird.f32 %v1529_v58 }
0x10b5   :  { %v1177_v57 = vsub.f32 1.0, %v1176_v55  ;;  %vm1219_vm8 = vmor %vm1217_vm7, %vm1218_vm6 }
0x10b6   :  { %v1214_v8 = vsub.f32 1.0, %v1213_v54 }
0x10b7   :  { %v1178_v0 = vmul.f32 %v1527_v53, %v1177_v57 }
0x10b8   :  { %v1215_v62 = vmul.f32 %v1529_v58, %v1214_v8 }
0x10b9   :  { %v1179_v56 = vadd.f32 %v1527_v53, %v1178_v0 }
0x10ba   :  { %v1216_v7 = vadd.f32 %v1529_v58, %v1215_v62 }
0x10bb   :  { %v1183_v14 = vsel %vm1182_vm4, %v1527_v53, %v1179_v56  ;;  %v972_v53 = vrot.slane %v1827_v13, 3 }
0x10bc   :  { %v1875_v19 = vsel %vm1185_vm5, %v1187_v17, %v1183_v14  ;;  %v1220_v24 = vsel %vm1219_vm8, %v1529_v58, %v1216_v7 }
0x10bd   :  { %v1879_v15 = vsel %vm1222_vm9, %v1224_v4, %v1220_v24  ;;  %v1191_v37 = vmul.f32 %v1875_v19, %v1844_v22  ;;  %v531_v22 = vsel %vm240_vm1, %v1729_v9, %v528_v42  ;;  %v687_v9 = vsel %vm240_vm1, %v1767_v16, %v684_v44 }
0x10be   :  { %v1228_v39 = vmul.f32 %v1879_v15, %v1848_v2  ;;  %v384_v2 = vrot.slane %v1695_v5, 3  ;;  %v963_v16 = vsel %vm240_vm1, %v1823_v1, %v960_v48  ;;  %v1119_v1 = vsel %vm240_vm1, %v1857_v30, %v1116_v51 }
0x10bf   :  { %v975_v57 = vsel %vm240_vm1, %v1827_v13, %v972_v53 }
0x10c0   :  { %v387_v46 = vsel %vm240_vm1, %v1695_v5, %v384_v2  ;;  %v543_v5 = vsel %vm240_vm1, %v1733_v61, %v540_v47  ;;  %v819_v61 = vsel %vm240_vm1, %v1793_v6, %v816_v50 }
0x10fb   :  { %v1194_v18 = vpop.permute.xlu1 %1193 }
0x10fc   :  { %v1196_v21 = vmul.f32 %v1194_v18, %v1875_v19 }
0x10fe   :  { %1198 = vrot.lane.b32.xlu0 %v1196_v21, %s1564_s28 }
0x1103   :  { %v1231_v25 = vpop.permute.xlu2 %1230 }
0x1104   :  { %v1233_v27 = vmul.f32 %v1231_v25, %v1879_v15 }
0x1106   :  { %1235 = vrot.lane.b32.xlu1 %v1233_v27, %s1564_s28 }
0x110b   :  { %v258_v29 = vpop.permute.xlu2 %257 }
0x110c   :  { %1341 = vst.msk [vmem:[%s2022_s5 + $0x7] sm:$0x1] %vm248_vm10, %v258_v29 }
0x110e   :  { %245 = vrot.lane.b32.xlu1 %v243_v59, %s1564_s28 }
0x1116   :  { %401 = vrot.lane.b32.xlu1 %v399_v32, %s1564_s28 }
0x111e   :  { %677 = vrot.lane.b32.xlu1 %v675_v34, %s1564_s28 }
0x1126   :  { %833 = vrot.lane.b32.xlu1 %v831_v63, %s1564_s28 }
0x112e   :  { %1109 = vrot.lane.b32.xlu1 %v1107_v10, %s1564_s28 }
0x1170   :  { %v1199_v12 = vpop.permute.xlu0 %1198 }
0x1171   :  { %v1201_v38 = vadd.f32 %v1199_v12, %v1191_v37 }
0x1173   :  { %1530 = vtanh.f32 %v1201_v38 }
0x1178   :  { %v1236_v40 = vpop.permute.xlu1 %1235 }
0x1179   :  { %v1531_v20 = vpop.eup %1530  ;;  %v1238_v41 = vadd.f32 %v1236_v40, %v1228_v39 }
0x117a   :  { %1204 = vrot.lane.b32.xlu2 %v1531_v20, %s1561_s23 }
0x117b   :  { %1532 = vtanh.f32 %v1238_v41 }
0x1180   :  { %v246_v26 = vpop.permute.xlu1 %245 }
0x1181   :  { %v1533_v43 = vpop.eup %1532  ;;  %249 = vst.msk [vmem:[%s2021_s4] sm:$0x1] %vm248_vm10, %v246_v26 }
0x1182   :  { %1241 = vrot.lane.b32.xlu0 %v1533_v43, %s1561_s23  ;;  %533 = vrot.lane.b32.xlu2 %v531_v22, %s1564_s28 }
0x1188   :  { %v402_v45 = vpop.permute.xlu1 %401 }
0x1189   :  { %1349 = vst.msk [vmem:[%s2022_s5 + $0x6] sm:$0x1] %vm248_vm10, %v402_v45 }
0x118a   :  { %389 = vrot.lane.b32.xlu0 %v387_v46, %s1564_s28  ;;  %689 = vrot.lane.b32.xlu2 %v687_v9, %s1564_s28 }
0x1190   :  { %v678_v49 = vpop.permute.xlu1 %677 }
0x1191   :  { %1364 = vst.msk [vmem:[%s2021_s4 + $0x3] sm:$0x1] %vm248_vm10, %v678_v49 }
0x1192   :  { %545 = vrot.lane.b32.xlu0 %v543_v5, %s1564_s28  ;;  %965 = vrot.lane.b32.xlu2 %v963_v16, %s1564_s28 }
0x1198   :  { %v834_v52 = vpop.permute.xlu1 %833 }
0x1199   :  { %1373 = vst.msk [vmem:[%s2022_s5 + $0x3] sm:$0x1] %vm248_vm10, %v834_v52 }
0x119a   :  { %821 = vrot.lane.b32.xlu0 %v819_v61, %s1564_s28  ;;  %1121 = vrot.lane.b32.xlu2 %v1119_v1, %s1564_s28 }
0x11a0   :  { %v1110_v55 = vpop.permute.xlu1 %1109 }
0x11a1   :  { %1388 = vst.msk [vmem:[%s2021_s4 + $0x6] sm:$0x1] %vm248_vm10, %v1110_v55 }
0x11a2   :  { %977 = vrot.lane.b32.xlu0 %v975_v57, %s1564_s28 }
0x11d4   :  { %v1205_v6 = vpop.permute.xlu2 %1204 }
0x11d5   :  { %v1207_v30 = vmul.f32 %v1205_v6, %v1875_v19 }
0x11d7   :  { %v1245_v58 = vpack.c.bf16 %v1207_v30, %v1207_v30  ;;  %1269 = vrot.lane.b32.xlu2 %v1207_v30, %s1564_s28 }
0x11d9   :  { %v1247_v0 = vrot.slane %v1245_v58, 3 }
0x11db   :  { %v1250_v54 = vsel %vm240_vm1, %v1245_v58, %v1247_v0 }
0x11dc   :  { %1252 = vrot.lane.b32.xlu0 %v1250_v54, %s1564_s28  ;;  %v534_v56 = vpop.permute.xlu2 %533 }
0x11dd   :  { %1356 = vst.msk [vmem:[%s2021_s4 + $0x2] sm:$0x1] %vm248_vm10, %v534_v56 }
0x11df   :  { %1285 = vrot.lane.b32.xlu2 %v1238_v41, %s1565_s21 }
0x11e4   :  { %1275 = vrot.lane.b32.xlu0 %v1201_v38, %s1565_s21  ;;  %v690_v13 = vpop.permute.xlu2 %689 }
0x11e5   :  { %1365 = vst.msk [vmem:[%s2022_s5 + $0x4] sm:$0x1] %vm248_vm10, %v690_v13 }
0x11ec   :  { %v966_v8 = vpop.permute.xlu2 %965 }
0x11ed   :  { %1380 = vst.msk [vmem:[%s2021_s4 + $0x5] sm:$0x1] %vm248_vm10, %v966_v8 }
0x11f4   :  { %v1122_v11 = vpop.permute.xlu2 %1121  ;;  %v1242_v60 = vpop.permute.xlu0 %1241 }
0x11f5   :  { %1389 = vst.msk [vmem:[%s2022_s5 + $0x1] sm:$0x1] %vm248_vm10, %v1122_v11  ;;  %v1244_v14 = vmul.f32 %v1242_v60, %v1879_v15 }
0x11f7   :  { %v1257_v62 = vpack.c.bf16 %v1244_v14, %v1244_v14 }
0x11f9   :  { %v1259_v17 = vrot.slane %v1257_v62, 3 }
0x11fb   :  { %v1262_v18 = vsel %vm240_vm1, %v1257_v62, %v1259_v17 }
0x11fc   :  { %1264 = vrot.lane.b32.xlu1 %v1262_v18, %s1564_s28  ;;  %v390_v19 = vpop.permute.xlu0 %389 }
0x11fd   :  { %1348 = vst.msk [vmem:[%s2021_s4 + $0x1] sm:$0x1] %vm248_vm10, %v390_v19 }
0x1204   :  { %1280 = vrot.lane.b32.xlu1 %v1244_v14, %s1564_s28  ;;  %v546_v21 = vpop.permute.xlu0 %545 }
0x1205   :  { %1357 = vst.msk [vmem:[%s2022_s5 + $0x5] sm:$0x1] %vm248_vm10, %v546_v21 }
0x120c   :  { %v822_v7 = vpop.permute.xlu0 %821 }
0x120d   :  { %1372 = vst.msk [vmem:[%s2021_s4 + $0x4] sm:$0x1] %vm248_vm10, %v822_v7 }
0x1214   :  { %v978_v3 = vpop.permute.xlu0 %977 }
0x1215   :  { %1381 = vst.msk [vmem:[%s2022_s5 + $0x2] sm:$0x1] %vm248_vm10, %v978_v3 }
0x1231   :  { %v1270_v23 = vpop.permute.xlu2 %1269 }
0x1232   :  { %1273 = vst.msk [vmem:[#allocation2] sm:$0x3] %vm74_vm0, %v1270_v23 }
0x1239   :  { %v1286_v24 = vpop.permute.xlu2 %1285 }
0x123a   :  { %1288 = vst.msk [vmem:[#allocation5] sm:$0x3] %vm74_vm0, %v1286_v24 }
0x124e   :  { %v1253_v4 = vpop.permute.xlu0 %1252 }
0x124f   :  { %1395 = vst.msk [vmem:[%s2021_s4 + $0x7] sm:$0x1] %vm248_vm10, %v1253_v4 }
0x1256   :  { %v1276_v25 = vpop.permute.xlu0 %1275 }
0x1257   :  { %1278 = vst.msk [vmem:[#allocation3] sm:$0x3] %vm74_vm0, %v1276_v25 }
0x126e   :  { %v1265_v15 = vpop.permute.xlu1 %1264 }
0x126f   :  { %1267 = vst.msk [vmem:[%s2022_s5] sm:$0x1] %vm248_vm10, %v1265_v15 }
0x1276   :  { %v1281_v27 = vpop.permute.xlu1 %1280 }
0x1277   :  { %1283 = vst.msk [vmem:[#allocation4] sm:$0x3] %vm74_vm0, %v1281_v27 }
0x1278   :  { %1309 = vsyncpa [#allocation7], 1 }

</bundles_post_ra>
